<compile_context>
chip_gen: v6e
topology: v6e:2x2x1
jax: 0.10.0
libtpu: 0.0.40
codegen_flags: <defaults>
</compile_context>

<pallas_src>
import functools
import math

import jax
import jax.numpy as jnp
from jax.experimental import pallas as pl
from jax.experimental.pallas import tpu as pltpu

NUM_HEADS = 4


# ----------------------------------------------------------------------------- helpers
def _erf(x):
    # Abramowitz & Stegun 7.1.26 polynomial, max abs error ~1.5e-7 (fp32-accurate).
    # Kept instead of lax.erf to guarantee Mosaic lowering; exp() rides the EUP slot.
    a1, a2, a3, a4, a5 = 0.254829592, -0.284496736, 1.421413741, -1.453152027, 1.061405429
    p = 0.3275911
    sgn = jnp.where(x >= 0.0, 1.0, -1.0)
    ax = jnp.abs(x)
    t = 1.0 / (1.0 + p * ax)
    poly = ((((a5 * t + a4) * t + a3) * t + a2) * t + a1) * t
    return sgn * (1.0 - poly * jnp.exp(-ax * ax))


def _gelu(x):
    # exact (erf-based) GELU, like torch.nn.functional.gelu default
    return 0.5 * x * (1.0 + _erf(x * (1.0 / math.sqrt(2.0))))


# ----------------------------------------------------------------------------- one block (traced, in-VMEM)
def _block_compute(x, w_in_ref, b_in_ref, w_out_ref, b_out_ref,
                   ln1_g_ref, ln1_b_ref, w_fc1_ref, b_fc1_ref,
                   w_fc2_ref, b_fc2_ref, *, num_heads):
    # x: (L, E) fp32 value (already in VMEM/vregs)
    L, E = x.shape
    H = num_heads
    Dh = E // H
    scale = 1.0 / math.sqrt(Dh)

    # ---- multi-head attention with out_proj folded into the head loop ------
    acc = jnp.zeros((L, E), jnp.float32)
    for h in range(H):                                   # static unroll
        q0 = h * Dh
        k0 = E + h * Dh
        v0 = 2 * E + h * Dh
        # static REF slices of the packed in-projection (no value lane-slicing)
        qh = jnp.dot(x, w_in_ref[:, q0:q0 + Dh],
                     preferred_element_type=jnp.float32) + b_in_ref[:, q0:q0 + Dh]
        kh = jnp.dot(x, w_in_ref[:, k0:k0 + Dh],
                     preferred_element_type=jnp.float32) + b_in_ref[:, k0:k0 + Dh]
        vh = jnp.dot(x, w_in_ref[:, v0:v0 + Dh],
                     preferred_element_type=jnp.float32) + b_in_ref[:, v0:v0 + Dh]

        s = jax.lax.dot_general(qh * scale, kh, (((1,), (1,)), ((), ())),
                                preferred_element_type=jnp.float32)      # (L, L)
        s = s - jnp.max(s, axis=-1, keepdims=True)
        p = jnp.exp(s)
        p = p * pl.reciprocal(jnp.sum(p, axis=-1, keepdims=True), approx=True)
        oh = jnp.dot(p, vh, preferred_element_type=jnp.float32)          # (L, Dh)
        # fold out-projection: static sublane ref slice of W_out
        acc = acc + jnp.dot(oh, w_out_ref[q0:q0 + Dh, :],
                            preferred_element_type=jnp.float32)          # (L, E)
    attn = acc + b_out_ref[...]

    # ---- residual + LayerNorm1 (eps=1e-5, PyTorch default) ------------------
    z = x + attn
    mu = jnp.mean(z, axis=-1, keepdims=True)
    d = z - mu
    var = jnp.mean(d * d, axis=-1, keepdims=True)
    z = d * jax.lax.rsqrt(var + 1e-5) * ln1_g_ref[...] + ln1_b_ref[...]

    # ---- feed-forward: fc1 + exact GELU + fc2 -------------------------------
    hid = jnp.dot(z, w_fc1_ref[...], preferred_element_type=jnp.float32) + b_fc1_ref[...]
    hid = _gelu(hid)
    out = jnp.dot(hid, w_fc2_ref[...], preferred_element_type=jnp.float32) + b_fc2_ref[...]
    # NOTE: norm2 and an FFN residual exist in the PyTorch module __init__ but the
    # reference forward returns fc2(gelu(fc1(x))) directly -- faithfully reproduced.
    return out


# ----------------------------------------------------------------------------- fused encoder kernel
def _encoder_kernel(x_ref, *refs, num_heads):
    # refs = (block0 weights[10], block1 weights[10], ..., o_ref)
    o_ref = refs[-1]
    w_refs = refs[:-1]
    n_blocks = len(w_refs) // 10

    x = x_ref[...]                                   # (L, E0) -- batch dim squeezed
    for b in range(n_blocks):                        # static unroll over blocks
        ws = w_refs[10 * b:10 * (b + 1)]
        x = _block_compute(x, *ws, num_heads=num_heads)
    o_ref[...] = x.astype(o_ref.dtype)


def _const_spec(shape):
    nd = len(shape)
    return pl.BlockSpec(shape, lambda n, _nd=nd: (0,) * _nd)


def transformer_encoder_forward(x_lne, block_params, num_heads=NUM_HEADS):
    # x_lne: (L, N, E) like PyTorch (batch_first=False); work internally in (N, L, E)
    L, N, E0 = x_lne.shape
    x_nle = jnp.transpose(x_lne, (1, 0, 2))
    d_out = block_params[-1]["w_fc2"].shape[1]

    in_specs = [pl.BlockSpec((None, L, E0), lambda n: (n, 0, 0))]
    flat_weights = []
    for p in block_params:
        ws = [
            p["w_in"], p["b_in"].reshape(1, -1),
            p["w_out"], p["b_out"].reshape(1, -1),
            p["ln1_g"].reshape(1, -1), p["ln1_b"].reshape(1, -1),
            p["w_fc1"], p["b_fc1"].reshape(1, -1),
            p["w_fc2"], p["b_fc2"].reshape(1, -1),
        ]
        for w in ws:
            in_specs.append(_const_spec(w.shape))
            flat_weights.append(w)

    kernel = functools.partial(_encoder_kernel, num_heads=num_heads)
    out_nld = pl.pallas_call(
        kernel,
        out_shape=jax.ShapeDtypeStruct((N, L, d_out), jnp.float32),
        grid=(N,),
        in_specs=in_specs,
        out_specs=pl.BlockSpec((None, L, d_out), lambda n: (n, 0, 0)),
        compiler_params=pltpu.CompilerParams(
            dimension_semantics=("parallel",),
        ),
    )(x_nle, *flat_weights)
    # TODO(synk): for large L*N, tile tokens / use flash-style KV tiling budgeted against
    # v7x's 32 MiB scoped VMEM instead of whole-array blocks (current shapes are tiny).
    return jnp.transpose(out_nld, (1, 0, 2))


# ----------------------------------------------------------------------------- params
def init_block_params(key, d_in, d_hidden, d_out):
    k = jax.random.split(key, 8)
    s = 0.05
    # weights stored as (in, out), i.e. the transpose of PyTorch's (out, in) layout
    return dict(
        w_in=jax.random.normal(k[0], (d_in, 3 * d_in), jnp.float32) * s,
        b_in=jax.random.normal(k[1], (3 * d_in,), jnp.float32) * 0.01,
        w_out=jax.random.normal(k[2], (d_in, d_in), jnp.float32) * s,
        b_out=jax.random.normal(k[3], (d_in,), jnp.float32) * 0.01,
        ln1_g=jnp.ones((d_in,), jnp.float32),
        ln1_b=jnp.zeros((d_in,), jnp.float32),
        w_fc1=jax.random.normal(k[4], (d_in, d_hidden), jnp.float32) * s,
        b_fc1=jax.random.normal(k[5], (d_hidden,), jnp.float32) * 0.01,
        w_fc2=jax.random.normal(k[6], (d_hidden, d_out), jnp.float32) * s,
        b_fc2=jax.random.normal(k[7], (d_out,), jnp.float32) * 0.01,
    )


def init_encoder_params(key, d_input, d_hidden, d_output, num_blocks):
    keys = jax.random.split(key, num_blocks + 1)
    params = []
    for i in range(num_blocks):
        params.append(
            init_block_params(keys[i], d_input // 2**i, d_hidden, d_input // 2**(i + 1))
        )
    params.append(
        init_block_params(keys[num_blocks], d_input // 2**num_blocks, d_hidden, d_output)
    )
    return params


# ----------------------------------------------------------------------------- main
if __name__ == "__main__":
    D_INPUT, D_HIDDEN, D_OUTPUT, NUM_BLOCKS = 64, 64, 16, 2
    L, N = 8, 2  # seq_len, batch

    key = jax.random.PRNGKey(0)
    kx, kp = jax.random.split(key)
    x = jax.random.normal(kx, (L, N, D_INPUT), jnp.float32)
    params = init_encoder_params(kp, D_INPUT, D_HIDDEN, D_OUTPUT, NUM_BLOCKS)

    fwd = jax.jit(lambda inp: transformer_encoder_forward(inp, params))
    out = fwd(x)
    jax.block_until_ready(out)
    assert out.shape == (L, N, D_OUTPUT), out.shape
    assert bool(jnp.all(jnp.isfinite(out)))
    print("KERNEL_OK")
</pallas_src>

<mosaic_0001>
module attributes {stable_mosaic.version = 11 : i64} {
  func.func @_encoder_kernel(%arg0: i32, %arg1: memref<1x8x64xf32, #tpu.memory_space<vmem>>, %arg2: memref<64x192xf32, #tpu.memory_space<vmem>>, %arg3: memref<1x192xf32, #tpu.memory_space<vmem>>, %arg4: memref<64x64xf32, #tpu.memory_space<vmem>>, %arg5: memref<1x64xf32, #tpu.memory_space<vmem>>, %arg6: memref<1x64xf32, #tpu.memory_space<vmem>>, %arg7: memref<1x64xf32, #tpu.memory_space<vmem>>, %arg8: memref<64x64xf32, #tpu.memory_space<vmem>>, %arg9: memref<1x64xf32, #tpu.memory_space<vmem>>, %arg10: memref<64x32xf32, #tpu.memory_space<vmem>>, %arg11: memref<1x32xf32, #tpu.memory_space<vmem>>, %arg12: memref<32x96xf32, #tpu.memory_space<vmem>>, %arg13: memref<1x96xf32, #tpu.memory_space<vmem>>, %arg14: memref<32x32xf32, #tpu.memory_space<vmem>>, %arg15: memref<1x32xf32, #tpu.memory_space<vmem>>, %arg16: memref<1x32xf32, #tpu.memory_space<vmem>>, %arg17: memref<1x32xf32, #tpu.memory_space<vmem>>, %arg18: memref<32x64xf32, #tpu.memory_space<vmem>>, %arg19: memref<1x64xf32, #tpu.memory_space<vmem>>, %arg20: memref<64x16xf32, #tpu.memory_space<vmem>>, %arg21: memref<1x16xf32, #tpu.memory_space<vmem>>, %arg22: memref<16x48xf32, #tpu.memory_space<vmem>>, %arg23: memref<1x48xf32, #tpu.memory_space<vmem>>, %arg24: memref<16x16xf32, #tpu.memory_space<vmem>>, %arg25: memref<1x16xf32, #tpu.memory_space<vmem>>, %arg26: memref<1x16xf32, #tpu.memory_space<vmem>>, %arg27: memref<1x16xf32, #tpu.memory_space<vmem>>, %arg28: memref<16x64xf32, #tpu.memory_space<vmem>>, %arg29: memref<1x64xf32, #tpu.memory_space<vmem>>, %arg30: memref<64x16xf32, #tpu.memory_space<vmem>>, %arg31: memref<1x16xf32, #tpu.memory_space<vmem>>, %arg32: memref<1x8x16xf32, #tpu.memory_space<vmem>>) attributes {dimension_semantics = [#tpu.dimension_semantics<parallel>], iteration_bounds = array<i64: 2>, scalar_prefetch = 0 : i64, scratch_operands = 0 : i64, tpu.core_type = #tpu.core_type<tc>, window_params = [{transform_indices = @transform_0, window_bounds = array<i64: 1, 8, 64>}, {pipeline_mode = #tpu.pipeline_mode<synchronous>, transform_indices = @transform_1, window_bounds = array<i64: 64, 192>}, {pipeline_mode = #tpu.pipeline_mode<synchronous>, transform_indices = @transform_2, window_bounds = array<i64: 1, 192>}, {pipeline_mode = #tpu.pipeline_mode<synchronous>, transform_indices = @transform_3, window_bounds = array<i64: 64, 64>}, {pipeline_mode = #tpu.pipeline_mode<synchronous>, transform_indices = @transform_4, window_bounds = array<i64: 1, 64>}, {pipeline_mode = #tpu.pipeline_mode<synchronous>, transform_indices = @transform_5, window_bounds = array<i64: 1, 64>}, {pipeline_mode = #tpu.pipeline_mode<synchronous>, transform_indices = @transform_6, window_bounds = array<i64: 1, 64>}, {pipeline_mode = #tpu.pipeline_mode<synchronous>, transform_indices = @transform_7, window_bounds = array<i64: 64, 64>}, {pipeline_mode = #tpu.pipeline_mode<synchronous>, transform_indices = @transform_8, window_bounds = array<i64: 1, 64>}, {pipeline_mode = #tpu.pipeline_mode<synchronous>, transform_indices = @transform_9, window_bounds = array<i64: 64, 32>}, {pipeline_mode = #tpu.pipeline_mode<synchronous>, transform_indices = @transform_10, window_bounds = array<i64: 1, 32>}, {pipeline_mode = #tpu.pipeline_mode<synchronous>, transform_indices = @transform_11, window_bounds = array<i64: 32, 96>}, {pipeline_mode = #tpu.pipeline_mode<synchronous>, transform_indices = @transform_12, window_bounds = array<i64: 1, 96>}, {pipeline_mode = #tpu.pipeline_mode<synchronous>, transform_indices = @transform_13, window_bounds = array<i64: 32, 32>}, {pipeline_mode = #tpu.pipeline_mode<synchronous>, transform_indices = @transform_14, window_bounds = array<i64: 1, 32>}, {pipeline_mode = #tpu.pipeline_mode<synchronous>, transform_indices = @transform_15, window_bounds = array<i64: 1, 32>}, {pipeline_mode = #tpu.pipeline_mode<synchronous>, transform_indices = @transform_16, window_bounds = array<i64: 1, 32>}, {pipeline_mode = #tpu.pipeline_mode<synchronous>, transform_indices = @transform_17, window_bounds = array<i64: 32, 64>}, {pipeline_mode = #tpu.pipeline_mode<synchronous>, transform_indices = @transform_18, window_bounds = array<i64: 1, 64>}, {pipeline_mode = #tpu.pipeline_mode<synchronous>, transform_indices = @transform_19, window_bounds = array<i64: 64, 16>}, {pipeline_mode = #tpu.pipeline_mode<synchronous>, transform_indices = @transform_20, window_bounds = array<i64: 1, 16>}, {pipeline_mode = #tpu.pipeline_mode<synchronous>, transform_indices = @transform_21, window_bounds = array<i64: 16, 48>}, {pipeline_mode = #tpu.pipeline_mode<synchronous>, transform_indices = @transform_22, window_bounds = array<i64: 1, 48>}, {pipeline_mode = #tpu.pipeline_mode<synchronous>, transform_indices = @transform_23, window_bounds = array<i64: 16, 16>}, {pipeline_mode = #tpu.pipeline_mode<synchronous>, transform_indices = @transform_24, window_bounds = array<i64: 1, 16>}, {pipeline_mode = #tpu.pipeline_mode<synchronous>, transform_indices = @transform_25, window_bounds = array<i64: 1, 16>}, {pipeline_mode = #tpu.pipeline_mode<synchronous>, transform_indices = @transform_26, window_bounds = array<i64: 1, 16>}, {pipeline_mode = #tpu.pipeline_mode<synchronous>, transform_indices = @transform_27, window_bounds = array<i64: 16, 64>}, {pipeline_mode = #tpu.pipeline_mode<synchronous>, transform_indices = @transform_28, window_bounds = array<i64: 1, 64>}, {pipeline_mode = #tpu.pipeline_mode<synchronous>, transform_indices = @transform_29, window_bounds = array<i64: 64, 16>}, {pipeline_mode = #tpu.pipeline_mode<synchronous>, transform_indices = @transform_30, window_bounds = array<i64: 1, 16>}, {transform_indices = @transform_31, window_bounds = array<i64: 1, 8, 16>}]} {
    %c0 = arith.constant 0 : index
    %c0_0 = arith.constant 0 : index
    %c0_1 = arith.constant 0 : index
    %0 = vector.load %arg1[%c0, %c0_0, %c0_1] : memref<1x8x64xf32, #tpu.memory_space<vmem>>, vector<1x8x64xf32>
    %1 = vector.shape_cast %0 : vector<1x8x64xf32> to vector<8x64xf32>
    %cst = arith.constant 0.000000e+00 : f32
    %2 = vector.broadcast %cst : f32 to vector<8x64xf32>
    %c0_2 = arith.constant 0 : index
    %c0_3 = arith.constant 0 : index
    %3 = vector.load %arg2[%c0_2, %c0_3] : memref<64x192xf32, #tpu.memory_space<vmem>>, vector<64x16xf32>
    %cst_4 = arith.constant dense<0.000000e+00> : vector<8x16xf32>
    %4 = tpu.matmul %1, %3, %cst_4 {dimension_numbers = #tpu.dot_dimension_numbers<[1], [0], [0], [1], [0, 0, 1, 1], [], []>} : vector<8x64xf32>, vector<64x16xf32>, vector<8x16xf32> -> vector<8x16xf32>
    %c0_5 = arith.constant 0 : index
    %c0_6 = arith.constant 0 : index
    %5 = vector.load %arg3[%c0_5, %c0_6] : memref<1x192xf32, #tpu.memory_space<vmem>>, vector<1x16xf32>
    %6 = vector.broadcast %5 : vector<1x16xf32> to vector<8x16xf32>
    %7 = arith.addf %4, %6 : vector<8x16xf32>
    %c0_7 = arith.constant 0 : index
    %c64 = arith.constant 64 : index
    %8 = vector.load %arg2[%c0_7, %c64] : memref<64x192xf32, #tpu.memory_space<vmem>>, vector<64x16xf32>
    %cst_8 = arith.constant dense<0.000000e+00> : vector<8x16xf32>
    %9 = tpu.matmul %1, %8, %cst_8 {dimension_numbers = #tpu.dot_dimension_numbers<[1], [0], [0], [1], [0, 0, 1, 1], [], []>} : vector<8x64xf32>, vector<64x16xf32>, vector<8x16xf32> -> vector<8x16xf32>
    %c0_9 = arith.constant 0 : index
    %c64_10 = arith.constant 64 : index
    %10 = vector.load %arg3[%c0_9, %c64_10] : memref<1x192xf32, #tpu.memory_space<vmem>>, vector<1x16xf32>
    %11 = vector.broadcast %10 : vector<1x16xf32> to vector<8x16xf32>
    %12 = arith.addf %9, %11 : vector<8x16xf32>
    %c0_11 = arith.constant 0 : index
    %c128 = arith.constant 128 : index
    %13 = vector.load %arg2[%c0_11, %c128] : memref<64x192xf32, #tpu.memory_space<vmem>>, vector<64x16xf32>
    %cst_12 = arith.constant dense<0.000000e+00> : vector<8x16xf32>
    %14 = tpu.matmul %1, %13, %cst_12 {dimension_numbers = #tpu.dot_dimension_numbers<[1], [0], [0], [1], [0, 0, 1, 1], [], []>} : vector<8x64xf32>, vector<64x16xf32>, vector<8x16xf32> -> vector<8x16xf32>
    %c0_13 = arith.constant 0 : index
    %c128_14 = arith.constant 128 : index
    %15 = vector.load %arg3[%c0_13, %c128_14] : memref<1x192xf32, #tpu.memory_space<vmem>>, vector<1x16xf32>
    %16 = vector.broadcast %15 : vector<1x16xf32> to vector<8x16xf32>
    %17 = arith.addf %14, %16 : vector<8x16xf32>
    %cst_15 = arith.constant 2.500000e-01 : f32
    %18 = vector.broadcast %cst_15 : f32 to vector<8x16xf32>
    %19 = arith.mulf %7, %18 : vector<8x16xf32>
    %cst_16 = arith.constant dense<0.000000e+00> : vector<8x8xf32>
    %20 = tpu.matmul %19, %12, %cst_16 {dimension_numbers = #tpu.dot_dimension_numbers<[1], [1], [0], [0], [0, 0, 1, 0], [], []>} : vector<8x16xf32>, vector<8x16xf32>, vector<8x8xf32> -> vector<8x8xf32>
    %cst_17 = arith.constant dense<0xFF800000> : vector<8xf32>
    %21 = vector.multi_reduction <maximumf>, %20, %cst_17 [1] : vector<8x8xf32> to vector<8xf32>
    %22 = vector.shape_cast %21 : vector<8xf32> to vector<8x1xf32>
    %23 = vector.broadcast %22 : vector<8x1xf32> to vector<8x8xf32>
    %24 = arith.subf %20, %23 : vector<8x8xf32>
    %25 = math.exp %24 : vector<8x8xf32>
    %cst_18 = arith.constant dense<0.000000e+00> : vector<8xf32>
    %26 = vector.multi_reduction <add>, %25, %cst_18 [1] : vector<8x8xf32> to vector<8xf32>
    %27 = vector.shape_cast %26 : vector<8xf32> to vector<8x1xf32>
    %28 = tpu.reciprocal %27 {approx = true} : vector<8x1xf32> -> vector<8x1xf32>
    %29 = vector.broadcast %28 : vector<8x1xf32> to vector<8x8xf32>
    %30 = arith.mulf %25, %29 : vector<8x8xf32>
    %cst_19 = arith.constant dense<0.000000e+00> : vector<8x16xf32>
    %31 = tpu.matmul %30, %17, %cst_19 {dimension_numbers = #tpu.dot_dimension_numbers<[1], [0], [0], [1], [0, 0, 1, 1], [], []>} : vector<8x8xf32>, vector<8x16xf32>, vector<8x16xf32> -> vector<8x16xf32>
    %c0_20 = arith.constant 0 : index
    %c0_21 = arith.constant 0 : index
    %32 = vector.load %arg4[%c0_20, %c0_21] : memref<64x64xf32, #tpu.memory_space<vmem>>, vector<16x64xf32>
    %cst_22 = arith.constant dense<0.000000e+00> : vector<8x64xf32>
    %33 = tpu.matmul %31, %32, %cst_22 {dimension_numbers = #tpu.dot_dimension_numbers<[1], [0], [0], [1], [0, 0, 1, 1], [], []>} : vector<8x16xf32>, vector<16x64xf32>, vector<8x64xf32> -> vector<8x64xf32>
    %34 = arith.addf %2, %33 : vector<8x64xf32>
    %c0_23 = arith.constant 0 : index
    %c16 = arith.constant 16 : index
    %35 = vector.load %arg2[%c0_23, %c16] : memref<64x192xf32, #tpu.memory_space<vmem>>, vector<64x16xf32>
    %cst_24 = arith.constant dense<0.000000e+00> : vector<8x16xf32>
    %36 = tpu.matmul %1, %35, %cst_24 {dimension_numbers = #tpu.dot_dimension_numbers<[1], [0], [0], [1], [0, 0, 1, 1], [], []>} : vector<8x64xf32>, vector<64x16xf32>, vector<8x16xf32> -> vector<8x16xf32>
    %c0_25 = arith.constant 0 : index
    %c16_26 = arith.constant 16 : index
    %37 = vector.load %arg3[%c0_25, %c16_26] : memref<1x192xf32, #tpu.memory_space<vmem>>, vector<1x16xf32>
    %38 = vector.broadcast %37 : vector<1x16xf32> to vector<8x16xf32>
    %39 = arith.addf %36, %38 : vector<8x16xf32>
    %c0_27 = arith.constant 0 : index
    %c80 = arith.constant 80 : index
    %40 = vector.load %arg2[%c0_27, %c80] : memref<64x192xf32, #tpu.memory_space<vmem>>, vector<64x16xf32>
    %cst_28 = arith.constant dense<0.000000e+00> : vector<8x16xf32>
    %41 = tpu.matmul %1, %40, %cst_28 {dimension_numbers = #tpu.dot_dimension_numbers<[1], [0], [0], [1], [0, 0, 1, 1], [], []>} : vector<8x64xf32>, vector<64x16xf32>, vector<8x16xf32> -> vector<8x16xf32>
    %c0_29 = arith.constant 0 : index
    %c80_30 = arith.constant 80 : index
    %42 = vector.load %arg3[%c0_29, %c80_30] : memref<1x192xf32, #tpu.memory_space<vmem>>, vector<1x16xf32>
    %43 = vector.broadcast %42 : vector<1x16xf32> to vector<8x16xf32>
    %44 = arith.addf %41, %43 : vector<8x16xf32>
    %c0_31 = arith.constant 0 : index
    %c144 = arith.constant 144 : index
    %45 = vector.load %arg2[%c0_31, %c144] : memref<64x192xf32, #tpu.memory_space<vmem>>, vector<64x16xf32>
    %cst_32 = arith.constant dense<0.000000e+00> : vector<8x16xf32>
    %46 = tpu.matmul %1, %45, %cst_32 {dimension_numbers = #tpu.dot_dimension_numbers<[1], [0], [0], [1], [0, 0, 1, 1], [], []>} : vector<8x64xf32>, vector<64x16xf32>, vector<8x16xf32> -> vector<8x16xf32>
    %c0_33 = arith.constant 0 : index
    %c144_34 = arith.constant 144 : index
    %47 = vector.load %arg3[%c0_33, %c144_34] : memref<1x192xf32, #tpu.memory_space<vmem>>, vector<1x16xf32>
    %48 = vector.broadcast %47 : vector<1x16xf32> to vector<8x16xf32>
    %49 = arith.addf %46, %48 : vector<8x16xf32>
    %cst_35 = arith.constant 2.500000e-01 : f32
    %50 = vector.broadcast %cst_35 : f32 to vector<8x16xf32>
    %51 = arith.mulf %39, %50 : vector<8x16xf32>
    %cst_36 = arith.constant dense<0.000000e+00> : vector<8x8xf32>
    %52 = tpu.matmul %51, %44, %cst_36 {dimension_numbers = #tpu.dot_dimension_numbers<[1], [1], [0], [0], [0, 0, 1, 0], [], []>} : vector<8x16xf32>, vector<8x16xf32>, vector<8x8xf32> -> vector<8x8xf32>
    %cst_37 = arith.constant dense<0xFF800000> : vector<8xf32>
    %53 = vector.multi_reduction <maximumf>, %52, %cst_37 [1] : vector<8x8xf32> to vector<8xf32>
    %54 = vector.shape_cast %53 : vector<8xf32> to vector<8x1xf32>
    %55 = vector.broadcast %54 : vector<8x1xf32> to vector<8x8xf32>
    %56 = arith.subf %52, %55 : vector<8x8xf32>
    %57 = math.exp %56 : vector<8x8xf32>
    %cst_38 = arith.constant dense<0.000000e+00> : vector<8xf32>
    %58 = vector.multi_reduction <add>, %57, %cst_38 [1] : vector<8x8xf32> to vector<8xf32>
    %59 = vector.shape_cast %58 : vector<8xf32> to vector<8x1xf32>
    %60 = tpu.reciprocal %59 {approx = true} : vector<8x1xf32> -> vector<8x1xf32>
    %61 = vector.broadcast %60 : vector<8x1xf32> to vector<8x8xf32>
    %62 = arith.mulf %57, %61 : vector<8x8xf32>
    %cst_39 = arith.constant dense<0.000000e+00> : vector<8x16xf32>
    %63 = tpu.matmul %62, %49, %cst_39 {dimension_numbers = #tpu.dot_dimension_numbers<[1], [0], [0], [1], [0, 0, 1, 1], [], []>} : vector<8x8xf32>, vector<8x16xf32>, vector<8x16xf32> -> vector<8x16xf32>
    %c16_40 = arith.constant 16 : index
    %c0_41 = arith.constant 0 : index
    %64 = vector.load %arg4[%c16_40, %c0_41] : memref<64x64xf32, #tpu.memory_space<vmem>>, vector<16x64xf32>
    %cst_42 = arith.constant dense<0.000000e+00> : vector<8x64xf32>
    %65 = tpu.matmul %63, %64, %cst_42 {dimension_numbers = #tpu.dot_dimension_numbers<[1], [0], [0], [1], [0, 0, 1, 1], [], []>} : vector<8x16xf32>, vector<16x64xf32>, vector<8x64xf32> -> vector<8x64xf32>
    %66 = arith.addf %34, %65 : vector<8x64xf32>
    %c0_43 = arith.constant 0 : index
    %c32 = arith.constant 32 : index
    %67 = vector.load %arg2[%c0_43, %c32] : memref<64x192xf32, #tpu.memory_space<vmem>>, vector<64x16xf32>
    %cst_44 = arith.constant dense<0.000000e+00> : vector<8x16xf32>
    %68 = tpu.matmul %1, %67, %cst_44 {dimension_numbers = #tpu.dot_dimension_numbers<[1], [0], [0], [1], [0, 0, 1, 1], [], []>} : vector<8x64xf32>, vector<64x16xf32>, vector<8x16xf32> -> vector<8x16xf32>
    %c0_45 = arith.constant 0 : index
    %c32_46 = arith.constant 32 : index
    %69 = vector.load %arg3[%c0_45, %c32_46] : memref<1x192xf32, #tpu.memory_space<vmem>>, vector<1x16xf32>
    %70 = vector.broadcast %69 : vector<1x16xf32> to vector<8x16xf32>
    %71 = arith.addf %68, %70 : vector<8x16xf32>
    %c0_47 = arith.constant 0 : index
    %c96 = arith.constant 96 : index
    %72 = vector.load %arg2[%c0_47, %c96] : memref<64x192xf32, #tpu.memory_space<vmem>>, vector<64x16xf32>
    %cst_48 = arith.constant dense<0.000000e+00> : vector<8x16xf32>
    %73 = tpu.matmul %1, %72, %cst_48 {dimension_numbers = #tpu.dot_dimension_numbers<[1], [0], [0], [1], [0, 0, 1, 1], [], []>} : vector<8x64xf32>, vector<64x16xf32>, vector<8x16xf32> -> vector<8x16xf32>
    %c0_49 = arith.constant 0 : index
    %c96_50 = arith.constant 96 : index
    %74 = vector.load %arg3[%c0_49, %c96_50] : memref<1x192xf32, #tpu.memory_space<vmem>>, vector<1x16xf32>
    %75 = vector.broadcast %74 : vector<1x16xf32> to vector<8x16xf32>
    %76 = arith.addf %73, %75 : vector<8x16xf32>
    %c0_51 = arith.constant 0 : index
    %c160 = arith.constant 160 : index
    %77 = vector.load %arg2[%c0_51, %c160] : memref<64x192xf32, #tpu.memory_space<vmem>>, vector<64x16xf32>
    %cst_52 = arith.constant dense<0.000000e+00> : vector<8x16xf32>
    %78 = tpu.matmul %1, %77, %cst_52 {dimension_numbers = #tpu.dot_dimension_numbers<[1], [0], [0], [1], [0, 0, 1, 1], [], []>} : vector<8x64xf32>, vector<64x16xf32>, vector<8x16xf32> -> vector<8x16xf32>
    %c0_53 = arith.constant 0 : index
    %c160_54 = arith.constant 160 : index
    %79 = vector.load %arg3[%c0_53, %c160_54] : memref<1x192xf32, #tpu.memory_space<vmem>>, vector<1x16xf32>
    %80 = vector.broadcast %79 : vector<1x16xf32> to vector<8x16xf32>
    %81 = arith.addf %78, %80 : vector<8x16xf32>
    %cst_55 = arith.constant 2.500000e-01 : f32
    %82 = vector.broadcast %cst_55 : f32 to vector<8x16xf32>
    %83 = arith.mulf %71, %82 : vector<8x16xf32>
    %cst_56 = arith.constant dense<0.000000e+00> : vector<8x8xf32>
    %84 = tpu.matmul %83, %76, %cst_56 {dimension_numbers = #tpu.dot_dimension_numbers<[1], [1], [0], [0], [0, 0, 1, 0], [], []>} : vector<8x16xf32>, vector<8x16xf32>, vector<8x8xf32> -> vector<8x8xf32>
    %cst_57 = arith.constant dense<0xFF800000> : vector<8xf32>
    %85 = vector.multi_reduction <maximumf>, %84, %cst_57 [1] : vector<8x8xf32> to vector<8xf32>
    %86 = vector.shape_cast %85 : vector<8xf32> to vector<8x1xf32>
    %87 = vector.broadcast %86 : vector<8x1xf32> to vector<8x8xf32>
    %88 = arith.subf %84, %87 : vector<8x8xf32>
    %89 = math.exp %88 : vector<8x8xf32>
    %cst_58 = arith.constant dense<0.000000e+00> : vector<8xf32>
    %90 = vector.multi_reduction <add>, %89, %cst_58 [1] : vector<8x8xf32> to vector<8xf32>
    %91 = vector.shape_cast %90 : vector<8xf32> to vector<8x1xf32>
    %92 = tpu.reciprocal %91 {approx = true} : vector<8x1xf32> -> vector<8x1xf32>
    %93 = vector.broadcast %92 : vector<8x1xf32> to vector<8x8xf32>
    %94 = arith.mulf %89, %93 : vector<8x8xf32>
    %cst_59 = arith.constant dense<0.000000e+00> : vector<8x16xf32>
    %95 = tpu.matmul %94, %81, %cst_59 {dimension_numbers = #tpu.dot_dimension_numbers<[1], [0], [0], [1], [0, 0, 1, 1], [], []>} : vector<8x8xf32>, vector<8x16xf32>, vector<8x16xf32> -> vector<8x16xf32>
    %c32_60 = arith.constant 32 : index
    %c0_61 = arith.constant 0 : index
    %96 = vector.load %arg4[%c32_60, %c0_61] : memref<64x64xf32, #tpu.memory_space<vmem>>, vector<16x64xf32>
    %cst_62 = arith.constant dense<0.000000e+00> : vector<8x64xf32>
    %97 = tpu.matmul %95, %96, %cst_62 {dimension_numbers = #tpu.dot_dimension_numbers<[1], [0], [0], [1], [0, 0, 1, 1], [], []>} : vector<8x16xf32>, vector<16x64xf32>, vector<8x64xf32> -> vector<8x64xf32>
    %98 = arith.addf %66, %97 : vector<8x64xf32>
    %c0_63 = arith.constant 0 : index
    %c48 = arith.constant 48 : index
    %99 = vector.load %arg2[%c0_63, %c48] : memref<64x192xf32, #tpu.memory_space<vmem>>, vector<64x16xf32>
    %cst_64 = arith.constant dense<0.000000e+00> : vector<8x16xf32>
    %100 = tpu.matmul %1, %99, %cst_64 {dimension_numbers = #tpu.dot_dimension_numbers<[1], [0], [0], [1], [0, 0, 1, 1], [], []>} : vector<8x64xf32>, vector<64x16xf32>, vector<8x16xf32> -> vector<8x16xf32>
    %c0_65 = arith.constant 0 : index
    %c48_66 = arith.constant 48 : index
    %101 = vector.load %arg3[%c0_65, %c48_66] : memref<1x192xf32, #tpu.memory_space<vmem>>, vector<1x16xf32>
    %102 = vector.broadcast %101 : vector<1x16xf32> to vector<8x16xf32>
    %103 = arith.addf %100, %102 : vector<8x16xf32>
    %c0_67 = arith.constant 0 : index
    %c112 = arith.constant 112 : index
    %104 = vector.load %arg2[%c0_67, %c112] : memref<64x192xf32, #tpu.memory_space<vmem>>, vector<64x16xf32>
    %cst_68 = arith.constant dense<0.000000e+00> : vector<8x16xf32>
    %105 = tpu.matmul %1, %104, %cst_68 {dimension_numbers = #tpu.dot_dimension_numbers<[1], [0], [0], [1], [0, 0, 1, 1], [], []>} : vector<8x64xf32>, vector<64x16xf32>, vector<8x16xf32> -> vector<8x16xf32>
    %c0_69 = arith.constant 0 : index
    %c112_70 = arith.constant 112 : index
    %106 = vector.load %arg3[%c0_69, %c112_70] : memref<1x192xf32, #tpu.memory_space<vmem>>, vector<1x16xf32>
    %107 = vector.broadcast %106 : vector<1x16xf32> to vector<8x16xf32>
    %108 = arith.addf %105, %107 : vector<8x16xf32>
    %c0_71 = arith.constant 0 : index
    %c176 = arith.constant 176 : index
    %109 = vector.load %arg2[%c0_71, %c176] : memref<64x192xf32, #tpu.memory_space<vmem>>, vector<64x16xf32>
    %cst_72 = arith.constant dense<0.000000e+00> : vector<8x16xf32>
    %110 = tpu.matmul %1, %109, %cst_72 {dimension_numbers = #tpu.dot_dimension_numbers<[1], [0], [0], [1], [0, 0, 1, 1], [], []>} : vector<8x64xf32>, vector<64x16xf32>, vector<8x16xf32> -> vector<8x16xf32>
    %c0_73 = arith.constant 0 : index
    %c176_74 = arith.constant 176 : index
    %111 = vector.load %arg3[%c0_73, %c176_74] : memref<1x192xf32, #tpu.memory_space<vmem>>, vector<1x16xf32>
    %112 = vector.broadcast %111 : vector<1x16xf32> to vector<8x16xf32>
    %113 = arith.addf %110, %112 : vector<8x16xf32>
    %cst_75 = arith.constant 2.500000e-01 : f32
    %114 = vector.broadcast %cst_75 : f32 to vector<8x16xf32>
    %115 = arith.mulf %103, %114 : vector<8x16xf32>
    %cst_76 = arith.constant dense<0.000000e+00> : vector<8x8xf32>
    %116 = tpu.matmul %115, %108, %cst_76 {dimension_numbers = #tpu.dot_dimension_numbers<[1], [1], [0], [0], [0, 0, 1, 0], [], []>} : vector<8x16xf32>, vector<8x16xf32>, vector<8x8xf32> -> vector<8x8xf32>
    %cst_77 = arith.constant dense<0xFF800000> : vector<8xf32>
    %117 = vector.multi_reduction <maximumf>, %116, %cst_77 [1] : vector<8x8xf32> to vector<8xf32>
    %118 = vector.shape_cast %117 : vector<8xf32> to vector<8x1xf32>
    %119 = vector.broadcast %118 : vector<8x1xf32> to vector<8x8xf32>
    %120 = arith.subf %116, %119 : vector<8x8xf32>
    %121 = math.exp %120 : vector<8x8xf32>
    %cst_78 = arith.constant dense<0.000000e+00> : vector<8xf32>
    %122 = vector.multi_reduction <add>, %121, %cst_78 [1] : vector<8x8xf32> to vector<8xf32>
    %123 = vector.shape_cast %122 : vector<8xf32> to vector<8x1xf32>
    %124 = tpu.reciprocal %123 {approx = true} : vector<8x1xf32> -> vector<8x1xf32>
    %125 = vector.broadcast %124 : vector<8x1xf32> to vector<8x8xf32>
    %126 = arith.mulf %121, %125 : vector<8x8xf32>
    %cst_79 = arith.constant dense<0.000000e+00> : vector<8x16xf32>
    %127 = tpu.matmul %126, %113, %cst_79 {dimension_numbers = #tpu.dot_dimension_numbers<[1], [0], [0], [1], [0, 0, 1, 1], [], []>} : vector<8x8xf32>, vector<8x16xf32>, vector<8x16xf32> -> vector<8x16xf32>
    %c48_80 = arith.constant 48 : index
    %c0_81 = arith.constant 0 : index
    %128 = vector.load %arg4[%c48_80, %c0_81] : memref<64x64xf32, #tpu.memory_space<vmem>>, vector<16x64xf32>
    %cst_82 = arith.constant dense<0.000000e+00> : vector<8x64xf32>
    %129 = tpu.matmul %127, %128, %cst_82 {dimension_numbers = #tpu.dot_dimension_numbers<[1], [0], [0], [1], [0, 0, 1, 1], [], []>} : vector<8x16xf32>, vector<16x64xf32>, vector<8x64xf32> -> vector<8x64xf32>
    %130 = arith.addf %98, %129 : vector<8x64xf32>
    %c0_83 = arith.constant 0 : index
    %c0_84 = arith.constant 0 : index
    %131 = vector.load %arg5[%c0_83, %c0_84] : memref<1x64xf32, #tpu.memory_space<vmem>>, vector<1x64xf32>
    %132 = vector.broadcast %131 : vector<1x64xf32> to vector<8x64xf32>
    %133 = arith.addf %130, %132 : vector<8x64xf32>
    %134 = arith.addf %1, %133 : vector<8x64xf32>
    %cst_85 = arith.constant dense<0.000000e+00> : vector<8xf32>
    %135 = vector.multi_reduction <add>, %134, %cst_85 [1] : vector<8x64xf32> to vector<8xf32>
    %136 = vector.shape_cast %135 : vector<8xf32> to vector<8x1xf32>
    %cst_86 = arith.constant 6.400000e+01 : f32
    %137 = vector.broadcast %cst_86 : f32 to vector<8x1xf32>
    %138 = arith.divf %136, %137 : vector<8x1xf32>
    %139 = vector.broadcast %138 : vector<8x1xf32> to vector<8x64xf32>
    %140 = arith.subf %134, %139 : vector<8x64xf32>
    %141 = arith.mulf %140, %140 : vector<8x64xf32>
    %cst_87 = arith.constant dense<0.000000e+00> : vector<8xf32>
    %142 = vector.multi_reduction <add>, %141, %cst_87 [1] : vector<8x64xf32> to vector<8xf32>
    %143 = vector.shape_cast %142 : vector<8xf32> to vector<8x1xf32>
    %cst_88 = arith.constant 6.400000e+01 : f32
    %144 = vector.broadcast %cst_88 : f32 to vector<8x1xf32>
    %145 = arith.divf %143, %144 : vector<8x1xf32>
    %cst_89 = arith.constant 9.99999974E-6 : f32
    %146 = vector.broadcast %cst_89 : f32 to vector<8x1xf32>
    %147 = arith.addf %145, %146 : vector<8x1xf32>
    %148 = math.rsqrt %147 : vector<8x1xf32>
    %149 = vector.broadcast %148 : vector<8x1xf32> to vector<8x64xf32>
    %150 = arith.mulf %140, %149 : vector<8x64xf32>
    %c0_90 = arith.constant 0 : index
    %c0_91 = arith.constant 0 : index
    %151 = vector.load %arg6[%c0_90, %c0_91] : memref<1x64xf32, #tpu.memory_space<vmem>>, vector<1x64xf32>
    %152 = vector.broadcast %151 : vector<1x64xf32> to vector<8x64xf32>
    %153 = arith.mulf %150, %152 : vector<8x64xf32>
    %c0_92 = arith.constant 0 : index
    %c0_93 = arith.constant 0 : index
    %154 = vector.load %arg7[%c0_92, %c0_93] : memref<1x64xf32, #tpu.memory_space<vmem>>, vector<1x64xf32>
    %155 = vector.broadcast %154 : vector<1x64xf32> to vector<8x64xf32>
    %156 = arith.addf %153, %155 : vector<8x64xf32>
    %c0_94 = arith.constant 0 : index
    %c0_95 = arith.constant 0 : index
    %157 = vector.load %arg8[%c0_94, %c0_95] : memref<64x64xf32, #tpu.memory_space<vmem>>, vector<64x64xf32>
    %cst_96 = arith.constant dense<0.000000e+00> : vector<8x64xf32>
    %158 = tpu.matmul %156, %157, %cst_96 {dimension_numbers = #tpu.dot_dimension_numbers<[1], [0], [0], [1], [0, 0, 1, 1], [], []>} : vector<8x64xf32>, vector<64x64xf32>, vector<8x64xf32> -> vector<8x64xf32>
    %c0_97 = arith.constant 0 : index
    %c0_98 = arith.constant 0 : index
    %159 = vector.load %arg9[%c0_97, %c0_98] : memref<1x64xf32, #tpu.memory_space<vmem>>, vector<1x64xf32>
    %160 = vector.broadcast %159 : vector<1x64xf32> to vector<8x64xf32>
    %161 = arith.addf %158, %160 : vector<8x64xf32>
    %cst_99 = arith.constant 5.000000e-01 : f32
    %162 = vector.broadcast %cst_99 : f32 to vector<8x64xf32>
    %163 = arith.mulf %162, %161 : vector<8x64xf32>
    %cst_100 = arith.constant 0.707106769 : f32
    %164 = vector.broadcast %cst_100 : f32 to vector<8x64xf32>
    %165 = arith.mulf %161, %164 : vector<8x64xf32>
    %cst_101 = arith.constant 0.000000e+00 : f32
    %166 = vector.broadcast %cst_101 : f32 to vector<8x64xf32>
    %167 = arith.cmpf oge, %165, %166 : vector<8x64xf32>
    %cst_102 = arith.constant 1.000000e+00 : f32
    %cst_103 = arith.constant -1.000000e+00 : f32
    %168 = vector.broadcast %cst_102 : f32 to vector<8x64xf32>
    %169 = vector.broadcast %cst_103 : f32 to vector<8x64xf32>
    %170 = arith.select %167, %168, %169 : vector<8x64xi1>, vector<8x64xf32>
    %171 = math.absf %165 : vector<8x64xf32>
    %cst_104 = arith.constant 0.327591091 : f32
    %172 = vector.broadcast %cst_104 : f32 to vector<8x64xf32>
    %173 = arith.mulf %172, %171 : vector<8x64xf32>
    %cst_105 = arith.constant 1.000000e+00 : f32
    %174 = vector.broadcast %cst_105 : f32 to vector<8x64xf32>
    %175 = arith.addf %174, %173 : vector<8x64xf32>
    %cst_106 = arith.constant 1.000000e+00 : f32
    %176 = vector.broadcast %cst_106 : f32 to vector<8x64xf32>
    %177 = arith.divf %176, %175 : vector<8x64xf32>
    %cst_107 = arith.constant 1.06140542 : f32
    %178 = vector.broadcast %cst_107 : f32 to vector<8x64xf32>
    %179 = arith.mulf %178, %177 : vector<8x64xf32>
    %cst_108 = arith.constant -1.45315206 : f32
    %180 = vector.broadcast %cst_108 : f32 to vector<8x64xf32>
    %181 = arith.addf %179, %180 : vector<8x64xf32>
    %182 = arith.mulf %181, %177 : vector<8x64xf32>
    %cst_109 = arith.constant 1.42141378 : f32
    %183 = vector.broadcast %cst_109 : f32 to vector<8x64xf32>
    %184 = arith.addf %182, %183 : vector<8x64xf32>
    %185 = arith.mulf %184, %177 : vector<8x64xf32>
    %cst_110 = arith.constant -0.284496725 : f32
    %186 = vector.broadcast %cst_110 : f32 to vector<8x64xf32>
    %187 = arith.addf %185, %186 : vector<8x64xf32>
    %188 = arith.mulf %187, %177 : vector<8x64xf32>
    %cst_111 = arith.constant 0.254829586 : f32
    %189 = vector.broadcast %cst_111 : f32 to vector<8x64xf32>
    %190 = arith.addf %188, %189 : vector<8x64xf32>
    %191 = arith.mulf %190, %177 : vector<8x64xf32>
    %cst_112 = arith.constant 0.000000e+00 : f32
    %192 = vector.broadcast %cst_112 : f32 to vector<8x64xf32>
    %193 = arith.subf %192, %171 : vector<8x64xf32>
    %194 = arith.mulf %193, %171 : vector<8x64xf32>
    %195 = math.exp %194 : vector<8x64xf32>
    %196 = arith.mulf %191, %195 : vector<8x64xf32>
    %cst_113 = arith.constant 1.000000e+00 : f32
    %197 = vector.broadcast %cst_113 : f32 to vector<8x64xf32>
    %198 = arith.subf %197, %196 : vector<8x64xf32>
    %199 = arith.mulf %170, %198 : vector<8x64xf32>
    %cst_114 = arith.constant 1.000000e+00 : f32
    %200 = vector.broadcast %cst_114 : f32 to vector<8x64xf32>
    %201 = arith.addf %200, %199 : vector<8x64xf32>
    %202 = arith.mulf %163, %201 : vector<8x64xf32>
    %c0_115 = arith.constant 0 : index
    %c0_116 = arith.constant 0 : index
    %203 = vector.load %arg10[%c0_115, %c0_116] : memref<64x32xf32, #tpu.memory_space<vmem>>, vector<64x32xf32>
    %cst_117 = arith.constant dense<0.000000e+00> : vector<8x32xf32>
    %204 = tpu.matmul %202, %203, %cst_117 {dimension_numbers = #tpu.dot_dimension_numbers<[1], [0], [0], [1], [0, 0, 1, 1], [], []>} : vector<8x64xf32>, vector<64x32xf32>, vector<8x32xf32> -> vector<8x32xf32>
    %c0_118 = arith.constant 0 : index
    %c0_119 = arith.constant 0 : index
    %205 = vector.load %arg11[%c0_118, %c0_119] : memref<1x32xf32, #tpu.memory_space<vmem>>, vector<1x32xf32>
    %206 = vector.broadcast %205 : vector<1x32xf32> to vector<8x32xf32>
    %207 = arith.addf %204, %206 : vector<8x32xf32>
    %cst_120 = arith.constant 0.000000e+00 : f32
    %208 = vector.broadcast %cst_120 : f32 to vector<8x32xf32>
    %c0_121 = arith.constant 0 : index
    %c0_122 = arith.constant 0 : index
    %209 = vector.load %arg12[%c0_121, %c0_122] : memref<32x96xf32, #tpu.memory_space<vmem>>, vector<32x8xf32>
    %cst_123 = arith.constant dense<0.000000e+00> : vector<8x8xf32>
    %210 = tpu.matmul %207, %209, %cst_123 {dimension_numbers = #tpu.dot_dimension_numbers<[1], [0], [0], [1], [0, 0, 1, 1], [], []>} : vector<8x32xf32>, vector<32x8xf32>, vector<8x8xf32> -> vector<8x8xf32>
    %c0_124 = arith.constant 0 : index
    %c0_125 = arith.constant 0 : index
    %211 = vector.load %arg13[%c0_124, %c0_125] : memref<1x96xf32, #tpu.memory_space<vmem>>, vector<1x8xf32>
    %212 = vector.broadcast %211 : vector<1x8xf32> to vector<8x8xf32>
    %213 = arith.addf %210, %212 : vector<8x8xf32>
    %c0_126 = arith.constant 0 : index
    %c32_127 = arith.constant 32 : index
    %214 = vector.load %arg12[%c0_126, %c32_127] : memref<32x96xf32, #tpu.memory_space<vmem>>, vector<32x8xf32>
    %cst_128 = arith.constant dense<0.000000e+00> : vector<8x8xf32>
    %215 = tpu.matmul %207, %214, %cst_128 {dimension_numbers = #tpu.dot_dimension_numbers<[1], [0], [0], [1], [0, 0, 1, 1], [], []>} : vector<8x32xf32>, vector<32x8xf32>, vector<8x8xf32> -> vector<8x8xf32>
    %c0_129 = arith.constant 0 : index
    %c32_130 = arith.constant 32 : index
    %216 = vector.load %arg13[%c0_129, %c32_130] : memref<1x96xf32, #tpu.memory_space<vmem>>, vector<1x8xf32>
    %217 = vector.broadcast %216 : vector<1x8xf32> to vector<8x8xf32>
    %218 = arith.addf %215, %217 : vector<8x8xf32>
    %c0_131 = arith.constant 0 : index
    %c64_132 = arith.constant 64 : index
    %219 = vector.load %arg12[%c0_131, %c64_132] : memref<32x96xf32, #tpu.memory_space<vmem>>, vector<32x8xf32>
    %cst_133 = arith.constant dense<0.000000e+00> : vector<8x8xf32>
    %220 = tpu.matmul %207, %219, %cst_133 {dimension_numbers = #tpu.dot_dimension_numbers<[1], [0], [0], [1], [0, 0, 1, 1], [], []>} : vector<8x32xf32>, vector<32x8xf32>, vector<8x8xf32> -> vector<8x8xf32>
    %c0_134 = arith.constant 0 : index
    %c64_135 = arith.constant 64 : index
    %221 = vector.load %arg13[%c0_134, %c64_135] : memref<1x96xf32, #tpu.memory_space<vmem>>, vector<1x8xf32>
    %222 = vector.broadcast %221 : vector<1x8xf32> to vector<8x8xf32>
    %223 = arith.addf %220, %222 : vector<8x8xf32>
    %cst_136 = arith.constant 0.353553385 : f32
    %224 = vector.broadcast %cst_136 : f32 to vector<8x8xf32>
    %225 = arith.mulf %213, %224 : vector<8x8xf32>
    %cst_137 = arith.constant dense<0.000000e+00> : vector<8x8xf32>
    %226 = tpu.matmul %225, %218, %cst_137 {dimension_numbers = #tpu.dot_dimension_numbers<[1], [1], [0], [0], [0, 0, 1, 0], [], []>} : vector<8x8xf32>, vector<8x8xf32>, vector<8x8xf32> -> vector<8x8xf32>
    %cst_138 = arith.constant dense<0xFF800000> : vector<8xf32>
    %227 = vector.multi_reduction <maximumf>, %226, %cst_138 [1] : vector<8x8xf32> to vector<8xf32>
    %228 = vector.shape_cast %227 : vector<8xf32> to vector<8x1xf32>
    %229 = vector.broadcast %228 : vector<8x1xf32> to vector<8x8xf32>
    %230 = arith.subf %226, %229 : vector<8x8xf32>
    %231 = math.exp %230 : vector<8x8xf32>
    %cst_139 = arith.constant dense<0.000000e+00> : vector<8xf32>
    %232 = vector.multi_reduction <add>, %231, %cst_139 [1] : vector<8x8xf32> to vector<8xf32>
    %233 = vector.shape_cast %232 : vector<8xf32> to vector<8x1xf32>
    %234 = tpu.reciprocal %233 {approx = true} : vector<8x1xf32> -> vector<8x1xf32>
    %235 = vector.broadcast %234 : vector<8x1xf32> to vector<8x8xf32>
    %236 = arith.mulf %231, %235 : vector<8x8xf32>
    %cst_140 = arith.constant dense<0.000000e+00> : vector<8x8xf32>
    %237 = tpu.matmul %236, %223, %cst_140 {dimension_numbers = #tpu.dot_dimension_numbers<[1], [0], [0], [1], [0, 0, 1, 1], [], []>} : vector<8x8xf32>, vector<8x8xf32>, vector<8x8xf32> -> vector<8x8xf32>
    %c0_141 = arith.constant 0 : index
    %c0_142 = arith.constant 0 : index
    %238 = vector.load %arg14[%c0_141, %c0_142] : memref<32x32xf32, #tpu.memory_space<vmem>>, vector<8x32xf32>
    %cst_143 = arith.constant dense<0.000000e+00> : vector<8x32xf32>
    %239 = tpu.matmul %237, %238, %cst_143 {dimension_numbers = #tpu.dot_dimension_numbers<[1], [0], [0], [1], [0, 0, 1, 1], [], []>} : vector<8x8xf32>, vector<8x32xf32>, vector<8x32xf32> -> vector<8x32xf32>
    %240 = arith.addf %208, %239 : vector<8x32xf32>
    %c0_144 = arith.constant 0 : index
    %c8 = arith.constant 8 : index
    %241 = vector.load %arg12[%c0_144, %c8] : memref<32x96xf32, #tpu.memory_space<vmem>>, vector<32x8xf32>
    %cst_145 = arith.constant dense<0.000000e+00> : vector<8x8xf32>
    %242 = tpu.matmul %207, %241, %cst_145 {dimension_numbers = #tpu.dot_dimension_numbers<[1], [0], [0], [1], [0, 0, 1, 1], [], []>} : vector<8x32xf32>, vector<32x8xf32>, vector<8x8xf32> -> vector<8x8xf32>
    %c0_146 = arith.constant 0 : index
    %c8_147 = arith.constant 8 : index
    %243 = vector.load %arg13[%c0_146, %c8_147] : memref<1x96xf32, #tpu.memory_space<vmem>>, vector<1x8xf32>
    %244 = vector.broadcast %243 : vector<1x8xf32> to vector<8x8xf32>
    %245 = arith.addf %242, %244 : vector<8x8xf32>
    %c0_148 = arith.constant 0 : index
    %c40 = arith.constant 40 : index
    %246 = vector.load %arg12[%c0_148, %c40] : memref<32x96xf32, #tpu.memory_space<vmem>>, vector<32x8xf32>
    %cst_149 = arith.constant dense<0.000000e+00> : vector<8x8xf32>
    %247 = tpu.matmul %207, %246, %cst_149 {dimension_numbers = #tpu.dot_dimension_numbers<[1], [0], [0], [1], [0, 0, 1, 1], [], []>} : vector<8x32xf32>, vector<32x8xf32>, vector<8x8xf32> -> vector<8x8xf32>
    %c0_150 = arith.constant 0 : index
    %c40_151 = arith.constant 40 : index
    %248 = vector.load %arg13[%c0_150, %c40_151] : memref<1x96xf32, #tpu.memory_space<vmem>>, vector<1x8xf32>
    %249 = vector.broadcast %248 : vector<1x8xf32> to vector<8x8xf32>
    %250 = arith.addf %247, %249 : vector<8x8xf32>
    %c0_152 = arith.constant 0 : index
    %c72 = arith.constant 72 : index
    %251 = vector.load %arg12[%c0_152, %c72] : memref<32x96xf32, #tpu.memory_space<vmem>>, vector<32x8xf32>
    %cst_153 = arith.constant dense<0.000000e+00> : vector<8x8xf32>
    %252 = tpu.matmul %207, %251, %cst_153 {dimension_numbers = #tpu.dot_dimension_numbers<[1], [0], [0], [1], [0, 0, 1, 1], [], []>} : vector<8x32xf32>, vector<32x8xf32>, vector<8x8xf32> -> vector<8x8xf32>
    %c0_154 = arith.constant 0 : index
    %c72_155 = arith.constant 72 : index
    %253 = vector.load %arg13[%c0_154, %c72_155] : memref<1x96xf32, #tpu.memory_space<vmem>>, vector<1x8xf32>
    %254 = vector.broadcast %253 : vector<1x8xf32> to vector<8x8xf32>
    %255 = arith.addf %252, %254 : vector<8x8xf32>
    %cst_156 = arith.constant 0.353553385 : f32
    %256 = vector.broadcast %cst_156 : f32 to vector<8x8xf32>
    %257 = arith.mulf %245, %256 : vector<8x8xf32>
    %cst_157 = arith.constant dense<0.000000e+00> : vector<8x8xf32>
    %258 = tpu.matmul %257, %250, %cst_157 {dimension_numbers = #tpu.dot_dimension_numbers<[1], [1], [0], [0], [0, 0, 1, 0], [], []>} : vector<8x8xf32>, vector<8x8xf32>, vector<8x8xf32> -> vector<8x8xf32>
    %cst_158 = arith.constant dense<0xFF800000> : vector<8xf32>
    %259 = vector.multi_reduction <maximumf>, %258, %cst_158 [1] : vector<8x8xf32> to vector<8xf32>
    %260 = vector.shape_cast %259 : vector<8xf32> to vector<8x1xf32>
    %261 = vector.broadcast %260 : vector<8x1xf32> to vector<8x8xf32>
    %262 = arith.subf %258, %261 : vector<8x8xf32>
    %263 = math.exp %262 : vector<8x8xf32>
    %cst_159 = arith.constant dense<0.000000e+00> : vector<8xf32>
    %264 = vector.multi_reduction <add>, %263, %cst_159 [1] : vector<8x8xf32> to vector<8xf32>
    %265 = vector.shape_cast %264 : vector<8xf32> to vector<8x1xf32>
    %266 = tpu.reciprocal %265 {approx = true} : vector<8x1xf32> -> vector<8x1xf32>
    %267 = vector.broadcast %266 : vector<8x1xf32> to vector<8x8xf32>
    %268 = arith.mulf %263, %267 : vector<8x8xf32>
    %cst_160 = arith.constant dense<0.000000e+00> : vector<8x8xf32>
    %269 = tpu.matmul %268, %255, %cst_160 {dimension_numbers = #tpu.dot_dimension_numbers<[1], [0], [0], [1], [0, 0, 1, 1], [], []>} : vector<8x8xf32>, vector<8x8xf32>, vector<8x8xf32> -> vector<8x8xf32>
    %c8_161 = arith.constant 8 : index
    %c0_162 = arith.constant 0 : index
    %270 = vector.load %arg14[%c8_161, %c0_162] : memref<32x32xf32, #tpu.memory_space<vmem>>, vector<8x32xf32>
    %cst_163 = arith.constant dense<0.000000e+00> : vector<8x32xf32>
    %271 = tpu.matmul %269, %270, %cst_163 {dimension_numbers = #tpu.dot_dimension_numbers<[1], [0], [0], [1], [0, 0, 1, 1], [], []>} : vector<8x8xf32>, vector<8x32xf32>, vector<8x32xf32> -> vector<8x32xf32>
    %272 = arith.addf %240, %271 : vector<8x32xf32>
    %c0_164 = arith.constant 0 : index
    %c16_165 = arith.constant 16 : index
    %273 = vector.load %arg12[%c0_164, %c16_165] : memref<32x96xf32, #tpu.memory_space<vmem>>, vector<32x8xf32>
    %cst_166 = arith.constant dense<0.000000e+00> : vector<8x8xf32>
    %274 = tpu.matmul %207, %273, %cst_166 {dimension_numbers = #tpu.dot_dimension_numbers<[1], [0], [0], [1], [0, 0, 1, 1], [], []>} : vector<8x32xf32>, vector<32x8xf32>, vector<8x8xf32> -> vector<8x8xf32>
    %c0_167 = arith.constant 0 : index
    %c16_168 = arith.constant 16 : index
    %275 = vector.load %arg13[%c0_167, %c16_168] : memref<1x96xf32, #tpu.memory_space<vmem>>, vector<1x8xf32>
    %276 = vector.broadcast %275 : vector<1x8xf32> to vector<8x8xf32>
    %277 = arith.addf %274, %276 : vector<8x8xf32>
    %c0_169 = arith.constant 0 : index
    %c48_170 = arith.constant 48 : index
    %278 = vector.load %arg12[%c0_169, %c48_170] : memref<32x96xf32, #tpu.memory_space<vmem>>, vector<32x8xf32>
    %cst_171 = arith.constant dense<0.000000e+00> : vector<8x8xf32>
    %279 = tpu.matmul %207, %278, %cst_171 {dimension_numbers = #tpu.dot_dimension_numbers<[1], [0], [0], [1], [0, 0, 1, 1], [], []>} : vector<8x32xf32>, vector<32x8xf32>, vector<8x8xf32> -> vector<8x8xf32>
    %c0_172 = arith.constant 0 : index
    %c48_173 = arith.constant 48 : index
    %280 = vector.load %arg13[%c0_172, %c48_173] : memref<1x96xf32, #tpu.memory_space<vmem>>, vector<1x8xf32>
    %281 = vector.broadcast %280 : vector<1x8xf32> to vector<8x8xf32>
    %282 = arith.addf %279, %281 : vector<8x8xf32>
    %c0_174 = arith.constant 0 : index
    %c80_175 = arith.constant 80 : index
    %283 = vector.load %arg12[%c0_174, %c80_175] : memref<32x96xf32, #tpu.memory_space<vmem>>, vector<32x8xf32>
    %cst_176 = arith.constant dense<0.000000e+00> : vector<8x8xf32>
    %284 = tpu.matmul %207, %283, %cst_176 {dimension_numbers = #tpu.dot_dimension_numbers<[1], [0], [0], [1], [0, 0, 1, 1], [], []>} : vector<8x32xf32>, vector<32x8xf32>, vector<8x8xf32> -> vector<8x8xf32>
    %c0_177 = arith.constant 0 : index
    %c80_178 = arith.constant 80 : index
    %285 = vector.load %arg13[%c0_177, %c80_178] : memref<1x96xf32, #tpu.memory_space<vmem>>, vector<1x8xf32>
    %286 = vector.broadcast %285 : vector<1x8xf32> to vector<8x8xf32>
    %287 = arith.addf %284, %286 : vector<8x8xf32>
    %cst_179 = arith.constant 0.353553385 : f32
    %288 = vector.broadcast %cst_179 : f32 to vector<8x8xf32>
    %289 = arith.mulf %277, %288 : vector<8x8xf32>
    %cst_180 = arith.constant dense<0.000000e+00> : vector<8x8xf32>
    %290 = tpu.matmul %289, %282, %cst_180 {dimension_numbers = #tpu.dot_dimension_numbers<[1], [1], [0], [0], [0, 0, 1, 0], [], []>} : vector<8x8xf32>, vector<8x8xf32>, vector<8x8xf32> -> vector<8x8xf32>
    %cst_181 = arith.constant dense<0xFF800000> : vector<8xf32>
    %291 = vector.multi_reduction <maximumf>, %290, %cst_181 [1] : vector<8x8xf32> to vector<8xf32>
    %292 = vector.shape_cast %291 : vector<8xf32> to vector<8x1xf32>
    %293 = vector.broadcast %292 : vector<8x1xf32> to vector<8x8xf32>
    %294 = arith.subf %290, %293 : vector<8x8xf32>
    %295 = math.exp %294 : vector<8x8xf32>
    %cst_182 = arith.constant dense<0.000000e+00> : vector<8xf32>
    %296 = vector.multi_reduction <add>, %295, %cst_182 [1] : vector<8x8xf32> to vector<8xf32>
    %297 = vector.shape_cast %296 : vector<8xf32> to vector<8x1xf32>
    %298 = tpu.reciprocal %297 {approx = true} : vector<8x1xf32> -> vector<8x1xf32>
    %299 = vector.broadcast %298 : vector<8x1xf32> to vector<8x8xf32>
    %300 = arith.mulf %295, %299 : vector<8x8xf32>
    %cst_183 = arith.constant dense<0.000000e+00> : vector<8x8xf32>
    %301 = tpu.matmul %300, %287, %cst_183 {dimension_numbers = #tpu.dot_dimension_numbers<[1], [0], [0], [1], [0, 0, 1, 1], [], []>} : vector<8x8xf32>, vector<8x8xf32>, vector<8x8xf32> -> vector<8x8xf32>
    %c16_184 = arith.constant 16 : index
    %c0_185 = arith.constant 0 : index
    %302 = vector.load %arg14[%c16_184, %c0_185] : memref<32x32xf32, #tpu.memory_space<vmem>>, vector<8x32xf32>
    %cst_186 = arith.constant dense<0.000000e+00> : vector<8x32xf32>
    %303 = tpu.matmul %301, %302, %cst_186 {dimension_numbers = #tpu.dot_dimension_numbers<[1], [0], [0], [1], [0, 0, 1, 1], [], []>} : vector<8x8xf32>, vector<8x32xf32>, vector<8x32xf32> -> vector<8x32xf32>
    %304 = arith.addf %272, %303 : vector<8x32xf32>
    %c0_187 = arith.constant 0 : index
    %c24 = arith.constant 24 : index
    %305 = vector.load %arg12[%c0_187, %c24] : memref<32x96xf32, #tpu.memory_space<vmem>>, vector<32x8xf32>
    %cst_188 = arith.constant dense<0.000000e+00> : vector<8x8xf32>
    %306 = tpu.matmul %207, %305, %cst_188 {dimension_numbers = #tpu.dot_dimension_numbers<[1], [0], [0], [1], [0, 0, 1, 1], [], []>} : vector<8x32xf32>, vector<32x8xf32>, vector<8x8xf32> -> vector<8x8xf32>
    %c0_189 = arith.constant 0 : index
    %c24_190 = arith.constant 24 : index
    %307 = vector.load %arg13[%c0_189, %c24_190] : memref<1x96xf32, #tpu.memory_space<vmem>>, vector<1x8xf32>
    %308 = vector.broadcast %307 : vector<1x8xf32> to vector<8x8xf32>
    %309 = arith.addf %306, %308 : vector<8x8xf32>
    %c0_191 = arith.constant 0 : index
    %c56 = arith.constant 56 : index
    %310 = vector.load %arg12[%c0_191, %c56] : memref<32x96xf32, #tpu.memory_space<vmem>>, vector<32x8xf32>
    %cst_192 = arith.constant dense<0.000000e+00> : vector<8x8xf32>
    %311 = tpu.matmul %207, %310, %cst_192 {dimension_numbers = #tpu.dot_dimension_numbers<[1], [0], [0], [1], [0, 0, 1, 1], [], []>} : vector<8x32xf32>, vector<32x8xf32>, vector<8x8xf32> -> vector<8x8xf32>
    %c0_193 = arith.constant 0 : index
    %c56_194 = arith.constant 56 : index
    %312 = vector.load %arg13[%c0_193, %c56_194] : memref<1x96xf32, #tpu.memory_space<vmem>>, vector<1x8xf32>
    %313 = vector.broadcast %312 : vector<1x8xf32> to vector<8x8xf32>
    %314 = arith.addf %311, %313 : vector<8x8xf32>
    %c0_195 = arith.constant 0 : index
    %c88 = arith.constant 88 : index
    %315 = vector.load %arg12[%c0_195, %c88] : memref<32x96xf32, #tpu.memory_space<vmem>>, vector<32x8xf32>
    %cst_196 = arith.constant dense<0.000000e+00> : vector<8x8xf32>
    %316 = tpu.matmul %207, %315, %cst_196 {dimension_numbers = #tpu.dot_dimension_numbers<[1], [0], [0], [1], [0, 0, 1, 1], [], []>} : vector<8x32xf32>, vector<32x8xf32>, vector<8x8xf32> -> vector<8x8xf32>
    %c0_197 = arith.constant 0 : index
    %c88_198 = arith.constant 88 : index
    %317 = vector.load %arg13[%c0_197, %c88_198] : memref<1x96xf32, #tpu.memory_space<vmem>>, vector<1x8xf32>
    %318 = vector.broadcast %317 : vector<1x8xf32> to vector<8x8xf32>
    %319 = arith.addf %316, %318 : vector<8x8xf32>
    %cst_199 = arith.constant 0.353553385 : f32
    %320 = vector.broadcast %cst_199 : f32 to vector<8x8xf32>
    %321 = arith.mulf %309, %320 : vector<8x8xf32>
    %cst_200 = arith.constant dense<0.000000e+00> : vector<8x8xf32>
    %322 = tpu.matmul %321, %314, %cst_200 {dimension_numbers = #tpu.dot_dimension_numbers<[1], [1], [0], [0], [0, 0, 1, 0], [], []>} : vector<8x8xf32>, vector<8x8xf32>, vector<8x8xf32> -> vector<8x8xf32>
    %cst_201 = arith.constant dense<0xFF800000> : vector<8xf32>
    %323 = vector.multi_reduction <maximumf>, %322, %cst_201 [1] : vector<8x8xf32> to vector<8xf32>
    %324 = vector.shape_cast %323 : vector<8xf32> to vector<8x1xf32>
    %325 = vector.broadcast %324 : vector<8x1xf32> to vector<8x8xf32>
    %326 = arith.subf %322, %325 : vector<8x8xf32>
    %327 = math.exp %326 : vector<8x8xf32>
    %cst_202 = arith.constant dense<0.000000e+00> : vector<8xf32>
    %328 = vector.multi_reduction <add>, %327, %cst_202 [1] : vector<8x8xf32> to vector<8xf32>
    %329 = vector.shape_cast %328 : vector<8xf32> to vector<8x1xf32>
    %330 = tpu.reciprocal %329 {approx = true} : vector<8x1xf32> -> vector<8x1xf32>
    %331 = vector.broadcast %330 : vector<8x1xf32> to vector<8x8xf32>
    %332 = arith.mulf %327, %331 : vector<8x8xf32>
    %cst_203 = arith.constant dense<0.000000e+00> : vector<8x8xf32>
    %333 = tpu.matmul %332, %319, %cst_203 {dimension_numbers = #tpu.dot_dimension_numbers<[1], [0], [0], [1], [0, 0, 1, 1], [], []>} : vector<8x8xf32>, vector<8x8xf32>, vector<8x8xf32> -> vector<8x8xf32>
    %c24_204 = arith.constant 24 : index
    %c0_205 = arith.constant 0 : index
    %334 = vector.load %arg14[%c24_204, %c0_205] : memref<32x32xf32, #tpu.memory_space<vmem>>, vector<8x32xf32>
    %cst_206 = arith.constant dense<0.000000e+00> : vector<8x32xf32>
    %335 = tpu.matmul %333, %334, %cst_206 {dimension_numbers = #tpu.dot_dimension_numbers<[1], [0], [0], [1], [0, 0, 1, 1], [], []>} : vector<8x8xf32>, vector<8x32xf32>, vector<8x32xf32> -> vector<8x32xf32>
    %336 = arith.addf %304, %335 : vector<8x32xf32>
    %c0_207 = arith.constant 0 : index
    %c0_208 = arith.constant 0 : index
    %337 = vector.load %arg15[%c0_207, %c0_208] : memref<1x32xf32, #tpu.memory_space<vmem>>, vector<1x32xf32>
    %338 = vector.broadcast %337 : vector<1x32xf32> to vector<8x32xf32>
    %339 = arith.addf %336, %338 : vector<8x32xf32>
    %340 = arith.addf %207, %339 : vector<8x32xf32>
    %cst_209 = arith.constant dense<0.000000e+00> : vector<8xf32>
    %341 = vector.multi_reduction <add>, %340, %cst_209 [1] : vector<8x32xf32> to vector<8xf32>
    %342 = vector.shape_cast %341 : vector<8xf32> to vector<8x1xf32>
    %cst_210 = arith.constant 3.200000e+01 : f32
    %343 = vector.broadcast %cst_210 : f32 to vector<8x1xf32>
    %344 = arith.divf %342, %343 : vector<8x1xf32>
    %345 = vector.broadcast %344 : vector<8x1xf32> to vector<8x32xf32>
    %346 = arith.subf %340, %345 : vector<8x32xf32>
    %347 = arith.mulf %346, %346 : vector<8x32xf32>
    %cst_211 = arith.constant dense<0.000000e+00> : vector<8xf32>
    %348 = vector.multi_reduction <add>, %347, %cst_211 [1] : vector<8x32xf32> to vector<8xf32>
    %349 = vector.shape_cast %348 : vector<8xf32> to vector<8x1xf32>
    %cst_212 = arith.constant 3.200000e+01 : f32
    %350 = vector.broadcast %cst_212 : f32 to vector<8x1xf32>
    %351 = arith.divf %349, %350 : vector<8x1xf32>
    %cst_213 = arith.constant 9.99999974E-6 : f32
    %352 = vector.broadcast %cst_213 : f32 to vector<8x1xf32>
    %353 = arith.addf %351, %352 : vector<8x1xf32>
    %354 = math.rsqrt %353 : vector<8x1xf32>
    %355 = vector.broadcast %354 : vector<8x1xf32> to vector<8x32xf32>
    %356 = arith.mulf %346, %355 : vector<8x32xf32>
    %c0_214 = arith.constant 0 : index
    %c0_215 = arith.constant 0 : index
    %357 = vector.load %arg16[%c0_214, %c0_215] : memref<1x32xf32, #tpu.memory_space<vmem>>, vector<1x32xf32>
    %358 = vector.broadcast %357 : vector<1x32xf32> to vector<8x32xf32>
    %359 = arith.mulf %356, %358 : vector<8x32xf32>
    %c0_216 = arith.constant 0 : index
    %c0_217 = arith.constant 0 : index
    %360 = vector.load %arg17[%c0_216, %c0_217] : memref<1x32xf32, #tpu.memory_space<vmem>>, vector<1x32xf32>
    %361 = vector.broadcast %360 : vector<1x32xf32> to vector<8x32xf32>
    %362 = arith.addf %359, %361 : vector<8x32xf32>
    %c0_218 = arith.constant 0 : index
    %c0_219 = arith.constant 0 : index
    %363 = vector.load %arg18[%c0_218, %c0_219] : memref<32x64xf32, #tpu.memory_space<vmem>>, vector<32x64xf32>
    %cst_220 = arith.constant dense<0.000000e+00> : vector<8x64xf32>
    %364 = tpu.matmul %362, %363, %cst_220 {dimension_numbers = #tpu.dot_dimension_numbers<[1], [0], [0], [1], [0, 0, 1, 1], [], []>} : vector<8x32xf32>, vector<32x64xf32>, vector<8x64xf32> -> vector<8x64xf32>
    %c0_221 = arith.constant 0 : index
    %c0_222 = arith.constant 0 : index
    %365 = vector.load %arg19[%c0_221, %c0_222] : memref<1x64xf32, #tpu.memory_space<vmem>>, vector<1x64xf32>
    %366 = vector.broadcast %365 : vector<1x64xf32> to vector<8x64xf32>
    %367 = arith.addf %364, %366 : vector<8x64xf32>
    %cst_223 = arith.constant 5.000000e-01 : f32
    %368 = vector.broadcast %cst_223 : f32 to vector<8x64xf32>
    %369 = arith.mulf %368, %367 : vector<8x64xf32>
    %cst_224 = arith.constant 0.707106769 : f32
    %370 = vector.broadcast %cst_224 : f32 to vector<8x64xf32>
    %371 = arith.mulf %367, %370 : vector<8x64xf32>
    %cst_225 = arith.constant 0.000000e+00 : f32
    %372 = vector.broadcast %cst_225 : f32 to vector<8x64xf32>
    %373 = arith.cmpf oge, %371, %372 : vector<8x64xf32>
    %cst_226 = arith.constant 1.000000e+00 : f32
    %cst_227 = arith.constant -1.000000e+00 : f32
    %374 = vector.broadcast %cst_226 : f32 to vector<8x64xf32>
    %375 = vector.broadcast %cst_227 : f32 to vector<8x64xf32>
    %376 = arith.select %373, %374, %375 : vector<8x64xi1>, vector<8x64xf32>
    %377 = math.absf %371 : vector<8x64xf32>
    %cst_228 = arith.constant 0.327591091 : f32
    %378 = vector.broadcast %cst_228 : f32 to vector<8x64xf32>
    %379 = arith.mulf %378, %377 : vector<8x64xf32>
    %cst_229 = arith.constant 1.000000e+00 : f32
    %380 = vector.broadcast %cst_229 : f32 to vector<8x64xf32>
    %381 = arith.addf %380, %379 : vector<8x64xf32>
    %cst_230 = arith.constant 1.000000e+00 : f32
    %382 = vector.broadcast %cst_230 : f32 to vector<8x64xf32>
    %383 = arith.divf %382, %381 : vector<8x64xf32>
    %cst_231 = arith.constant 1.06140542 : f32
    %384 = vector.broadcast %cst_231 : f32 to vector<8x64xf32>
    %385 = arith.mulf %384, %383 : vector<8x64xf32>
    %cst_232 = arith.constant -1.45315206 : f32
    %386 = vector.broadcast %cst_232 : f32 to vector<8x64xf32>
    %387 = arith.addf %385, %386 : vector<8x64xf32>
    %388 = arith.mulf %387, %383 : vector<8x64xf32>
    %cst_233 = arith.constant 1.42141378 : f32
    %389 = vector.broadcast %cst_233 : f32 to vector<8x64xf32>
    %390 = arith.addf %388, %389 : vector<8x64xf32>
    %391 = arith.mulf %390, %383 : vector<8x64xf32>
    %cst_234 = arith.constant -0.284496725 : f32
    %392 = vector.broadcast %cst_234 : f32 to vector<8x64xf32>
    %393 = arith.addf %391, %392 : vector<8x64xf32>
    %394 = arith.mulf %393, %383 : vector<8x64xf32>
    %cst_235 = arith.constant 0.254829586 : f32
    %395 = vector.broadcast %cst_235 : f32 to vector<8x64xf32>
    %396 = arith.addf %394, %395 : vector<8x64xf32>
    %397 = arith.mulf %396, %383 : vector<8x64xf32>
    %cst_236 = arith.constant 0.000000e+00 : f32
    %398 = vector.broadcast %cst_236 : f32 to vector<8x64xf32>
    %399 = arith.subf %398, %377 : vector<8x64xf32>
    %400 = arith.mulf %399, %377 : vector<8x64xf32>
    %401 = math.exp %400 : vector<8x64xf32>
    %402 = arith.mulf %397, %401 : vector<8x64xf32>
    %cst_237 = arith.constant 1.000000e+00 : f32
    %403 = vector.broadcast %cst_237 : f32 to vector<8x64xf32>
    %404 = arith.subf %403, %402 : vector<8x64xf32>
    %405 = arith.mulf %376, %404 : vector<8x64xf32>
    %cst_238 = arith.constant 1.000000e+00 : f32
    %406 = vector.broadcast %cst_238 : f32 to vector<8x64xf32>
    %407 = arith.addf %406, %405 : vector<8x64xf32>
    %408 = arith.mulf %369, %407 : vector<8x64xf32>
    %c0_239 = arith.constant 0 : index
    %c0_240 = arith.constant 0 : index
    %409 = vector.load %arg20[%c0_239, %c0_240] : memref<64x16xf32, #tpu.memory_space<vmem>>, vector<64x16xf32>
    %cst_241 = arith.constant dense<0.000000e+00> : vector<8x16xf32>
    %410 = tpu.matmul %408, %409, %cst_241 {dimension_numbers = #tpu.dot_dimension_numbers<[1], [0], [0], [1], [0, 0, 1, 1], [], []>} : vector<8x64xf32>, vector<64x16xf32>, vector<8x16xf32> -> vector<8x16xf32>
    %c0_242 = arith.constant 0 : index
    %c0_243 = arith.constant 0 : index
    %411 = vector.load %arg21[%c0_242, %c0_243] : memref<1x16xf32, #tpu.memory_space<vmem>>, vector<1x16xf32>
    %412 = vector.broadcast %411 : vector<1x16xf32> to vector<8x16xf32>
    %413 = arith.addf %410, %412 : vector<8x16xf32>
    %cst_244 = arith.constant 0.000000e+00 : f32
    %414 = vector.broadcast %cst_244 : f32 to vector<8x16xf32>
    %c0_245 = arith.constant 0 : index
    %c0_246 = arith.constant 0 : index
    %415 = vector.load %arg22[%c0_245, %c0_246] : memref<16x48xf32, #tpu.memory_space<vmem>>, vector<16x4xf32>
    %cst_247 = arith.constant dense<0.000000e+00> : vector<8x4xf32>
    %416 = tpu.matmul %413, %415, %cst_247 {dimension_numbers = #tpu.dot_dimension_numbers<[1], [0], [0], [1], [0, 0, 1, 1], [], []>} : vector<8x16xf32>, vector<16x4xf32>, vector<8x4xf32> -> vector<8x4xf32>
    %c0_248 = arith.constant 0 : index
    %c0_249 = arith.constant 0 : index
    %417 = vector.load %arg23[%c0_248, %c0_249] : memref<1x48xf32, #tpu.memory_space<vmem>>, vector<1x4xf32>
    %418 = vector.broadcast %417 : vector<1x4xf32> to vector<8x4xf32>
    %419 = arith.addf %416, %418 : vector<8x4xf32>
    %c0_250 = arith.constant 0 : index
    %c16_251 = arith.constant 16 : index
    %420 = vector.load %arg22[%c0_250, %c16_251] : memref<16x48xf32, #tpu.memory_space<vmem>>, vector<16x4xf32>
    %cst_252 = arith.constant dense<0.000000e+00> : vector<8x4xf32>
    %421 = tpu.matmul %413, %420, %cst_252 {dimension_numbers = #tpu.dot_dimension_numbers<[1], [0], [0], [1], [0, 0, 1, 1], [], []>} : vector<8x16xf32>, vector<16x4xf32>, vector<8x4xf32> -> vector<8x4xf32>
    %c0_253 = arith.constant 0 : index
    %c16_254 = arith.constant 16 : index
    %422 = vector.load %arg23[%c0_253, %c16_254] : memref<1x48xf32, #tpu.memory_space<vmem>>, vector<1x4xf32>
    %423 = vector.broadcast %422 : vector<1x4xf32> to vector<8x4xf32>
    %424 = arith.addf %421, %423 : vector<8x4xf32>
    %c0_255 = arith.constant 0 : index
    %c32_256 = arith.constant 32 : index
    %425 = vector.load %arg22[%c0_255, %c32_256] : memref<16x48xf32, #tpu.memory_space<vmem>>, vector<16x4xf32>
    %cst_257 = arith.constant dense<0.000000e+00> : vector<8x4xf32>
    %426 = tpu.matmul %413, %425, %cst_257 {dimension_numbers = #tpu.dot_dimension_numbers<[1], [0], [0], [1], [0, 0, 1, 1], [], []>} : vector<8x16xf32>, vector<16x4xf32>, vector<8x4xf32> -> vector<8x4xf32>
    %c0_258 = arith.constant 0 : index
    %c32_259 = arith.constant 32 : index
    %427 = vector.load %arg23[%c0_258, %c32_259] : memref<1x48xf32, #tpu.memory_space<vmem>>, vector<1x4xf32>
    %428 = vector.broadcast %427 : vector<1x4xf32> to vector<8x4xf32>
    %429 = arith.addf %426, %428 : vector<8x4xf32>
    %cst_260 = arith.constant 5.000000e-01 : f32
    %430 = vector.broadcast %cst_260 : f32 to vector<8x4xf32>
    %431 = arith.mulf %419, %430 : vector<8x4xf32>
    %cst_261 = arith.constant dense<0.000000e+00> : vector<8x8xf32>
    %432 = tpu.matmul %431, %424, %cst_261 {dimension_numbers = #tpu.dot_dimension_numbers<[1], [1], [0], [0], [0, 0, 1, 0], [], []>} : vector<8x4xf32>, vector<8x4xf32>, vector<8x8xf32> -> vector<8x8xf32>
    %cst_262 = arith.constant dense<0xFF800000> : vector<8xf32>
    %433 = vector.multi_reduction <maximumf>, %432, %cst_262 [1] : vector<8x8xf32> to vector<8xf32>
    %434 = vector.shape_cast %433 : vector<8xf32> to vector<8x1xf32>
    %435 = vector.broadcast %434 : vector<8x1xf32> to vector<8x8xf32>
    %436 = arith.subf %432, %435 : vector<8x8xf32>
    %437 = math.exp %436 : vector<8x8xf32>
    %cst_263 = arith.constant dense<0.000000e+00> : vector<8xf32>
    %438 = vector.multi_reduction <add>, %437, %cst_263 [1] : vector<8x8xf32> to vector<8xf32>
    %439 = vector.shape_cast %438 : vector<8xf32> to vector<8x1xf32>
    %440 = tpu.reciprocal %439 {approx = true} : vector<8x1xf32> -> vector<8x1xf32>
    %441 = vector.broadcast %440 : vector<8x1xf32> to vector<8x8xf32>
    %442 = arith.mulf %437, %441 : vector<8x8xf32>
    %cst_264 = arith.constant dense<0.000000e+00> : vector<8x4xf32>
    %443 = tpu.matmul %442, %429, %cst_264 {dimension_numbers = #tpu.dot_dimension_numbers<[1], [0], [0], [1], [0, 0, 1, 1], [], []>} : vector<8x8xf32>, vector<8x4xf32>, vector<8x4xf32> -> vector<8x4xf32>
    %c0_265 = arith.constant 0 : index
    %c0_266 = arith.constant 0 : index
    %444 = vector.load %arg24[%c0_265, %c0_266] : memref<16x16xf32, #tpu.memory_space<vmem>>, vector<4x16xf32>
    %cst_267 = arith.constant dense<0.000000e+00> : vector<8x16xf32>
    %445 = tpu.matmul %443, %444, %cst_267 {dimension_numbers = #tpu.dot_dimension_numbers<[1], [0], [0], [1], [0, 0, 1, 1], [], []>} : vector<8x4xf32>, vector<4x16xf32>, vector<8x16xf32> -> vector<8x16xf32>
    %446 = arith.addf %414, %445 : vector<8x16xf32>
    %c0_268 = arith.constant 0 : index
    %c4 = arith.constant 4 : index
    %447 = vector.load %arg22[%c0_268, %c4] : memref<16x48xf32, #tpu.memory_space<vmem>>, vector<16x4xf32>
    %cst_269 = arith.constant dense<0.000000e+00> : vector<8x4xf32>
    %448 = tpu.matmul %413, %447, %cst_269 {dimension_numbers = #tpu.dot_dimension_numbers<[1], [0], [0], [1], [0, 0, 1, 1], [], []>} : vector<8x16xf32>, vector<16x4xf32>, vector<8x4xf32> -> vector<8x4xf32>
    %c0_270 = arith.constant 0 : index
    %c4_271 = arith.constant 4 : index
    %449 = vector.load %arg23[%c0_270, %c4_271] : memref<1x48xf32, #tpu.memory_space<vmem>>, vector<1x4xf32>
    %450 = vector.broadcast %449 : vector<1x4xf32> to vector<8x4xf32>
    %451 = arith.addf %448, %450 : vector<8x4xf32>
    %c0_272 = arith.constant 0 : index
    %c20 = arith.constant 20 : index
    %452 = vector.load %arg22[%c0_272, %c20] : memref<16x48xf32, #tpu.memory_space<vmem>>, vector<16x4xf32>
    %cst_273 = arith.constant dense<0.000000e+00> : vector<8x4xf32>
    %453 = tpu.matmul %413, %452, %cst_273 {dimension_numbers = #tpu.dot_dimension_numbers<[1], [0], [0], [1], [0, 0, 1, 1], [], []>} : vector<8x16xf32>, vector<16x4xf32>, vector<8x4xf32> -> vector<8x4xf32>
    %c0_274 = arith.constant 0 : index
    %c20_275 = arith.constant 20 : index
    %454 = vector.load %arg23[%c0_274, %c20_275] : memref<1x48xf32, #tpu.memory_space<vmem>>, vector<1x4xf32>
    %455 = vector.broadcast %454 : vector<1x4xf32> to vector<8x4xf32>
    %456 = arith.addf %453, %455 : vector<8x4xf32>
    %c0_276 = arith.constant 0 : index
    %c36 = arith.constant 36 : index
    %457 = vector.load %arg22[%c0_276, %c36] : memref<16x48xf32, #tpu.memory_space<vmem>>, vector<16x4xf32>
    %cst_277 = arith.constant dense<0.000000e+00> : vector<8x4xf32>
    %458 = tpu.matmul %413, %457, %cst_277 {dimension_numbers = #tpu.dot_dimension_numbers<[1], [0], [0], [1], [0, 0, 1, 1], [], []>} : vector<8x16xf32>, vector<16x4xf32>, vector<8x4xf32> -> vector<8x4xf32>
    %c0_278 = arith.constant 0 : index
    %c36_279 = arith.constant 36 : index
    %459 = vector.load %arg23[%c0_278, %c36_279] : memref<1x48xf32, #tpu.memory_space<vmem>>, vector<1x4xf32>
    %460 = vector.broadcast %459 : vector<1x4xf32> to vector<8x4xf32>
    %461 = arith.addf %458, %460 : vector<8x4xf32>
    %cst_280 = arith.constant 5.000000e-01 : f32
    %462 = vector.broadcast %cst_280 : f32 to vector<8x4xf32>
    %463 = arith.mulf %451, %462 : vector<8x4xf32>
    %cst_281 = arith.constant dense<0.000000e+00> : vector<8x8xf32>
    %464 = tpu.matmul %463, %456, %cst_281 {dimension_numbers = #tpu.dot_dimension_numbers<[1], [1], [0], [0], [0, 0, 1, 0], [], []>} : vector<8x4xf32>, vector<8x4xf32>, vector<8x8xf32> -> vector<8x8xf32>
    %cst_282 = arith.constant dense<0xFF800000> : vector<8xf32>
    %465 = vector.multi_reduction <maximumf>, %464, %cst_282 [1] : vector<8x8xf32> to vector<8xf32>
    %466 = vector.shape_cast %465 : vector<8xf32> to vector<8x1xf32>
    %467 = vector.broadcast %466 : vector<8x1xf32> to vector<8x8xf32>
    %468 = arith.subf %464, %467 : vector<8x8xf32>
    %469 = math.exp %468 : vector<8x8xf32>
    %cst_283 = arith.constant dense<0.000000e+00> : vector<8xf32>
    %470 = vector.multi_reduction <add>, %469, %cst_283 [1] : vector<8x8xf32> to vector<8xf32>
    %471 = vector.shape_cast %470 : vector<8xf32> to vector<8x1xf32>
    %472 = tpu.reciprocal %471 {approx = true} : vector<8x1xf32> -> vector<8x1xf32>
    %473 = vector.broadcast %472 : vector<8x1xf32> to vector<8x8xf32>
    %474 = arith.mulf %469, %473 : vector<8x8xf32>
    %cst_284 = arith.constant dense<0.000000e+00> : vector<8x4xf32>
    %475 = tpu.matmul %474, %461, %cst_284 {dimension_numbers = #tpu.dot_dimension_numbers<[1], [0], [0], [1], [0, 0, 1, 1], [], []>} : vector<8x8xf32>, vector<8x4xf32>, vector<8x4xf32> -> vector<8x4xf32>
    %c4_285 = arith.constant 4 : index
    %c0_286 = arith.constant 0 : index
    %476 = vector.load %arg24[%c4_285, %c0_286] : memref<16x16xf32, #tpu.memory_space<vmem>>, vector<4x16xf32>
    %cst_287 = arith.constant dense<0.000000e+00> : vector<8x16xf32>
    %477 = tpu.matmul %475, %476, %cst_287 {dimension_numbers = #tpu.dot_dimension_numbers<[1], [0], [0], [1], [0, 0, 1, 1], [], []>} : vector<8x4xf32>, vector<4x16xf32>, vector<8x16xf32> -> vector<8x16xf32>
    %478 = arith.addf %446, %477 : vector<8x16xf32>
    %c0_288 = arith.constant 0 : index
    %c8_289 = arith.constant 8 : index
    %479 = vector.load %arg22[%c0_288, %c8_289] : memref<16x48xf32, #tpu.memory_space<vmem>>, vector<16x4xf32>
    %cst_290 = arith.constant dense<0.000000e+00> : vector<8x4xf32>
    %480 = tpu.matmul %413, %479, %cst_290 {dimension_numbers = #tpu.dot_dimension_numbers<[1], [0], [0], [1], [0, 0, 1, 1], [], []>} : vector<8x16xf32>, vector<16x4xf32>, vector<8x4xf32> -> vector<8x4xf32>
    %c0_291 = arith.constant 0 : index
    %c8_292 = arith.constant 8 : index
    %481 = vector.load %arg23[%c0_291, %c8_292] : memref<1x48xf32, #tpu.memory_space<vmem>>, vector<1x4xf32>
    %482 = vector.broadcast %481 : vector<1x4xf32> to vector<8x4xf32>
    %483 = arith.addf %480, %482 : vector<8x4xf32>
    %c0_293 = arith.constant 0 : index
    %c24_294 = arith.constant 24 : index
    %484 = vector.load %arg22[%c0_293, %c24_294] : memref<16x48xf32, #tpu.memory_space<vmem>>, vector<16x4xf32>
    %cst_295 = arith.constant dense<0.000000e+00> : vector<8x4xf32>
    %485 = tpu.matmul %413, %484, %cst_295 {dimension_numbers = #tpu.dot_dimension_numbers<[1], [0], [0], [1], [0, 0, 1, 1], [], []>} : vector<8x16xf32>, vector<16x4xf32>, vector<8x4xf32> -> vector<8x4xf32>
    %c0_296 = arith.constant 0 : index
    %c24_297 = arith.constant 24 : index
    %486 = vector.load %arg23[%c0_296, %c24_297] : memref<1x48xf32, #tpu.memory_space<vmem>>, vector<1x4xf32>
    %487 = vector.broadcast %486 : vector<1x4xf32> to vector<8x4xf32>
    %488 = arith.addf %485, %487 : vector<8x4xf32>
    %c0_298 = arith.constant 0 : index
    %c40_299 = arith.constant 40 : index
    %489 = vector.load %arg22[%c0_298, %c40_299] : memref<16x48xf32, #tpu.memory_space<vmem>>, vector<16x4xf32>
    %cst_300 = arith.constant dense<0.000000e+00> : vector<8x4xf32>
    %490 = tpu.matmul %413, %489, %cst_300 {dimension_numbers = #tpu.dot_dimension_numbers<[1], [0], [0], [1], [0, 0, 1, 1], [], []>} : vector<8x16xf32>, vector<16x4xf32>, vector<8x4xf32> -> vector<8x4xf32>
    %c0_301 = arith.constant 0 : index
    %c40_302 = arith.constant 40 : index
    %491 = vector.load %arg23[%c0_301, %c40_302] : memref<1x48xf32, #tpu.memory_space<vmem>>, vector<1x4xf32>
    %492 = vector.broadcast %491 : vector<1x4xf32> to vector<8x4xf32>
    %493 = arith.addf %490, %492 : vector<8x4xf32>
    %cst_303 = arith.constant 5.000000e-01 : f32
    %494 = vector.broadcast %cst_303 : f32 to vector<8x4xf32>
    %495 = arith.mulf %483, %494 : vector<8x4xf32>
    %cst_304 = arith.constant dense<0.000000e+00> : vector<8x8xf32>
    %496 = tpu.matmul %495, %488, %cst_304 {dimension_numbers = #tpu.dot_dimension_numbers<[1], [1], [0], [0], [0, 0, 1, 0], [], []>} : vector<8x4xf32>, vector<8x4xf32>, vector<8x8xf32> -> vector<8x8xf32>
    %cst_305 = arith.constant dense<0xFF800000> : vector<8xf32>
    %497 = vector.multi_reduction <maximumf>, %496, %cst_305 [1] : vector<8x8xf32> to vector<8xf32>
    %498 = vector.shape_cast %497 : vector<8xf32> to vector<8x1xf32>
    %499 = vector.broadcast %498 : vector<8x1xf32> to vector<8x8xf32>
    %500 = arith.subf %496, %499 : vector<8x8xf32>
    %501 = math.exp %500 : vector<8x8xf32>
    %cst_306 = arith.constant dense<0.000000e+00> : vector<8xf32>
    %502 = vector.multi_reduction <add>, %501, %cst_306 [1] : vector<8x8xf32> to vector<8xf32>
    %503 = vector.shape_cast %502 : vector<8xf32> to vector<8x1xf32>
    %504 = tpu.reciprocal %503 {approx = true} : vector<8x1xf32> -> vector<8x1xf32>
    %505 = vector.broadcast %504 : vector<8x1xf32> to vector<8x8xf32>
    %506 = arith.mulf %501, %505 : vector<8x8xf32>
    %cst_307 = arith.constant dense<0.000000e+00> : vector<8x4xf32>
    %507 = tpu.matmul %506, %493, %cst_307 {dimension_numbers = #tpu.dot_dimension_numbers<[1], [0], [0], [1], [0, 0, 1, 1], [], []>} : vector<8x8xf32>, vector<8x4xf32>, vector<8x4xf32> -> vector<8x4xf32>
    %c8_308 = arith.constant 8 : index
    %c0_309 = arith.constant 0 : index
    %508 = vector.load %arg24[%c8_308, %c0_309] : memref<16x16xf32, #tpu.memory_space<vmem>>, vector<4x16xf32>
    %cst_310 = arith.constant dense<0.000000e+00> : vector<8x16xf32>
    %509 = tpu.matmul %507, %508, %cst_310 {dimension_numbers = #tpu.dot_dimension_numbers<[1], [0], [0], [1], [0, 0, 1, 1], [], []>} : vector<8x4xf32>, vector<4x16xf32>, vector<8x16xf32> -> vector<8x16xf32>
    %510 = arith.addf %478, %509 : vector<8x16xf32>
    %c0_311 = arith.constant 0 : index
    %c12 = arith.constant 12 : index
    %511 = vector.load %arg22[%c0_311, %c12] : memref<16x48xf32, #tpu.memory_space<vmem>>, vector<16x4xf32>
    %cst_312 = arith.constant dense<0.000000e+00> : vector<8x4xf32>
    %512 = tpu.matmul %413, %511, %cst_312 {dimension_numbers = #tpu.dot_dimension_numbers<[1], [0], [0], [1], [0, 0, 1, 1], [], []>} : vector<8x16xf32>, vector<16x4xf32>, vector<8x4xf32> -> vector<8x4xf32>
    %c0_313 = arith.constant 0 : index
    %c12_314 = arith.constant 12 : index
    %513 = vector.load %arg23[%c0_313, %c12_314] : memref<1x48xf32, #tpu.memory_space<vmem>>, vector<1x4xf32>
    %514 = vector.broadcast %513 : vector<1x4xf32> to vector<8x4xf32>
    %515 = arith.addf %512, %514 : vector<8x4xf32>
    %c0_315 = arith.constant 0 : index
    %c28 = arith.constant 28 : index
    %516 = vector.load %arg22[%c0_315, %c28] : memref<16x48xf32, #tpu.memory_space<vmem>>, vector<16x4xf32>
    %cst_316 = arith.constant dense<0.000000e+00> : vector<8x4xf32>
    %517 = tpu.matmul %413, %516, %cst_316 {dimension_numbers = #tpu.dot_dimension_numbers<[1], [0], [0], [1], [0, 0, 1, 1], [], []>} : vector<8x16xf32>, vector<16x4xf32>, vector<8x4xf32> -> vector<8x4xf32>
    %c0_317 = arith.constant 0 : index
    %c28_318 = arith.constant 28 : index
    %518 = vector.load %arg23[%c0_317, %c28_318] : memref<1x48xf32, #tpu.memory_space<vmem>>, vector<1x4xf32>
    %519 = vector.broadcast %518 : vector<1x4xf32> to vector<8x4xf32>
    %520 = arith.addf %517, %519 : vector<8x4xf32>
    %c0_319 = arith.constant 0 : index
    %c44 = arith.constant 44 : index
    %521 = vector.load %arg22[%c0_319, %c44] : memref<16x48xf32, #tpu.memory_space<vmem>>, vector<16x4xf32>
    %cst_320 = arith.constant dense<0.000000e+00> : vector<8x4xf32>
    %522 = tpu.matmul %413, %521, %cst_320 {dimension_numbers = #tpu.dot_dimension_numbers<[1], [0], [0], [1], [0, 0, 1, 1], [], []>} : vector<8x16xf32>, vector<16x4xf32>, vector<8x4xf32> -> vector<8x4xf32>
    %c0_321 = arith.constant 0 : index
    %c44_322 = arith.constant 44 : index
    %523 = vector.load %arg23[%c0_321, %c44_322] : memref<1x48xf32, #tpu.memory_space<vmem>>, vector<1x4xf32>
    %524 = vector.broadcast %523 : vector<1x4xf32> to vector<8x4xf32>
    %525 = arith.addf %522, %524 : vector<8x4xf32>
    %cst_323 = arith.constant 5.000000e-01 : f32
    %526 = vector.broadcast %cst_323 : f32 to vector<8x4xf32>
    %527 = arith.mulf %515, %526 : vector<8x4xf32>
    %cst_324 = arith.constant dense<0.000000e+00> : vector<8x8xf32>
    %528 = tpu.matmul %527, %520, %cst_324 {dimension_numbers = #tpu.dot_dimension_numbers<[1], [1], [0], [0], [0, 0, 1, 0], [], []>} : vector<8x4xf32>, vector<8x4xf32>, vector<8x8xf32> -> vector<8x8xf32>
    %cst_325 = arith.constant dense<0xFF800000> : vector<8xf32>
    %529 = vector.multi_reduction <maximumf>, %528, %cst_325 [1] : vector<8x8xf32> to vector<8xf32>
    %530 = vector.shape_cast %529 : vector<8xf32> to vector<8x1xf32>
    %531 = vector.broadcast %530 : vector<8x1xf32> to vector<8x8xf32>
    %532 = arith.subf %528, %531 : vector<8x8xf32>
    %533 = math.exp %532 : vector<8x8xf32>
    %cst_326 = arith.constant dense<0.000000e+00> : vector<8xf32>
    %534 = vector.multi_reduction <add>, %533, %cst_326 [1] : vector<8x8xf32> to vector<8xf32>
    %535 = vector.shape_cast %534 : vector<8xf32> to vector<8x1xf32>
    %536 = tpu.reciprocal %535 {approx = true} : vector<8x1xf32> -> vector<8x1xf32>
    %537 = vector.broadcast %536 : vector<8x1xf32> to vector<8x8xf32>
    %538 = arith.mulf %533, %537 : vector<8x8xf32>
    %cst_327 = arith.constant dense<0.000000e+00> : vector<8x4xf32>
    %539 = tpu.matmul %538, %525, %cst_327 {dimension_numbers = #tpu.dot_dimension_numbers<[1], [0], [0], [1], [0, 0, 1, 1], [], []>} : vector<8x8xf32>, vector<8x4xf32>, vector<8x4xf32> -> vector<8x4xf32>
    %c12_328 = arith.constant 12 : index
    %c0_329 = arith.constant 0 : index
    %540 = vector.load %arg24[%c12_328, %c0_329] : memref<16x16xf32, #tpu.memory_space<vmem>>, vector<4x16xf32>
    %cst_330 = arith.constant dense<0.000000e+00> : vector<8x16xf32>
    %541 = tpu.matmul %539, %540, %cst_330 {dimension_numbers = #tpu.dot_dimension_numbers<[1], [0], [0], [1], [0, 0, 1, 1], [], []>} : vector<8x4xf32>, vector<4x16xf32>, vector<8x16xf32> -> vector<8x16xf32>
    %542 = arith.addf %510, %541 : vector<8x16xf32>
    %c0_331 = arith.constant 0 : index
    %c0_332 = arith.constant 0 : index
    %543 = vector.load %arg25[%c0_331, %c0_332] : memref<1x16xf32, #tpu.memory_space<vmem>>, vector<1x16xf32>
    %544 = vector.broadcast %543 : vector<1x16xf32> to vector<8x16xf32>
    %545 = arith.addf %542, %544 : vector<8x16xf32>
    %546 = arith.addf %413, %545 : vector<8x16xf32>
    %cst_333 = arith.constant dense<0.000000e+00> : vector<8xf32>
    %547 = vector.multi_reduction <add>, %546, %cst_333 [1] : vector<8x16xf32> to vector<8xf32>
    %548 = vector.shape_cast %547 : vector<8xf32> to vector<8x1xf32>
    %cst_334 = arith.constant 1.600000e+01 : f32
    %549 = vector.broadcast %cst_334 : f32 to vector<8x1xf32>
    %550 = arith.divf %548, %549 : vector<8x1xf32>
    %551 = vector.broadcast %550 : vector<8x1xf32> to vector<8x16xf32>
    %552 = arith.subf %546, %551 : vector<8x16xf32>
    %553 = arith.mulf %552, %552 : vector<8x16xf32>
    %cst_335 = arith.constant dense<0.000000e+00> : vector<8xf32>
    %554 = vector.multi_reduction <add>, %553, %cst_335 [1] : vector<8x16xf32> to vector<8xf32>
    %555 = vector.shape_cast %554 : vector<8xf32> to vector<8x1xf32>
    %cst_336 = arith.constant 1.600000e+01 : f32
    %556 = vector.broadcast %cst_336 : f32 to vector<8x1xf32>
    %557 = arith.divf %555, %556 : vector<8x1xf32>
    %cst_337 = arith.constant 9.99999974E-6 : f32
    %558 = vector.broadcast %cst_337 : f32 to vector<8x1xf32>
    %559 = arith.addf %557, %558 : vector<8x1xf32>
    %560 = math.rsqrt %559 : vector<8x1xf32>
    %561 = vector.broadcast %560 : vector<8x1xf32> to vector<8x16xf32>
    %562 = arith.mulf %552, %561 : vector<8x16xf32>
    %c0_338 = arith.constant 0 : index
    %c0_339 = arith.constant 0 : index
    %563 = vector.load %arg26[%c0_338, %c0_339] : memref<1x16xf32, #tpu.memory_space<vmem>>, vector<1x16xf32>
    %564 = vector.broadcast %563 : vector<1x16xf32> to vector<8x16xf32>
    %565 = arith.mulf %562, %564 : vector<8x16xf32>
    %c0_340 = arith.constant 0 : index
    %c0_341 = arith.constant 0 : index
    %566 = vector.load %arg27[%c0_340, %c0_341] : memref<1x16xf32, #tpu.memory_space<vmem>>, vector<1x16xf32>
    %567 = vector.broadcast %566 : vector<1x16xf32> to vector<8x16xf32>
    %568 = arith.addf %565, %567 : vector<8x16xf32>
    %c0_342 = arith.constant 0 : index
    %c0_343 = arith.constant 0 : index
    %569 = vector.load %arg28[%c0_342, %c0_343] : memref<16x64xf32, #tpu.memory_space<vmem>>, vector<16x64xf32>
    %cst_344 = arith.constant dense<0.000000e+00> : vector<8x64xf32>
    %570 = tpu.matmul %568, %569, %cst_344 {dimension_numbers = #tpu.dot_dimension_numbers<[1], [0], [0], [1], [0, 0, 1, 1], [], []>} : vector<8x16xf32>, vector<16x64xf32>, vector<8x64xf32> -> vector<8x64xf32>
    %c0_345 = arith.constant 0 : index
    %c0_346 = arith.constant 0 : index
    %571 = vector.load %arg29[%c0_345, %c0_346] : memref<1x64xf32, #tpu.memory_space<vmem>>, vector<1x64xf32>
    %572 = vector.broadcast %571 : vector<1x64xf32> to vector<8x64xf32>
    %573 = arith.addf %570, %572 : vector<8x64xf32>
    %cst_347 = arith.constant 5.000000e-01 : f32
    %574 = vector.broadcast %cst_347 : f32 to vector<8x64xf32>
    %575 = arith.mulf %574, %573 : vector<8x64xf32>
    %cst_348 = arith.constant 0.707106769 : f32
    %576 = vector.broadcast %cst_348 : f32 to vector<8x64xf32>
    %577 = arith.mulf %573, %576 : vector<8x64xf32>
    %cst_349 = arith.constant 0.000000e+00 : f32
    %578 = vector.broadcast %cst_349 : f32 to vector<8x64xf32>
    %579 = arith.cmpf oge, %577, %578 : vector<8x64xf32>
    %cst_350 = arith.constant 1.000000e+00 : f32
    %cst_351 = arith.constant -1.000000e+00 : f32
    %580 = vector.broadcast %cst_350 : f32 to vector<8x64xf32>
    %581 = vector.broadcast %cst_351 : f32 to vector<8x64xf32>
    %582 = arith.select %579, %580, %581 : vector<8x64xi1>, vector<8x64xf32>
    %583 = math.absf %577 : vector<8x64xf32>
    %cst_352 = arith.constant 0.327591091 : f32
    %584 = vector.broadcast %cst_352 : f32 to vector<8x64xf32>
    %585 = arith.mulf %584, %583 : vector<8x64xf32>
    %cst_353 = arith.constant 1.000000e+00 : f32
    %586 = vector.broadcast %cst_353 : f32 to vector<8x64xf32>
    %587 = arith.addf %586, %585 : vector<8x64xf32>
    %cst_354 = arith.constant 1.000000e+00 : f32
    %588 = vector.broadcast %cst_354 : f32 to vector<8x64xf32>
    %589 = arith.divf %588, %587 : vector<8x64xf32>
    %cst_355 = arith.constant 1.06140542 : f32
    %590 = vector.broadcast %cst_355 : f32 to vector<8x64xf32>
    %591 = arith.mulf %590, %589 : vector<8x64xf32>
    %cst_356 = arith.constant -1.45315206 : f32
    %592 = vector.broadcast %cst_356 : f32 to vector<8x64xf32>
    %593 = arith.addf %591, %592 : vector<8x64xf32>
    %594 = arith.mulf %593, %589 : vector<8x64xf32>
    %cst_357 = arith.constant 1.42141378 : f32
    %595 = vector.broadcast %cst_357 : f32 to vector<8x64xf32>
    %596 = arith.addf %594, %595 : vector<8x64xf32>
    %597 = arith.mulf %596, %589 : vector<8x64xf32>
    %cst_358 = arith.constant -0.284496725 : f32
    %598 = vector.broadcast %cst_358 : f32 to vector<8x64xf32>
    %599 = arith.addf %597, %598 : vector<8x64xf32>
    %600 = arith.mulf %599, %589 : vector<8x64xf32>
    %cst_359 = arith.constant 0.254829586 : f32
    %601 = vector.broadcast %cst_359 : f32 to vector<8x64xf32>
    %602 = arith.addf %600, %601 : vector<8x64xf32>
    %603 = arith.mulf %602, %589 : vector<8x64xf32>
    %cst_360 = arith.constant 0.000000e+00 : f32
    %604 = vector.broadcast %cst_360 : f32 to vector<8x64xf32>
    %605 = arith.subf %604, %583 : vector<8x64xf32>
    %606 = arith.mulf %605, %583 : vector<8x64xf32>
    %607 = math.exp %606 : vector<8x64xf32>
    %608 = arith.mulf %603, %607 : vector<8x64xf32>
    %cst_361 = arith.constant 1.000000e+00 : f32
    %609 = vector.broadcast %cst_361 : f32 to vector<8x64xf32>
    %610 = arith.subf %609, %608 : vector<8x64xf32>
    %611 = arith.mulf %582, %610 : vector<8x64xf32>
    %cst_362 = arith.constant 1.000000e+00 : f32
    %612 = vector.broadcast %cst_362 : f32 to vector<8x64xf32>
    %613 = arith.addf %612, %611 : vector<8x64xf32>
    %614 = arith.mulf %575, %613 : vector<8x64xf32>
    %c0_363 = arith.constant 0 : index
    %c0_364 = arith.constant 0 : index
    %615 = vector.load %arg30[%c0_363, %c0_364] : memref<64x16xf32, #tpu.memory_space<vmem>>, vector<64x16xf32>
    %cst_365 = arith.constant dense<0.000000e+00> : vector<8x16xf32>
    %616 = tpu.matmul %614, %615, %cst_365 {dimension_numbers = #tpu.dot_dimension_numbers<[1], [0], [0], [1], [0, 0, 1, 1], [], []>} : vector<8x64xf32>, vector<64x16xf32>, vector<8x16xf32> -> vector<8x16xf32>
    %c0_366 = arith.constant 0 : index
    %c0_367 = arith.constant 0 : index
    %617 = vector.load %arg31[%c0_366, %c0_367] : memref<1x16xf32, #tpu.memory_space<vmem>>, vector<1x16xf32>
    %618 = vector.broadcast %617 : vector<1x16xf32> to vector<8x16xf32>
    %619 = arith.addf %616, %618 : vector<8x16xf32>
    %c0_368 = arith.constant 0 : index
    %c0_369 = arith.constant 0 : index
    %c0_370 = arith.constant 0 : index
    %620 = vector.load %arg32[%c0_368, %c0_369, %c0_370] : memref<1x8x16xf32, #tpu.memory_space<vmem>>, vector<1x8x16xf32>
    %621 = vector.shape_cast %620 : vector<1x8x16xf32> to vector<8x16xf32>
    %622 = vector.shape_cast %619 : vector<8x16xf32> to vector<1x8x16xf32>
    tpu.vector_store %arg32[%c0_368, %c0_369, %c0_370], %622 {strides = array<i32>} : memref<1x8x16xf32, #tpu.memory_space<vmem>>, vector<1x8x16xf32>,
    return
  }
  func.func @transform_0(%arg0: i32) -> (i32, i32, i32) {
    %c0_i32 = arith.constant 0 : i32
    %c0_i32_0 = arith.constant 0 : i32
    %c0_i32_1 = arith.constant 0 : i32
    return %arg0, %c0_i32, %c0_i32_0 : i32, i32, i32
  }
  func.func @transform_1(%arg0: i32) -> (i32, i32) {
    %c0_i32 = arith.constant 0 : i32
    %c0_i32_0 = arith.constant 0 : i32
    %c0_i32_1 = arith.constant 0 : i32
    return %c0_i32, %c0_i32_0 : i32, i32
  }
  func.func @transform_2(%arg0: i32) -> (i32, i32) {
    %c0_i32 = arith.constant 0 : i32
    %c0_i32_0 = arith.constant 0 : i32
    %c0_i32_1 = arith.constant 0 : i32
    return %c0_i32, %c0_i32_0 : i32, i32
  }
  func.func @transform_3(%arg0: i32) -> (i32, i32) {
    %c0_i32 = arith.constant 0 : i32
    %c0_i32_0 = arith.constant 0 : i32
    %c0_i32_1 = arith.constant 0 : i32
    return %c0_i32, %c0_i32_0 : i32, i32
  }
  func.func @transform_4(%arg0: i32) -> (i32, i32) {
    %c0_i32 = arith.constant 0 : i32
    %c0_i32_0 = arith.constant 0 : i32
    %c0_i32_1 = arith.constant 0 : i32
    return %c0_i32, %c0_i32_0 : i32, i32
  }
  func.func @transform_5(%arg0: i32) -> (i32, i32) {
    %c0_i32 = arith.constant 0 : i32
    %c0_i32_0 = arith.constant 0 : i32
    %c0_i32_1 = arith.constant 0 : i32
    return %c0_i32, %c0_i32_0 : i32, i32
  }
  func.func @transform_6(%arg0: i32) -> (i32, i32) {
    %c0_i32 = arith.constant 0 : i32
    %c0_i32_0 = arith.constant 0 : i32
    %c0_i32_1 = arith.constant 0 : i32
    return %c0_i32, %c0_i32_0 : i32, i32
  }
  func.func @transform_7(%arg0: i32) -> (i32, i32) {
    %c0_i32 = arith.constant 0 : i32
    %c0_i32_0 = arith.constant 0 : i32
    %c0_i32_1 = arith.constant 0 : i32
    return %c0_i32, %c0_i32_0 : i32, i32
  }
  func.func @transform_8(%arg0: i32) -> (i32, i32) {
    %c0_i32 = arith.constant 0 : i32
    %c0_i32_0 = arith.constant 0 : i32
    %c0_i32_1 = arith.constant 0 : i32
    return %c0_i32, %c0_i32_0 : i32, i32
  }
  func.func @transform_9(%arg0: i32) -> (i32, i32) {
    %c0_i32 = arith.constant 0 : i32
    %c0_i32_0 = arith.constant 0 : i32
    %c0_i32_1 = arith.constant 0 : i32
    return %c0_i32, %c0_i32_0 : i32, i32
  }
  func.func @transform_10(%arg0: i32) -> (i32, i32) {
    %c0_i32 = arith.constant 0 : i32
    %c0_i32_0 = arith.constant 0 : i32
    %c0_i32_1 = arith.constant 0 : i32
    return %c0_i32, %c0_i32_0 : i32, i32
  }
  func.func @transform_11(%arg0: i32) -> (i32, i32) {
    %c0_i32 = arith.constant 0 : i32
    %c0_i32_0 = arith.constant 0 : i32
    %c0_i32_1 = arith.constant 0 : i32
    return %c0_i32, %c0_i32_0 : i32, i32
  }
  func.func @transform_12(%arg0: i32) -> (i32, i32) {
    %c0_i32 = arith.constant 0 : i32
    %c0_i32_0 = arith.constant 0 : i32
    %c0_i32_1 = arith.constant 0 : i32
    return %c0_i32, %c0_i32_0 : i32, i32
  }
  func.func @transform_13(%arg0: i32) -> (i32, i32) {
    %c0_i32 = arith.constant 0 : i32
    %c0_i32_0 = arith.constant 0 : i32
    %c0_i32_1 = arith.constant 0 : i32
    return %c0_i32, %c0_i32_0 : i32, i32
  }
  func.func @transform_14(%arg0: i32) -> (i32, i32) {
    %c0_i32 = arith.constant 0 : i32
    %c0_i32_0 = arith.constant 0 : i32
    %c0_i32_1 = arith.constant 0 : i32
    return %c0_i32, %c0_i32_0 : i32, i32
  }
  func.func @transform_15(%arg0: i32) -> (i32, i32) {
    %c0_i32 = arith.constant 0 : i32
    %c0_i32_0 = arith.constant 0 : i32
    %c0_i32_1 = arith.constant 0 : i32
    return %c0_i32, %c0_i32_0 : i32, i32
  }
  func.func @transform_16(%arg0: i32) -> (i32, i32) {
    %c0_i32 = arith.constant 0 : i32
    %c0_i32_0 = arith.constant 0 : i32
    %c0_i32_1 = arith.constant 0 : i32
    return %c0_i32, %c0_i32_0 : i32, i32
  }
  func.func @transform_17(%arg0: i32) -> (i32, i32) {
    %c0_i32 = arith.constant 0 : i32
    %c0_i32_0 = arith.constant 0 : i32
    %c0_i32_1 = arith.constant 0 : i32
    return %c0_i32, %c0_i32_0 : i32, i32
  }
  func.func @transform_18(%arg0: i32) -> (i32, i32) {
    %c0_i32 = arith.constant 0 : i32
    %c0_i32_0 = arith.constant 0 : i32
    %c0_i32_1 = arith.constant 0 : i32
    return %c0_i32, %c0_i32_0 : i32, i32
  }
  func.func @transform_19(%arg0: i32) -> (i32, i32) {
    %c0_i32 = arith.constant 0 : i32
    %c0_i32_0 = arith.constant 0 : i32
    %c0_i32_1 = arith.constant 0 : i32
    return %c0_i32, %c0_i32_0 : i32, i32
  }
  func.func @transform_20(%arg0: i32) -> (i32, i32) {
    %c0_i32 = arith.constant 0 : i32
    %c0_i32_0 = arith.constant 0 : i32
    %c0_i32_1 = arith.constant 0 : i32
    return %c0_i32, %c0_i32_0 : i32, i32
  }
  func.func @transform_21(%arg0: i32) -> (i32, i32) {
    %c0_i32 = arith.constant 0 : i32
    %c0_i32_0 = arith.constant 0 : i32
    %c0_i32_1 = arith.constant 0 : i32
    return %c0_i32, %c0_i32_0 : i32, i32
  }
  func.func @transform_22(%arg0: i32) -> (i32, i32) {
    %c0_i32 = arith.constant 0 : i32
    %c0_i32_0 = arith.constant 0 : i32
    %c0_i32_1 = arith.constant 0 : i32
    return %c0_i32, %c0_i32_0 : i32, i32
  }
  func.func @transform_23(%arg0: i32) -> (i32, i32) {
    %c0_i32 = arith.constant 0 : i32
    %c0_i32_0 = arith.constant 0 : i32
    %c0_i32_1 = arith.constant 0 : i32
    return %c0_i32, %c0_i32_0 : i32, i32
  }
  func.func @transform_24(%arg0: i32) -> (i32, i32) {
    %c0_i32 = arith.constant 0 : i32
    %c0_i32_0 = arith.constant 0 : i32
    %c0_i32_1 = arith.constant 0 : i32
    return %c0_i32, %c0_i32_0 : i32, i32
  }
  func.func @transform_25(%arg0: i32) -> (i32, i32) {
    %c0_i32 = arith.constant 0 : i32
    %c0_i32_0 = arith.constant 0 : i32
    %c0_i32_1 = arith.constant 0 : i32
    return %c0_i32, %c0_i32_0 : i32, i32
  }
  func.func @transform_26(%arg0: i32) -> (i32, i32) {
    %c0_i32 = arith.constant 0 : i32
    %c0_i32_0 = arith.constant 0 : i32
    %c0_i32_1 = arith.constant 0 : i32
    return %c0_i32, %c0_i32_0 : i32, i32
  }
  func.func @transform_27(%arg0: i32) -> (i32, i32) {
    %c0_i32 = arith.constant 0 : i32
    %c0_i32_0 = arith.constant 0 : i32
    %c0_i32_1 = arith.constant 0 : i32
    return %c0_i32, %c0_i32_0 : i32, i32
  }
  func.func @transform_28(%arg0: i32) -> (i32, i32) {
    %c0_i32 = arith.constant 0 : i32
    %c0_i32_0 = arith.constant 0 : i32
    %c0_i32_1 = arith.constant 0 : i32
    return %c0_i32, %c0_i32_0 : i32, i32
  }
  func.func @transform_29(%arg0: i32) -> (i32, i32) {
    %c0_i32 = arith.constant 0 : i32
    %c0_i32_0 = arith.constant 0 : i32
    %c0_i32_1 = arith.constant 0 : i32
    return %c0_i32, %c0_i32_0 : i32, i32
  }
  func.func @transform_30(%arg0: i32) -> (i32, i32) {
    %c0_i32 = arith.constant 0 : i32
    %c0_i32_0 = arith.constant 0 : i32
    %c0_i32_1 = arith.constant 0 : i32
    return %c0_i32, %c0_i32_0 : i32, i32
  }
  func.func @transform_31(%arg0: i32) -> (i32, i32, i32) {
    %c0_i32 = arith.constant 0 : i32
    %c0_i32_0 = arith.constant 0 : i32
    %c0_i32_1 = arith.constant 0 : i32
    return %arg0, %c0_i32, %c0_i32_0 : i32, i32, i32
  }
}

</mosaic_0001>

<bundles_post_ra>
// kernel: _lambda_.1
= control target key start
LH: loop header
LB: loop body
LE: loop exit
PB: predicated region body
PF: predicated region fallthrough
CT: control target
= control target key end

     0   :  { %s9824_s6 = smov 1   ;;  %s9825_s10 = smov 2   ;;  %s11262_s0 = inlined_call_operand.smem [shape: u32[32], index: -1, kind: input, shape index: {}] }
   0x1   :  { %s9901_s5 = sld [smem:[%s11262_s0]]   ;;  %s9826_s14 = smov 3  }
   0x2   :  { %s9906_s9 = sld [smem:[%s11262_s0 + %s9824_s6]]   ;;  %s9827_s18 = smov 4  }
   0x3   :  { %s9911_s13 = sld [smem:[%s11262_s0 + %s9825_s10]]   ;;  %s9828_s22 = smov 5  }
   0x4   :  { %s9916_s17 = sld [smem:[%s11262_s0 + %s9826_s14]]   ;;  %s9829_s26 = smov 6  }
   0x5   :  { %s9921_s21 = sld [smem:[%s11262_s0 + %s9827_s18]]   ;;  %s9830_s30 = smov 7  }
   0x6   :  { %s9926_s25 = sld [smem:[%s11262_s0 + %s9828_s22]]   ;;  %s9831_s4 = smov 8  }
   0x7   :  { %s9931_s29 = sld [smem:[%s11262_s0 + %s9829_s26]]   ;;  %s9832_s10 = smov 9  }
   0x8   :  { %s9936_s3 = sld [smem:[%s11262_s0 + %s9830_s30]]   ;;  %s9833_s15 = smov 10  }
   0x9   :  { %s9941_s8 = sld [smem:[%s11262_s0 + %s9831_s4]]   ;;  %s9834_s20 = smov 11  }
   0xa   :  { %s9946_s14 = sld [smem:[%s11262_s0 + %s9832_s10]]   ;;  %s9835_s26 = smov 12  }
   0xb   :  { %s9951_s19 = sld [smem:[%s11262_s0 + %s9833_s15]]   ;;  %s9836_s1 = smov 13  }
   0xc   :  { %s9956_s24 = sld [smem:[%s11262_s0 + %s9834_s20]]   ;;  %s9837_s7 = smov 14  }
   0xd   :  { %11270 = sst [smem:[#allocation28_spill]] %s9931_s29  ;;  %s9838_s15 = smov 15  }
   0xe   :  { %s9961_s30 = sld [smem:[%s11262_s0 + %s9835_s26]]   ;;  %s9839_s22 = smov 16  }
   0xf   :  { %11271 = sst [smem:[#allocation29_spill]] %s9941_s8  ;;  %s9840_s28 = smov 17  }
  0x10   :  { %s9966_s6 = sld [smem:[%s11262_s0 + %s9836_s1]]  }
  0x11   :  { %11272 = sst [smem:[#allocation30_spill]] %s9951_s19 }
  0x12   :  { %s9971_s12 = sld [smem:[%s11262_s0 + %s9837_s7]]   ;;  %s9841_s7 = smov 18  }
  0x13   :  { %s9976_s20 = sld [smem:[%s11262_s0 + %s9838_s15]]   ;;  %s9842_s15 = smov 19  }
  0x14   :  { %11273 = sst [smem:[#allocation31_spill]] %s9961_s30 }
  0x15   :  { %s9981_s27 = sld [smem:[%s11262_s0 + %s9839_s22]]   ;;  %s9843_s22 = smov 20  }
  0x16   :  { %11274 = sst [smem:[#allocation32_spill]] %s9966_s6 }
  0x17   :  { %s9986_s4 = sld [smem:[%s11262_s0 + %s9840_s28]]   ;;  %s9844_s28 = smov 21  }
  0x18   :  { %11275 = sst [smem:[#allocation33_spill]] %s9971_s12 }
  0x19   :  { %11276 = sst [smem:[#allocation34_spill]] %s9976_s20 }
  0x1a   :  { %s9991_s12 = sld [smem:[%s11262_s0 + %s9841_s7]]   ;;  %s9845_s7 = smov 22  }
  0x1b   :  { %11277 = sst [smem:[#allocation35_spill]] %s9981_s27 }
  0x1c   :  { %s9996_s20 = sld [smem:[%s11262_s0 + %s9842_s15]]   ;;  %s9846_s15 = smov 23  }
  0x1d   :  { %s10001_s27 = sld [smem:[%s11262_s0 + %s9843_s22]]   ;;  %s9847_s22 = smov 24  }
  0x1e   :  { %s10006_s19 = sld [smem:[%s11262_s0 + %s9844_s28]]   ;;  %s9848_s28 = smov 25  }
  0x1f   :  { %s10016_s8 = sld [smem:[%s11262_s0 + %s9846_s15]]   ;;  %s9850_s15 = smov 27  }
  0x20   :  { %11278 = sst [smem:[#allocation36_spill]] %s9991_s12 }
  0x21   :  { %s10011_s12 = sld [smem:[%s11262_s0 + %s9845_s7]]   ;;  %s9849_s7 = smov 26  }
  0x22   :  { %s10026_s30 = sld [smem:[%s11262_s0 + %s9848_s28]]   ;;  %s9852_s28 = smov 29  }
  0x23   :  { %11279 = sst [smem:[#allocation37_spill]] %s10001_s27 }
  0x24   :  { %s10021_s27 = sld [smem:[%s11262_s0 + %s9847_s22]]   ;;  %s9851_s22 = smov 28  }
  0x25   :  { %11281 = sst [smem:[#allocation39_spill]] %s10016_s8 }
  0x26   :  { %s10036_s29 = sld [smem:[%s11262_s0 + %s9850_s15]]   ;;  %s9854_s15 = smov 31  }
  0x27   :  { %11280 = sst [smem:[#allocation38_spill]] %s10011_s12 }
  0x28   :  { %11283 = sst [smem:[#allocation41_spill]] %s10026_s30 }
  0x29   :  { %s10031_s12 = sld [smem:[%s11262_s0 + %s9849_s7]]   ;;  %s9853_s7 = smov 30  }
  0x2a   :  { %11282 = sst [smem:[#allocation40_spill]] %s10021_s27 }
  0x2b   :  { %s10041_s27 = sld [smem:[%s11262_s0 + %s9851_s22]]  }
  0x2c   :  { %11285 = sst [smem:[#allocation43_spill]] %s10036_s29 }
  0x2d   :  { %s10046_s30 = sld [smem:[%s11262_s0 + %s9852_s28]]  }
  0x2e   :  { %s10056_s29 = sld [smem:[%s11262_s0 + %s9854_s15]]  }
  0x2f   :  { %11284 = sst [smem:[#allocation42_spill]] %s10031_s12 }
  0x30   :  { %s10051_s12 = sld [smem:[%s11262_s0 + %s9853_s7]]  }
  0x31   :  { %68 = vsyncpa [#allocation3], 0 }
  0x32   :  { %69 = vsyncpa [#allocation5], 0 }
  0x33   :  { %70 = vsyncpa [#allocation8], 0 }
  0x34   :  { %71 = vsyncpa [#allocation11], 0 }
  0x35   :  { %72 = vsyncpa [#allocation14], 0 }
  0x36   :  { %73 = vsyncpa [#allocation17], 0 }
  0x37   :  { %74 = vsyncpa [#allocation20], 0  ;;  %s10058_s22 = smov 0  }
  0x38 LB: > { %s9855_s23 = smov [#allocation4]   ;;  %s10064_s26 = sadd.s32 4294967295, %s9822_s22   ;;  %s9822_s22 = sphi %s10058_s22, %s80_s22  }
  0x39   : > { %s795_s0 = sshll.u32 %s9855_s23, 4  ;;  %p8029_p0 = scmp.ge.s32.totalorder %s9822_s22, 1  ;;  %s796_s0 = int_to_ptr.vmem [resolvable:$true] %s795_s0 }
  0x3a   : > { %p767_p1 = scmp.lt.s32.totalorder %s9822_s22, 3  ;;  %p11264_p2 = scmp.eq.s32.totalorder %s10064_s26, 0 }
  0x3b   : > { %s9856_s1 = smov [#allocation7]   ;;  %s9857_s10 = smov [#allocation10]  }
  0x3c   : > { %p10069_p3 = pnand %p8029_p0, %p767_p1  ;;  %s833_s2 = sshll.u32 %s9856_s1, 4  ;;  %s10075_s2 = int_to_ptr.vmem [resolvable:$true] %s833_s2 }
  0x3d   : > { %s865_s11 = sshll.u32 %s9857_s10, 4  ;;  %s9858_s15 = smov [#allocation13]   ;;  %s10083_s11 = int_to_ptr.vmem [resolvable:$true] %s865_s11 }
  0x3e   : > { %s11286_s28 = scalar_select %p10069_p3, 1, 0 }
  0x3f   : > { %p9271_p4 = pneg %p10069_p3  ;;  %s10085_s16 = sshll.u32 %s9858_s15, 4  ;;  %s904_s16 = int_to_ptr.vmem [resolvable:$true] %s10085_s16 }
  0x40   : > { %s9487_s23 = scalar_lea.vmem %s796_s0, 1024  ;;  %p9495_p10 = scmp.lt.s32.totalorder %s796_s0, %s796_s0 }
  0x41   : > { %p10079_p5 = pnand %p11264_p2, %p9271_p4  ;;  %p9488_p7 = scmp.ne.s32.totalorder %s796_s0, %s9487_s23 }
  0x42   : > { %p9496_p11 = scmp.lt.s32.totalorder %s9487_s23, %s9487_s23 }
  0x43   : > { %p10089_p6 = pneg %p10079_p5 }
  0x44   : > { %p9497_p12 = por %p9496_p11, %p9495_p10 }
  0x45   : > { %p9490_p8 = pnand %p9488_p7, %p10089_p6 }
  0x47   : > { %p9491_p9 = pneg %p9490_p8 }
  0x49   : > { %p9498_p13 = pnand %p9497_p12, %p9491_p9 }
  0x4b   : > { %9501 = shalt.err (!%p9498_p13)
}
  0x4c   : > { %s11265_s1 = smov 128   ;;  %s11267_s10 = smov 8  }
  0x4d   : > { %9277 = dma.hbm_to_vmem [thread:$0]  (!%p10079_p5), %s9916_s17, 1024, %s796_s0, [#allocation5], %s11265_s1, %s11265_s1, %s11267_s10  }
  0x4e   : > { %s9513_s15 = scalar_lea.vmem %s10075_s2, 1024  ;;  %p9521_p7 = scmp.lt.s32.totalorder %s10075_s2, %s10075_s2 }
  0x4f   : > { %p9514_p0 = scmp.ne.s32.totalorder %s10075_s2, %s9513_s15  ;;  %p9522_p8 = scmp.lt.s32.totalorder %s9513_s15, %s9513_s15 }
  0x51   : > { %p9516_p1 = pnand %p9514_p0, %p10089_p6  ;;  %p9523_p9 = por %p9522_p8, %p9521_p7 }
  0x53   : > { %p9517_p4 = pneg %p9516_p1 }
  0x55   : > { %p9524_p10 = pnand %p9523_p9, %p9517_p4 }
  0x57   : > { %9527 = shalt.err (!%p9524_p10)
}
  0x58   : > { %9283 = dma.hbm_to_vmem [thread:$0]  (!%p10079_p5), %s9946_s14, 1024, %s10075_s2, [#allocation8], %s11265_s1, %s11265_s1, %s11267_s10  }
  0x59   : > { %s9539_s0 = scalar_lea.vmem %s10083_s11, 512  ;;  %p9547_p0 = scmp.lt.s32.totalorder %s10083_s11, %s10083_s11 }
  0x5a   : > { %p9540_p11 = scmp.ne.s32.totalorder %s10083_s11, %s9539_s0  ;;  %p9548_p1 = scmp.lt.s32.totalorder %s9539_s0, %s9539_s0 }
  0x5c   : > { %p9542_p12 = pnand %p9540_p11, %p10089_p6  ;;  %p9549_p4 = por %p9548_p1, %p9547_p0 }
  0x5e   : > { %p9543_p13 = pneg %p9542_p12 }
  0x60   : > { %p9550_p7 = pnand %p9549_p4, %p9543_p13 }
  0x62   : > { %9553 = shalt.err (!%p9550_p7)
}
  0x63   : > { %s11289_s6 = sld [smem:[#allocation32_spill]]  ;;  %s9565_s2 = scalar_lea.vmem %s904_s16, 1024 }
  0x64   : > { %p9566_p8 = scmp.ne.s32.totalorder %s904_s16, %s9565_s2  ;;  %p9573_p11 = scmp.lt.s32.totalorder %s904_s16, %s904_s16 }
  0x65   : > { %p9574_p12 = scmp.lt.s32.totalorder %s9565_s2, %s9565_s2 }
  0x66   : > { %p9568_p9 = pnand %p9566_p8, %p10089_p6 }
  0x67   : > { %p9575_p13 = por %p9574_p12, %p9573_p11 }
  0x68   : > { %p9569_p10 = pneg %p9568_p9 }
  0x69   : > { %9289 = dma.hbm_to_vmem [thread:$0]  (!%p10079_p5), %s11289_s6, 512, %s10083_s11, [#allocation11], %s11265_s1, %s11265_s1, %s11267_s10  }
  0x6a   : > { %p9576_p0 = pnand %p9575_p13, %p9569_p10 }
  0x6c   : > { %9579 = shalt.err (!%p9576_p0)
}
  0x6d   : > { %9295 = dma.hbm_to_vmem [thread:$0]  (!%p10079_p5), %s9996_s20, 1024, %s904_s16, [#allocation14], %s11265_s1, %s11265_s1, %s11267_s10  }
  0x6e   : > { %s9861_s11 = smov [#allocation16]   ;;  %s9862_s15 = smov [#allocation2]  }
  0x6f   : > { %s935_s23 = sshll.u32 %s9861_s11, 4  ;;  %s779_s0 = sshll.u32 %s9862_s15, 4  ;;  %s936_s23 = int_to_ptr.vmem [resolvable:$true] %s935_s23  ;;  %s780_s0 = int_to_ptr.vmem [resolvable:$true] %s779_s0 }
  0x70   : > { %s9591_s6 = scalar_lea.vmem %s936_s23, 256  ;;  %p9599_p8 = scmp.lt.s32.totalorder %s936_s23, %s936_s23 }
  0x71   : > { %p9592_p1 = scmp.ne.s32.totalorder %s936_s23, %s9591_s6  ;;  %p9600_p9 = scmp.lt.s32.totalorder %s9591_s6, %s9591_s6 }
  0x73   : > { %p9594_p4 = pnand %p9592_p1, %p10089_p6  ;;  %p9601_p10 = por %p9600_p9, %p9599_p8 }
  0x75   : > { %p9595_p7 = pneg %p9594_p4 }
  0x77   : > { %p9602_p11 = pnand %p9601_p10, %p9595_p7 }
  0x79   : > { %9605 = shalt.err (!%p9602_p11)
}
  0x7a   : > { %s11290_s8 = sld [smem:[#allocation39_spill]]  ;;  %s9617_s16 = scalar_lea.vmem %s780_s0, 2048 }
  0x7b   : > { %p9618_p12 = scmp.ne.s32.totalorder %s780_s0, %s9617_s16  ;;  %p9625_p1 = scmp.lt.s32.totalorder %s780_s0, %s780_s0 }
  0x7c   : > { %p9626_p4 = scmp.lt.s32.totalorder %s9617_s16, %s9617_s16 }
  0x7d   : > { %p9620_p13 = pnand %p9618_p12, %p10089_p6 }
  0x7e   : > { %p9627_p2 = por %p9626_p4, %p9625_p1 }
  0x7f   : > { %p9621_p0 = pneg %p9620_p13 }
  0x80   : > { %9301 = dma.hbm_to_vmem [thread:$0]  (!%p10079_p5), %s11290_s8, 256, %s936_s23, [#allocation17], %s11265_s1, %s11265_s1, %s11267_s10  }
  0x81   : > { %p9628_p8 = pnand %p9627_p2, %p9621_p0 }
  0x83   : > { %9631 = shalt.err (!%p9628_p8)
}
  0x84   : > { %s9863_s6 = smov 256   ;;  %s9864_s2 = smov 16  }
  0x85   : > { %9274 = dma.hbm_to_vmem [thread:$0]  (!%p10079_p5), %s9906_s9, 2048, %s780_s0, [#allocation3], %s9863_s6, %s9863_s6, %s9864_s2  }
  0x86   : > { %s9865_s11 = smov [#allocation6]   ;;  %s9866_s15 = smov [#allocation9]  }
  0x87   : > { %s817_s23 = sshll.u32 %s9865_s11, 4  ;;  %s849_s1 = sshll.u32 %s9866_s15, 4  ;;  %s818_s23 = int_to_ptr.vmem [resolvable:$true] %s817_s23  ;;  %s850_s1 = int_to_ptr.vmem [resolvable:$true] %s849_s1 }
  0x88   : > { %s9643_s10 = scalar_lea.vmem %s818_s23, 1024  ;;  %p9651_p11 = scmp.lt.s32.totalorder %s818_s23, %s818_s23 }
  0x89   : > { %p9644_p7 = scmp.ne.s32.totalorder %s818_s23, %s9643_s10  ;;  %p9652_p2 = scmp.lt.s32.totalorder %s9643_s10, %s9643_s10 }
  0x8b   : > { %p9646_p9 = pnand %p9644_p7, %p10089_p6  ;;  %p9653_p12 = por %p9652_p2, %p9651_p11 }
  0x8d   : > { %p9647_p10 = pneg %p9646_p9 }
  0x8f   : > { %p9654_p13 = pnand %p9653_p12, %p9647_p10 }
  0x91   : > { %9657 = shalt.err (!%p9654_p13)
}
  0x92   : > { %s11291_s16 = smov 8   ;;  %s11292_s8 = smov 128  }
  0x93   : > { %9280 = dma.hbm_to_vmem [thread:$0]  (!%p10079_p5), %s9936_s3, 1024, %s818_s23, [#allocation5], %s11292_s8, %s11292_s8, %s11291_s16  }
  0x94   : > { %s9669_s0 = scalar_lea.vmem %s850_s1, 512  ;;  %p9677_p8 = scmp.lt.s32.totalorder %s850_s1, %s850_s1 }
  0x95   : > { %p9670_p0 = scmp.ne.s32.totalorder %s850_s1, %s9669_s0  ;;  %p9678_p7 = scmp.lt.s32.totalorder %s9669_s0, %s9669_s0 }
  0x97   : > { %p9672_p1 = pnand %p9670_p0, %p10089_p6  ;;  %p9679_p9 = por %p9678_p7, %p9677_p8 }
  0x99   : > { %p9673_p4 = pneg %p9672_p1 }
  0x9b   : > { %p9680_p11 = pnand %p9679_p9, %p9673_p4 }
  0x9d   : > { %9683 = shalt.err (!%p9680_p11)
}
  0x9e   : > { %9286 = dma.hbm_to_vmem [thread:$0]  (!%p10079_p5), %s9956_s24, 512, %s850_s1, [#allocation8], %s11292_s8, %s11292_s8, %s11291_s16  }
  0x9f   : > { %s9867_s10 = smov [#allocation12]   ;;  %s9868_s2 = smov [#allocation15]  }
  0xa0   : > { %s887_s6 = sshll.u32 %s9867_s10, 4  ;;  %s919_s11 = sshll.u32 %s9868_s2, 4  ;;  %s888_s6 = int_to_ptr.vmem [resolvable:$true] %s887_s6  ;;  %s920_s11 = int_to_ptr.vmem [resolvable:$true] %s919_s11 }
  0xa1   : > { %s9695_s23 = scalar_lea.vmem %s888_s6, 512  ;;  %p9703_p13 = scmp.lt.s32.totalorder %s888_s6, %s888_s6 }
  0xa2   : > { %p9696_p10 = scmp.ne.s32.totalorder %s888_s6, %s9695_s23  ;;  %p9704_p0 = scmp.lt.s32.totalorder %s9695_s23, %s9695_s23 }
  0xa4   : > { %p9698_p2 = pnand %p9696_p10, %p10089_p6  ;;  %p9705_p1 = por %p9704_p0, %p9703_p13 }
  0xa6   : > { %p9699_p12 = pneg %p9698_p2 }
  0xa8   : > { %p9706_p4 = pnand %p9705_p1, %p9699_p12 }
  0xaa   : > { %9709 = shalt.err (!%p9706_p4)
}
  0xab   : > { %9292 = dma.hbm_to_vmem [thread:$0]  (!%p10079_p5), %s9986_s4, 512, %s888_s6, [#allocation11], %s11292_s8, %s11292_s8, %s11291_s16  }
  0xac   : > { %s9721_s1 = scalar_lea.vmem %s920_s11, 256  ;;  %p9729_p11 = scmp.lt.s32.totalorder %s920_s11, %s920_s11 }
  0xad   : > { %p9722_p8 = scmp.ne.s32.totalorder %s920_s11, %s9721_s1  ;;  %p9730_p10 = scmp.lt.s32.totalorder %s9721_s1, %s9721_s1 }
  0xaf   : > { %p9724_p7 = pnand %p9722_p8, %p10089_p6  ;;  %p9731_p2 = por %p9730_p10, %p9729_p11 }
  0xb1   : > { %p9725_p9 = pneg %p9724_p7 }
  0xb3   : > { %p9732_p13 = pnand %p9731_p2, %p9725_p9 }
  0xb5   : > { %9735 = shalt.err (!%p9732_p13)
}
  0xb6   : > { %9298 = dma.hbm_to_vmem [thread:$0]  (!%p10079_p5), %s10006_s19, 256, %s920_s11, [#allocation14], %s11292_s8, %s11292_s8, %s11291_s16  }
  0xb7   : > { %s9869_s15 = smov [#allocation18]   ;;  %s9870_s10 = smov [#allocation19]  }
  0xb8   : > { %s961_s0 = sshll.u32 %s9869_s15, 4  ;;  %s975_s6 = sshll.u32 %s9870_s10, 4  ;;  %s962_s0 = int_to_ptr.vmem [resolvable:$true] %s961_s0  ;;  %s976_s6 = int_to_ptr.vmem [resolvable:$true] %s975_s6 }
  0xb9   : > { %s9747_s2 = scalar_lea.vmem %s962_s0, 16  ;;  %s9754_s23 = scalar_lea.vmem %s962_s0, 32 }
  0xba   : > { %p9748_p12 = scmp.ne.s32.totalorder %s962_s0, %s9747_s2  ;;  %p9755_p4 = scmp.lt.s32.totalorder %s962_s0, %s962_s0 }
  0xbb   : > { %p9756_p8 = scmp.lt.s32.totalorder %s9754_s23, %s9747_s2 }
  0xbc   : > { %p9750_p0 = pnand %p9748_p12, %p10089_p6 }
  0xbd   : > { %p9757_p7 = por %p9756_p8, %p9755_p4 }
  0xbe   : > { %p9751_p1 = pneg %p9750_p0 }
  0xc0   : > { %p9758_p9 = pnand %p9757_p7, %p9751_p1 }
  0xc2   : > { %9761 = shalt.err (!%p9758_p9)
}
  0xc3   : > { %9304 = dma.hbm_to_vmem [thread:$0]  (!%p10079_p5), %s10041_s27, 16, %s962_s0, [#allocation17]  }
  0xc4   : > { %s9773_s8 = scalar_lea.vmem %s976_s6, 16  ;;  %s9780_s16 = scalar_lea.vmem %s976_s6, 32 }
  0xc5   : > { %p9774_p11 = scmp.ne.s32.totalorder %s976_s6, %s9773_s8  ;;  %p9781_p13 = scmp.lt.s32.totalorder %s976_s6, %s976_s6 }
  0xc6   : > { %p9782_p12 = scmp.lt.s32.totalorder %s9780_s16, %s9773_s8 }
  0xc7   : > { %p9776_p10 = pnand %p9774_p11, %p10089_p6 }
  0xc8   : > { %p9783_p0 = por %p9782_p12, %p9781_p13 }
  0xc9   : > { %p9777_p2 = pneg %p9776_p10 }
  0xcb   : > { %p9784_p3 = pnand %p9783_p0, %p9777_p2 }
  0xcd   : > { %9787 = shalt.err (!%p9784_p3)
}
  0xce   : > { %9307 = dma.hbm_to_vmem [thread:$0]  (!%p10079_p5), %s10051_s12, 16, %s976_s6, [#allocation20]  }
  0xcf   : > { %p11293_p1 = scmp.ne.s32.totalorder %s11286_s28, 0 }
  0xd0   : > { %p11294_p4 = scmp.eq.s32.totalorder (!%p11293_p1), %s10064_s26, 0 }
  0xd1   : > { %995 = sbr.rel (%p11293_p1) target bundleno = 13466 (0x349a), region = 144 }
  0xd6   : > { %9793 = dma.done.wait (%p11294_p4), [#allocation3], 2048   ;;  %p11295_p8 = pmov %p11294_p4 }
  0xd7   : > { %p11296_p6 = pmov %p11294_p4 }
  0xd8   : > { %9795 = vsyncadd (%p11295_p8), [#allocation3], 4294965248 }
  0xd9   : > { %9797 = dma.done.wait (%p11296_p6), [#allocation5], 2048   ;;  %p11297_p7 = pmov %p11294_p4 }
  0xda   : > { %p11298_p3 = pmov %p11294_p4 }
  0xdb   : > { %9799 = vsyncadd (%p11297_p7), [#allocation5], 4294965248 }
  0xdc   : > { %9801 = dma.done.wait (%p11298_p3), [#allocation8], 1536   ;;  %p11299_p5 = pmov %p11298_p3 }
  0xdd   : > { %p11300_p9 = pmov %p11298_p3 }
  0xde   : > { %9803 = vsyncadd (%p11299_p5), [#allocation8], 4294965760 }
  0xdf   : > { %9805 = dma.done.wait (%p11300_p9), [#allocation11], 1024   ;;  %p11301_p11 = pmov %p11298_p3 }
  0xe0   : > { %p11302_p10 = pmov %p11298_p3 }
  0xe1   : > { %9807 = vsyncadd (%p11301_p11), [#allocation11], 4294966272 }
  0xe2   : > { %9809 = dma.done.wait (%p11302_p10), [#allocation14], 1280   ;;  %p11303_p2 = pmov %p11298_p3 }
  0xe4   : > { %9811 = vsyncadd (%p11303_p2), [#allocation14], 4294966016  ;;  %p11304_p13 = pmov %p11303_p2 }
  0xe5   : > { %p11305_p12 = pmov %p11303_p2 }
  0xe6   : > { %9813 = dma.done.wait (%p11304_p13), [#allocation17], 272  }
  0xe7   : > { %9815 = vsyncadd (%p11305_p12), [#allocation17], 4294967024  ;;  %p11306_p0 = pmov %p11303_p2 }
  0xe9   : > { %9817 = dma.done.wait (%p11306_p0), [#allocation20], 16   ;;  %p11307_p1 = pmov %p11306_p0 }
  0xea   : > { %v9871_v0 = vmov 0.0   ;;  %v10223_v1 = vld [vmem:[#allocation2 + $0x70] sm:$0xff]  ;;  %s9872_s28 = smov 64   ;;  %v10231_v3 = vld [vmem:[#allocation2 + $0x60] sm:$0xff]  ;;  %vm9873_vm0 = vmmov 0   ;;  %p1117_p4 = scmp.lt.s32.totalorder %s10064_s26, 1 }
  0xeb   : > { %9819 = vsyncadd (%p11307_p1), [#allocation20], 4294967280  ;;  %8516 = vmatprep.subr.mxu1 %v9871_v0  ;;  %8497 = vmatprep.subr.mxu0 %v9871_v0  ;;  %v10225_v2 = vld [vmem:[#allocation2 + $0x50] sm:$0xff]  ;;  %v10233_v4 = vld [vmem:[#allocation2 + $0x40] sm:$0xff]  ;;  %vm1141_vm1 = vcmask 523264   ;;  %vm1406_vm2 = vcmask 130048  }
  0xec   : > { %1237 = vrot.lane.b32.xlu0 %v10223_v1, %s9872_s28  ;;  %1233 = vrot.lane.b32.xlu1 %v10225_v2, %s9872_s28  ;;  %v10247_v5 = vld [vmem:[#allocation2 + $0x30] sm:$0xff]  ;;  %v10249_v6 = vld [vmem:[#allocation2 + $0x20] sm:$0xff]  ;;  %s11323_s26 = smov (!%p1117_p4, %s10064_s26), 1  ;;  %v10291_v11 = vld [vmem:[#allocation2 + $0x78] sm:$0xff]  ;;  %s9874_s11 = smov 48   ;;  %vm1483_vm3 = vcmask 64512  }
  0xed   : > { %8498 = vmatpush3.msra.mxu0 %v10223_v1  ;;  %8513 = vmatprep.mubr.msk.f32.mxu0 %vm9873_vm0, %v9871_v0  ;;  %v10261_v7 = vld [vmem:[#allocation2 + $0x10] sm:$0xff]  ;;  %v10263_v8 = vld [vmem:[#allocation2] sm:$0xff]  ;;  %s8056_s7 = sshll.u32 %s11323_s26, 3  ;;  %v10297_v12 = vld [vmem:[#allocation2 + $0x68] sm:$0xff]  ;;  %s9875_s1 = smov 112   ;;  %vm3487_vm5 = vcmask 261120  }
  0xee   : > { %8499 = vmatprep.subr.mxu0 %v9871_v0  ;;  %8532 = vmatprep.mubr.msk.f32.mxu1 %vm9873_vm0, %v9871_v0  ;;  %s10277_s18 = scalar_lea.vmem %s9901_s5, %s8056_s7  ;;  %v10280_v9 = vld [vmem:[%s9911_s13] ss:$0 sm:$0xff]  ;;  %v10303_v13 = vld [vmem:[#allocation2 + $0x58] sm:$0xff]  ;;  %v10307_v14 = vld [vmem:[#allocation2 + $0x48] sm:$0xff]  ;;  %s9876_s15 = smov 32   ;;  %vm5923_vm7 = vcmask 31744  }
  0xef   : > { %8500 = vmatpush3.msra.mxu0 %v10231_v3  ;;  %v10286_v10 = vld [vmem:[%s10277_s18] sm:$0xff]  ;;  %v10311_v15 = vld [vmem:[#allocation2 + $0x38] sm:$0xff]  ;;  %v10315_v16 = vld [vmem:[#allocation2 + $0x28] sm:$0xff]  ;;  %s9877_s0 = smov 96   ;;  %s9878_s10 = smov 16   ;;  %vm6487_vm8 = vcmask 1043456  }
  0xf0   : > { %1235 = vrot.lane.b32.xlu0 %v10231_v3, %s9872_s28  ;;  %1231 = vrot.lane.b32.xlu1 %v10233_v4, %s9872_s28  ;;  %v10319_v17 = vld [vmem:[#allocation2 + $0x18] sm:$0xff]  ;;  %v10325_v18 = vld [vmem:[#allocation2 + $0x8] sm:$0xff]  ;;  %v10346_v29 = vld [vmem:[%s9911_s13 + $0x1] ss:$0 sm:$0xff]  ;;  %s9879_s6 = smov 80   ;;  %s11308_s2 = sld [smem:[#allocation28_spill]] }
  0xf1   : > { %8501 = vmatprep.subr.mxu0 %v9871_v0  ;;  %s11309_s23 = sld [smem:[#allocation31_spill]] }
  0xf2   : > { %8502 = vmatpush3.msra.mxu0 %v10225_v2  ;;  %s11310_s8 = sld [smem:[#allocation29_spill]] }
  0xf3   : > { %8503 = vmatprep.subr.mxu0 %v9871_v0  ;;  %s11311_s16 = sld [smem:[#allocation30_spill]] }
  0xf4   : > { %1229 = vrot.lane.b32.xlu0 %v10247_v5, %s9872_s28  ;;  %1227 = vrot.lane.b32.xlu1 %v10249_v6, %s9872_s28 }
  0xf5   : > { %8504 = vmatpush3.msra.mxu0 %v10233_v4 }
  0xf6   : > { %8505 = vmatprep.subr.mxu0 %v9871_v0 }
  0xf7   : > { %8506 = vmatpush3.msra.mxu0 %v10247_v5 }
  0xf8   : > { %1225 = vrot.lane.b32.xlu0 %v10261_v7, %s9872_s28  ;;  %1223 = vrot.lane.b32.xlu1 %v10263_v8, %s9872_s28 }
  0xf9   : > { %8507 = vmatprep.subr.mxu0 %v9871_v0 }
  0xfa   : > { %8508 = vmatpush3.msra.mxu0 %v10249_v6 }
  0xfb   : > { %8509 = vmatprep.subr.mxu0 %v9871_v0 }
  0xfc   : > { %8510 = vmatpush3.msra.mxu0 %v10261_v7  ;;  %1247 = vrot.lane.b32.xlu0 %v10280_v9, %s9872_s28 }
  0xfd   : > { %8511 = vmatprep.subr.mxu0 %v9871_v0 }
  0xfe   : > { %8512 = vmatpush3.msra.mxu0 %v10263_v8 }
  0xff   : > { %8514 = vmatmul.mubr.msk.f32.vlgmr.msra.gmra.mxu0 %vm1141_vm1, %v10286_v10  ;;  %8535 = vmatprep.subr.mxu0 %v9871_v0 }
 0x100   : > { %8536 = vmatpush3.msra.mxu0 %v10291_v11  ;;  %8551 = vmatprep.mubr.msk.f32.mxu0 %vm9873_vm0, %v9871_v0 }
 0x101   : > { %8537 = vmatprep.subr.mxu0 %v9871_v0  ;;  %1681 = vrot.lane.b32.xlu0 %v10223_v1, %s9874_s11 }
 0x102   : > { %8538 = vmatpush3.msra.mxu0 %v10297_v12 }
 0x103   : > { %8539 = vmatprep.subr.mxu0 %v9871_v0 }
 0x104   : > { %8540 = vmatpush3.msra.mxu0 %v10303_v13 }
 0x105   : > { %8541 = vmatprep.subr.mxu0 %v9871_v0  ;;  %1582 = vrot.lane.b32.xlu0 %v10231_v3, %s9875_s1 }
 0x106   : > { %8542 = vmatpush3.msra.mxu0 %v10307_v14 }
 0x107   : > { %8543 = vmatprep.subr.mxu0 %v9871_v0 }
 0x108   : > { %8544 = vmatpush3.msra.mxu0 %v10311_v15 }
 0x109   : > { %8545 = vmatprep.subr.mxu0 %v9871_v0  ;;  %1580 = vrot.lane.b32.xlu0 %v10225_v2, %s9875_s1 }
 0x10a   : > { %8546 = vmatpush3.msra.mxu0 %v10315_v16 }
 0x10b   : > { %8547 = vmatprep.subr.mxu0 %v9871_v0 }
 0x10c   : > { %8548 = vmatpush3.msra.mxu0 %v10319_v17 }
 0x10d   : > { %8549 = vmatprep.subr.mxu0 %v9871_v0  ;;  %1578 = vrot.lane.b32.xlu0 %v10233_v4, %s9875_s1 }
 0x10e   : > { %8550 = vmatpush3.msra.mxu0 %v10325_v18 }
 0x10f   : > { %8552 = vmatmul.mubr.msk.f32.vlgmr.msra.gmra.mxu0 %vm1141_vm1, %v10286_v10  ;;  %8554 = vmatprep.subr.mxu0 %v9871_v0 }
 0x110   : > { %8556 = vmatprep.mubr.msk.f32.mxu0 %vm9873_vm0, %v9871_v0 }
 0x15e   : > { %v1238_v19 = vpop.permute.xlu0 %1237  ;;  %v1234_v20 = vpop.permute.xlu1 %1233 }
 0x15f   : > { %8517 = vmatpush3.msra.mxu1 %v1238_v19 }
 0x160   : > { %8518 = vmatprep.subr.mxu1 %v9871_v0 }
 0x162   : > { %v1236_v21 = vpop.permute.xlu0 %1235  ;;  %v1232_v22 = vpop.permute.xlu1 %1231 }
 0x163   : > { %8519 = vmatpush3.msra.mxu1 %v1236_v21 }
 0x164   : > { %8520 = vmatprep.subr.mxu1 %v9871_v0 }
 0x165   : > { %8521 = vmatpush3.msra.mxu1 %v1234_v20 }
 0x166   : > { %8522 = vmatprep.subr.mxu1 %v9871_v0  ;;  %v1230_v23 = vpop.permute.xlu0 %1229  ;;  %v1228_v24 = vpop.permute.xlu1 %1227 }
 0x167   : > { %8523 = vmatpush3.msra.mxu1 %v1232_v22 }
 0x168   : > { %8524 = vmatprep.subr.mxu1 %v9871_v0 }
 0x169   : > { %8525 = vmatpush3.msra.mxu1 %v1230_v23 }
 0x16a   : > { %8526 = vmatprep.subr.mxu1 %v9871_v0  ;;  %v1226_v25 = vpop.permute.xlu0 %1225  ;;  %v1224_v26 = vpop.permute.xlu1 %1223 }
 0x16b   : > { %8527 = vmatpush3.msra.mxu1 %v1228_v24 }
 0x16c   : > { %8528 = vmatprep.subr.mxu1 %v9871_v0 }
 0x16d   : > { %8529 = vmatpush3.msra.mxu1 %v1226_v25 }
 0x16e   : > { %8530 = vmatprep.subr.mxu1 %v9871_v0  ;;  %v1248_v34 = vpop.permute.xlu0 %1247 }
 0x16f   : > { %8531 = vmatpush3.msra.mxu1 %v1224_v26 }
 0x170   : > { %8533 = vmatmul.mubr.msk.f32.vlgmr.msra.gmra.mxu1 %vm1141_vm1, %v10286_v10  ;;  %8559 = vmatprep.subr.mxu1 %v9871_v0 }
 0x171   : > { %8561 = vmatprep.mubr.msk.f32.mxu1 %vm9873_vm0, %v9871_v0 }
 0x173   : > { %v1682_v42 = vpop.permute.xlu0 %1681 }
 0x177   : > { %v1583_v56 = vpop.permute.xlu0 %1582 }
 0x17b   : > { %v1581_v57 = vpop.permute.xlu0 %1580 }
 0x17f   : > { %v1579_v58 = vpop.permute.xlu0 %1578 }
 0x1bf   : > { %v1211_v27 = vpop.f32.mrf.mxu0 }
 0x1c0   : > { %v1212_v33 = vadd.f32 %v10280_v9, %v1211_v27 }
 0x1c1   : > { %v8515_v28 = vpop.f32.mrf.mxu0 }
 0x1c2   : > { %v1405_v37 = vmul.f32 0.25, %v1212_v33  ;;  %v1568_v33 = vld [vmem:[#allocation4] sm:$0xff] }
 0x1cf   : > { %v1401_v30 = vpop.f32.mrf.mxu0 }
 0x1d0   : > { %v1402_v31 = vadd.f32 %v10346_v29, %v1401_v30 }
 0x1d1   : > { %v8553_v32 = vpop.f32.mrf.mxu0 }
 0x1d2   : > { %8560 = vmatpush3.msra.mxu1 %v1402_v31  ;;  %v1569_v32 = vld [vmem:[#allocation4 + $0x8] sm:$0xff] }
 0x1d3   : > { %8564 = vmatprep.subr.mxu1 %v9871_v0 }
 0x230   : > { %v1316_v35 = vpop.f32.mrf.mxu1 }
 0x231   : > { %v1317_v36 = vadd.f32 %v1316_v35, %v1248_v34 }
 0x232   : > { %v8534_v38 = vpop.f32.mrf.mxu1 }
 0x233   : > { %8555 = vmatpush3.xpose.msk.msra.mxu0 %vm1406_vm2, %v1317_v36 }
 0x234   : > { %8583 = vmatprep.subr.mxu0 %v9871_v0 }
 0x236   : > { %8557 = vmatmul.mubr.msk.f32.vlgmr.msra.gmra.mxu0 %vm1406_vm2, %v1405_v37 }
 0x237   : > { %8599 = vmatprep.mubr.msk.f32.mxu0 %vm9873_vm0, %v9871_v0  ;;  %8584 = vmatpush3.msra.mxu0 %v1682_v42 }
 0x238   : > { %8585 = vmatprep.subr.mxu0 %v9871_v0 }
 0x2f6   : > { %v1479_v39 = vpop.f32.mrf.mxu0 }
 0x2f7   : > { %v1484_v40 = vsel %vm1483_vm3, %v1479_v39, -inf }
 0x2f8   : > { %1485 = vmax.xlane.f32.xlu1 %v1484_v40  ;;  %v8558_v41 = vpop.f32.mrf.mxu0 }
 0x309   : > { %1584 = vrot.lane.b32.xlu1 %v10223_v1, %s9875_s1 }
 0x30d   : > { %1679 = vrot.lane.b32.xlu1 %v10231_v3, %s9874_s11 }
 0x311   : > { %1677 = vrot.lane.b32.xlu1 %v10225_v2, %s9874_s11 }
 0x315   : > { %1675 = vrot.lane.b32.xlu1 %v10233_v4, %s9874_s11 }
 0x319   : > { %1673 = vrot.lane.b32.xlu1 %v10247_v5, %s9874_s11 }
 0x31d   : > { %1671 = vrot.lane.b32.xlu1 %v10249_v6, %s9874_s11 }
 0x321   : > { %1669 = vrot.lane.b32.xlu1 %v10261_v7, %s9874_s11 }
 0x325   : > { %1667 = vrot.lane.b32.xlu1 %v10263_v8, %s9874_s11 }
 0x329   : > { %1691 = vrot.lane.b32.xlu1 %v10280_v9, %s9874_s11 }
 0x32d   : > { %1786 = vrot.lane.b32.xlu1 %v10291_v11, %s9875_s1 }
 0x331   : > { %1782 = vrot.lane.b32.xlu1 %v10303_v13, %s9875_s1 }
 0x335   : > { %1778 = vrot.lane.b32.xlu1 %v10311_v15, %s9875_s1 }
 0x339   : > { %1774 = vrot.lane.b32.xlu1 %v10319_v17, %s9875_s1 }
 0x381   : > { %v1486_v43 = vpop.xlane.xlu1 %1485 }
 0x382   : > { %v1487_v44 = vsub.f32 %v1479_v39, %v1486_v43 }
 0x384   : > { %v1488_v45 = vmul.f32 1.442695, %v1487_v44 }
 0x385   : > { %v1585_v48 = vpop.permute.xlu1 %1584 }
 0x386   : > { %9409 = vpow2.f32 %v1488_v45 }
 0x389   : > { %v1680_v49 = vpop.permute.xlu1 %1679 }
 0x38a   : > { %8586 = vmatpush3.msra.mxu0 %v1680_v49 }
 0x38b   : > { %8587 = vmatprep.subr.mxu0 %v9871_v0 }
 0x38d   : > { %v1678_v50 = vpop.permute.xlu1 %1677 }
 0x38e   : > { %8588 = vmatpush3.msra.mxu0 %v1678_v50 }
 0x38f   : > { %8589 = vmatprep.subr.mxu0 %v9871_v0 }
 0x391   : > { %v1676_v51 = vpop.permute.xlu1 %1675 }
 0x392   : > { %8590 = vmatpush3.msra.mxu0 %v1676_v51 }
 0x393   : > { %v9410_v46 = vpop.eup %9409  ;;  %8591 = vmatprep.subr.mxu0 %v9871_v0 }
 0x394   : > { %v1490_v47 = vsel %vm1483_vm3, %v9410_v46, 0.0 }
 0x395   : > { %1491 = vadd.xlane.f32.xlu0 %v1490_v47  ;;  %v1674_v52 = vpop.permute.xlu1 %1673 }
 0x396   : > { %8592 = vmatpush3.msra.mxu0 %v1674_v52 }
 0x397   : > { %8593 = vmatprep.subr.mxu0 %v9871_v0 }
 0x399   : > { %v1672_v53 = vpop.permute.xlu1 %1671 }
 0x39a   : > { %8594 = vmatpush3.msra.mxu0 %v1672_v53 }
 0x39b   : > { %8595 = vmatprep.subr.mxu0 %v9871_v0 }
 0x39d   : > { %v1670_v54 = vpop.permute.xlu1 %1669 }
 0x39e   : > { %8596 = vmatpush3.msra.mxu0 %v1670_v54 }
 0x39f   : > { %8597 = vmatprep.subr.mxu0 %v9871_v0 }
 0x3a1   : > { %v1668_v55 = vpop.permute.xlu1 %1667 }
 0x3a2   : > { %8598 = vmatpush3.msra.mxu0 %v1668_v55 }
 0x3a3   : > { %8600 = vmatmul.mubr.msk.f32.vlgmr.msra.gmra.mxu0 %vm1141_vm1, %v10286_v10  ;;  %8621 = vmatprep.subr.mxu0 %v9871_v0 }
 0x3a4   : > { %8623 = vmatprep.mubr.msk.f32.mxu0 %vm9873_vm0, %v9871_v0 }
 0x3a5   : > { %v1692_v21 = vpop.permute.xlu1 %1691 }
 0x3a9   : > { %v1787_v23 = vpop.permute.xlu1 %1786 }
 0x3ab   : > { %1576 = vrot.lane.b32.xlu0 %v10247_v5, %s9875_s1 }
 0x3ad   : > { %v1783_v25 = vpop.permute.xlu1 %1782 }
 0x3af   : > { %1574 = vrot.lane.b32.xlu0 %v10249_v6, %s9875_s1 }
 0x3b1   : > { %v1779_v27 = vpop.permute.xlu1 %1778 }
 0x3b3   : > { %1572 = vrot.lane.b32.xlu0 %v10261_v7, %s9875_s1 }
 0x3b5   : > { %v1775_v30 = vpop.permute.xlu1 %1774 }
 0x3b7   : > { %1570 = vrot.lane.b32.xlu0 %v10263_v8, %s9875_s1 }
 0x3bb   : > { %1594 = vrot.lane.b32.xlu0 %v10280_v9, %s9875_s1 }
 0x3bf   : > { %1784 = vrot.lane.b32.xlu0 %v10297_v12, %s9875_s1 }
 0x3c3   : > { %1780 = vrot.lane.b32.xlu0 %v10307_v14, %s9875_s1 }
 0x3c7   : > { %1776 = vrot.lane.b32.xlu0 %v10315_v16, %s9875_s1 }
 0x3cb   : > { %1772 = vrot.lane.b32.xlu0 %v10325_v18, %s9875_s1 }
 0x41e   : > { %v1492_v59 = vpop.xlane.xlu0 %1491 }
 0x41f   : > { %9411 = vrcp.f32 %v1492_v59 }
 0x422   : > { %v1577_v60 = vpop.permute.xlu0 %1576 }
 0x426   : > { %v1575_v61 = vpop.permute.xlu0 %1574 }
 0x42a   : > { %v1573_v62 = vpop.permute.xlu0 %1572 }
 0x42c   : > { %v9412_v63 = vpop.eup %9411 }
 0x42d   : > { %v1494_v19 = vmul.f32 %v9412_v63, %v9410_v46  ;;  %v2031_v63 = vld [vmem:[#allocation4 + $0x18] sm:$0xff] }
 0x42e   : > { %v1571_v20 = vpop.permute.xlu0 %1570 }
 0x42f   : > { %8562 = vmatmul.mubr.msk.f32.vlgmr.msra.gmra.mxu1 %vm1483_vm3, %v1494_v19 }
 0x430   : > { %8565 = vmatpush3.msra.mxu1 %v1585_v48  ;;  %8580 = vmatprep.mubr.msk.f32.mxu1 %vm9873_vm0, %v9871_v0 }
 0x431   : > { %8566 = vmatprep.subr.mxu1 %v9871_v0 }
 0x432   : > { %8567 = vmatpush3.msra.mxu1 %v1583_v56  ;;  %v1595_v22 = vpop.permute.xlu0 %1594 }
 0x433   : > { %8568 = vmatprep.subr.mxu1 %v9871_v0 }
 0x434   : > { %8569 = vmatpush3.msra.mxu1 %v1581_v57 }
 0x435   : > { %8570 = vmatprep.subr.mxu1 %v9871_v0 }
 0x436   : > { %8571 = vmatpush3.msra.mxu1 %v1579_v58  ;;  %v1785_v24 = vpop.permute.xlu0 %1784 }
 0x437   : > { %8572 = vmatprep.subr.mxu1 %v9871_v0 }
 0x438   : > { %8573 = vmatpush3.msra.mxu1 %v1577_v60 }
 0x439   : > { %8574 = vmatprep.subr.mxu1 %v9871_v0 }
 0x43a   : > { %8575 = vmatpush3.msra.mxu1 %v1575_v61  ;;  %v1781_v26 = vpop.permute.xlu0 %1780 }
 0x43b   : > { %8576 = vmatprep.subr.mxu1 %v9871_v0 }
 0x43c   : > { %8577 = vmatpush3.msra.mxu1 %v1573_v62 }
 0x43d   : > { %8578 = vmatprep.subr.mxu1 %v9871_v0 }
 0x43e   : > { %8579 = vmatpush3.msra.mxu1 %v1571_v20  ;;  %v1777_v28 = vpop.permute.xlu0 %1776  ;;  %v2030_v20 = vld [vmem:[#allocation4 + $0x10] sm:$0xff] }
 0x43f   : > { %8581 = vmatmul.mubr.msk.f32.vlgmr.msra.gmra.mxu1 %vm1141_vm1, %v10286_v10  ;;  %8602 = vmatprep.subr.mxu1 %v9871_v0 }
 0x440   : > { %8603 = vmatpush3.msra.mxu1 %v1787_v23  ;;  %8618 = vmatprep.mubr.msk.f32.mxu1 %vm9873_vm0, %v9871_v0 }
 0x441   : > { %8604 = vmatprep.subr.mxu1 %v9871_v0 }
 0x442   : > { %8605 = vmatpush3.msra.mxu1 %v1785_v24  ;;  %v1773_v31 = vpop.permute.xlu0 %1772 }
 0x443   : > { %8606 = vmatprep.subr.mxu1 %v9871_v0 }
 0x444   : > { %8607 = vmatpush3.msra.mxu1 %v1783_v25 }
 0x445   : > { %8608 = vmatprep.subr.mxu1 %v9871_v0 }
 0x446   : > { %8609 = vmatpush3.msra.mxu1 %v1781_v26 }
 0x447   : > { %8610 = vmatprep.subr.mxu1 %v9871_v0 }
 0x448   : > { %8611 = vmatpush3.msra.mxu1 %v1779_v27 }
 0x449   : > { %8612 = vmatprep.subr.mxu1 %v9871_v0 }
 0x44a   : > { %8613 = vmatpush3.msra.mxu1 %v1777_v28 }
 0x44b   : > { %8614 = vmatprep.subr.mxu1 %v9871_v0 }
 0x44c   : > { %8615 = vmatpush3.msra.mxu1 %v1775_v30 }
 0x44d   : > { %8616 = vmatprep.subr.mxu1 %v9871_v0 }
 0x44e   : > { %8617 = vmatpush3.msra.mxu1 %v1773_v31 }
 0x44f   : > { %8619 = vmatmul.mubr.msk.f32.vlgmr.msra.gmra.mxu1 %vm1141_vm1, %v10286_v10  ;;  %8638 = vmatprep.subr.mxu1 %v9871_v0 }
 0x450   : > { %8639 = vmatpush3.msra.mxu1 %v1569_v32  ;;  %8642 = vmatprep.mubr.msk.f32.mxu1 %vm9873_vm0, %v9871_v0 }
 0x451   : > { %8640 = vmatprep.subr.mxu1 %v9871_v0 }
 0x452   : > { %8641 = vmatpush3.msra.mxu1 %v1568_v33 }
 0x453   : > { %8664 = vmatprep.subr.mxu1 %v9871_v0 }
 0x463   : > { %v1760_v34 = vpop.f32.mrf.mxu0 }
 0x464   : > { %v1761_v35 = vadd.f32 %v1760_v34, %v1692_v21 }
 0x465   : > { %v8601_v36 = vpop.f32.mrf.mxu0 }
 0x466   : > { %8622 = vmatpush3.xpose.msk.msra.mxu0 %vm1406_vm2, %v1761_v35 }
 0x467   : > { %8626 = vmatprep.subr.mxu0 %v9871_v0 }
 0x4ef   : > { %v1564_v37 = vpop.f32.mrf.mxu1 }
 0x4f0   : > { %8643 = vmatmul.mubr.msk.f32.vlgmr.msra.gmra.mxu1 %vm1406_vm2, %v1564_v37 }
 0x4f1   : > { %v8563_v38 = vpop.f32.mrf.mxu1  ;;  %8680 = vmatprep.mubr.msk.f32.mxu1 %vm9873_vm0, %v9871_v0 }
 0x4ff   : > { %v1663_v39 = vpop.f32.mrf.mxu1 }
 0x500   : > { %v1664_v40 = vadd.f32 %v1663_v39, %v1595_v22 }
 0x501   : > { %v8582_v41 = vpop.f32.mrf.mxu1 }
 0x502   : > { %v1869_v42 = vmul.f32 0.25, %v1664_v40 }
 0x504   : > { %8624 = vmatmul.mubr.msk.f32.vlgmr.msra.gmra.mxu0 %vm1406_vm2, %v1869_v42 }
 0x505   : > { %8628 = vmatprep.mubr.msk.f32.mxu0 %vm9873_vm0, %v9871_v0 }
 0x50f   : > { %v1865_v43 = vpop.f32.mrf.mxu1 }
 0x511   : > { %v8620_v44 = vpop.f32.mrf.mxu1 }
 0x5b0   : > { %v10459_v45 = vpop.f32.mrf.mxu1 }
 0x5b2   : > { %v8644_v46 = vpop.f32.mrf.mxu1 }
 0x5c4   : > { %v1942_v47 = vpop.f32.mrf.mxu0 }
 0x5c5   : > { %v1946_v48 = vsel %vm1483_vm3, %v1942_v47, -inf }
 0x5c6   : > { %1947 = vmax.xlane.f32.xlu1 %v1946_v48  ;;  %v8625_v49 = vpop.f32.mrf.mxu0 }
 0x5d7   : > { %2289 = vrot.lane.b32.xlu1 %v10223_v1, %s9876_s15 }
 0x5db   : > { %2192 = vrot.lane.b32.xlu1 %v10223_v1, %s9877_s0 }
 0x5df   : > { %2190 = vrot.lane.b32.xlu1 %v10231_v3, %s9877_s0 }
 0x5e3   : > { %2188 = vrot.lane.b32.xlu1 %v10225_v2, %s9877_s0 }
 0x5e7   : > { %2186 = vrot.lane.b32.xlu1 %v10233_v4, %s9877_s0 }
 0x5eb   : > { %2184 = vrot.lane.b32.xlu1 %v10247_v5, %s9877_s0 }
 0x5ef   : > { %2182 = vrot.lane.b32.xlu1 %v10249_v6, %s9877_s0 }
 0x5f3   : > { %2180 = vrot.lane.b32.xlu1 %v10261_v7, %s9877_s0 }
 0x5f7   : > { %2178 = vrot.lane.b32.xlu1 %v10263_v8, %s9877_s0 }
 0x5fb   : > { %2202 = vrot.lane.b32.xlu1 %v10280_v9, %s9877_s0 }
 0x5ff   : > { %2384 = vrot.lane.b32.xlu1 %v10297_v12, %s9877_s0 }
 0x603   : > { %2380 = vrot.lane.b32.xlu1 %v10307_v14, %s9877_s0 }
 0x607   : > { %2376 = vrot.lane.b32.xlu1 %v10315_v16, %s9877_s0 }
 0x60b   : > { %2372 = vrot.lane.b32.xlu1 %v10325_v18, %s9877_s0 }
 0x64f   : > { %v1948_v50 = vpop.xlane.xlu1 %1947 }
 0x650   : > { %v1949_v51 = vsub.f32 %v1942_v47, %v1948_v50 }
 0x652   : > { %v1950_v52 = vmul.f32 1.442695, %v1949_v51 }
 0x653   : > { %v2290_v57 = vpop.permute.xlu1 %2289 }
 0x654   : > { %9413 = vpow2.f32 %v1950_v52  ;;  %8665 = vmatpush3.msra.mxu1 %v2290_v57 }
 0x655   : > { %8666 = vmatprep.subr.mxu1 %v9871_v0 }
 0x657   : > { %v2193_v25 = vpop.permute.xlu1 %2192 }
 0x65b   : > { %v2191_v26 = vpop.permute.xlu1 %2190 }
 0x65f   : > { %v2189_v27 = vpop.permute.xlu1 %2188 }
 0x661   : > { %v9414_v53 = vpop.eup %9413 }
 0x662   : > { %v1952_v54 = vsel %vm1483_vm3, %v9414_v53, 0.0 }
 0x663   : > { %1953 = vadd.xlane.f32.xlu0 %v1952_v54  ;;  %v2187_v28 = vpop.permute.xlu1 %2186 }
 0x667   : > { %v2185_v30 = vpop.permute.xlu1 %2184 }
 0x66b   : > { %v2183_v32 = vpop.permute.xlu1 %2182 }
 0x66f   : > { %v2181_v34 = vpop.permute.xlu1 %2180 }
 0x673   : > { %v2179_v35 = vpop.permute.xlu1 %2178 }
 0x677   : > { %v2203_v42 = vpop.permute.xlu1 %2202 }
 0x679   : > { %1796 = vrot.lane.b32.xlu0 %v10346_v29, %s9875_s1 }
 0x67b   : > { %v2385_v49 = vpop.permute.xlu1 %2384 }
 0x67d   : > { %2287 = vrot.lane.b32.xlu0 %v10231_v3, %s9876_s15 }
 0x67f   : > { %v2381_v51 = vpop.permute.xlu1 %2380 }
 0x681   : > { %2285 = vrot.lane.b32.xlu0 %v10225_v2, %s9876_s15 }
 0x685   : > { %2283 = vrot.lane.b32.xlu0 %v10233_v4, %s9876_s15 }
 0x689   : > { %2281 = vrot.lane.b32.xlu0 %v10247_v5, %s9876_s15 }
 0x68d   : > { %2279 = vrot.lane.b32.xlu0 %v10249_v6, %s9876_s15 }
 0x691   : > { %2277 = vrot.lane.b32.xlu0 %v10261_v7, %s9876_s15 }
 0x695   : > { %2275 = vrot.lane.b32.xlu0 %v10263_v8, %s9876_s15 }
 0x699   : > { %2299 = vrot.lane.b32.xlu0 %v10280_v9, %s9876_s15  ;;  %s9883_s15 = smov 56  }
 0x69d   : > { %2386 = vrot.lane.b32.xlu0 %v10291_v11, %s9877_s0 }
 0x6a1   : > { %2382 = vrot.lane.b32.xlu0 %v10303_v13, %s9877_s0 }
 0x6a5   : > { %2378 = vrot.lane.b32.xlu0 %v10311_v15, %s9877_s0 }
 0x6a9   : > { %2374 = vrot.lane.b32.xlu0 %v10319_v17, %s9877_s0 }
 0x6ec   : > { %v1954_v55 = vpop.xlane.xlu0 %1953 }
 0x6ed   : > { %9415 = vrcp.f32 %v1954_v55 }
 0x6f0   : > { %v1797_v56 = vpop.permute.xlu0 %1796 }
 0x6f1   : > { %v1866_v58 = vadd.f32 %v1865_v43, %v1797_v56 }
 0x6f3   : > { %8627 = vmatpush3.msra.mxu0 %v1866_v58 }
 0x6f4   : > { %v2288_v59 = vpop.permute.xlu0 %2287  ;;  %8631 = vmatprep.subr.mxu0 %v9871_v0 }
 0x6f5   : > { %8667 = vmatpush3.msra.mxu1 %v2288_v59 }
 0x6f6   : > { %8668 = vmatprep.subr.mxu1 %v9871_v0 }
 0x6f8   : > { %v2286_v60 = vpop.permute.xlu0 %2285 }
 0x6f9   : > { %8669 = vmatpush3.msra.mxu1 %v2286_v60 }
 0x6fa   : > { %v9416_v61 = vpop.eup %9415  ;;  %8670 = vmatprep.subr.mxu1 %v9871_v0 }
 0x6fb   : > { %v1956_v62 = vmul.f32 %v9416_v61, %v9414_v53  ;;  %v2377_v53 = vpop.permute.xlu1 %2376 }
 0x6fc   : > { %v2284_v19 = vpop.permute.xlu0 %2283 }
 0x6fd   : > { %8629 = vmatmul.mubr.msk.f32.vlgmr.msra.gmra.mxu0 %vm1483_vm3, %v1956_v62  ;;  %8671 = vmatpush3.msra.mxu1 %v2284_v19 }
 0x6fe   : > { %8632 = vmatpush3.msra.mxu0 %v2031_v63  ;;  %8635 = vmatprep.mubr.msk.f32.mxu0 %vm9873_vm0, %v9871_v0 }
 0x6ff   : > { %8633 = vmatprep.subr.mxu0 %v9871_v0  ;;  %8672 = vmatprep.subr.mxu1 %v9871_v0  ;;  %v2373_v55 = vpop.permute.xlu1 %2372 }
 0x700   : > { %8634 = vmatpush3.msra.mxu0 %v2030_v20  ;;  %v2282_v21 = vpop.permute.xlu0 %2281 }
 0x701   : > { %8645 = vmatprep.subr.mxu0 %v9871_v0  ;;  %8673 = vmatpush3.msra.mxu1 %v2282_v21 }
 0x702   : > { %8674 = vmatprep.subr.mxu1 %v9871_v0 }
 0x704   : > { %v2280_v22 = vpop.permute.xlu0 %2279 }
 0x705   : > { %8675 = vmatpush3.msra.mxu1 %v2280_v22 }
 0x706   : > { %8676 = vmatprep.subr.mxu1 %v9871_v0 }
 0x708   : > { %v2278_v23 = vpop.permute.xlu0 %2277 }
 0x709   : > { %8677 = vmatpush3.msra.mxu1 %v2278_v23 }
 0x70a   : > { %8678 = vmatprep.subr.mxu1 %v9871_v0 }
 0x70c   : > { %v2276_v24 = vpop.permute.xlu0 %2275 }
 0x70d   : > { %8679 = vmatpush3.msra.mxu1 %v2276_v24 }
 0x70e   : > { %8681 = vmatmul.mubr.msk.f32.vlgmr.msra.gmra.mxu1 %vm1141_vm1, %v10286_v10  ;;  %8702 = vmatprep.subr.mxu1 %v9871_v0 }
 0x70f   : > { %8704 = vmatprep.mubr.msk.f32.mxu1 %vm9873_vm0, %v9871_v0 }
 0x710   : > { %v2300_v36 = vpop.permute.xlu0 %2299 }
 0x714   : > { %v2387_v48 = vpop.permute.xlu0 %2386 }
 0x718   : > { %v2383_v50 = vpop.permute.xlu0 %2382 }
 0x71c   : > { %v2379_v52 = vpop.permute.xlu0 %2378 }
 0x720   : > { %v2375_v54 = vpop.permute.xlu0 %2374 }
 0x7bd   : > { %v2026_v31 = vpop.f32.mrf.mxu0 }
 0x7be   : > { %8636 = vmatmul.mubr.msk.f32.vlgmr.msra.gmra.mxu0 %vm1406_vm2, %v2026_v31 }
 0x7bf   : > { %8646 = vmatpush3.msra.mxu0 %v2193_v25  ;;  %v8630_v33 = vpop.f32.mrf.mxu0  ;;  %8661 = vmatprep.mubr.msk.f32.mxu0 %vm9873_vm0, %v9871_v0 }
 0x7c0   : > { %8647 = vmatprep.subr.mxu0 %v9871_v0 }
 0x7c1   : > { %8648 = vmatpush3.msra.mxu0 %v2191_v26 }
 0x7c2   : > { %8649 = vmatprep.subr.mxu0 %v9871_v0 }
 0x7c3   : > { %8650 = vmatpush3.msra.mxu0 %v2189_v27 }
 0x7c4   : > { %8651 = vmatprep.subr.mxu0 %v9871_v0 }
 0x7c5   : > { %8652 = vmatpush3.msra.mxu0 %v2187_v28 }
 0x7c6   : > { %8653 = vmatprep.subr.mxu0 %v9871_v0 }
 0x7c7   : > { %8654 = vmatpush3.msra.mxu0 %v2185_v30 }
 0x7c8   : > { %8655 = vmatprep.subr.mxu0 %v9871_v0 }
 0x7c9   : > { %8656 = vmatpush3.msra.mxu0 %v2183_v32 }
 0x7ca   : > { %8657 = vmatprep.subr.mxu0 %v9871_v0 }
 0x7cb   : > { %8658 = vmatpush3.msra.mxu0 %v2181_v34 }
 0x7cc   : > { %8659 = vmatprep.subr.mxu0 %v9871_v0 }
 0x7cd   : > { %8660 = vmatpush3.msra.mxu0 %v2179_v35 }
 0x7ce   : > { %8662 = vmatmul.mubr.msk.f32.vlgmr.msra.gmra.mxu0 %vm1141_vm1, %v10286_v10  ;;  %8683 = vmatprep.subr.mxu0 %v9871_v0  ;;  %v2368_v37 = vpop.f32.mrf.mxu1 }
 0x7cf   : > { %8699 = vmatprep.mubr.msk.f32.mxu0 %vm9873_vm0, %v9871_v0  ;;  %v2369_v38 = vadd.f32 %v2368_v37, %v2300_v36  ;;  %8684 = vmatpush3.msra.mxu0 %v2387_v48 }
 0x7d0   : > { %v8682_v39 = vpop.f32.mrf.mxu1  ;;  %8685 = vmatprep.subr.mxu0 %v9871_v0 }
 0x7d1   : > { %8703 = vmatpush3.xpose.msk.msra.mxu1 %vm1406_vm2, %v2369_v38  ;;  %8686 = vmatpush3.msra.mxu0 %v2385_v49 }
 0x7d2   : > { %8707 = vmatprep.subr.mxu1 %v9871_v0  ;;  %8687 = vmatprep.subr.mxu0 %v9871_v0 }
 0x7d3   : > { %8688 = vmatpush3.msra.mxu0 %v2383_v50  ;;  %v9475_v50 = vld [vmem:[%s10277_s18] sm:$0xff]  ;;  %s9882_s18 = smov 120  }
 0x7d4   : > { %8689 = vmatprep.subr.mxu0 %v9871_v0 }
 0x7d5   : > { %8690 = vmatpush3.msra.mxu0 %v2381_v51 }
 0x7d6   : > { %8691 = vmatprep.subr.mxu0 %v9871_v0 }
 0x7d7   : > { %8692 = vmatpush3.msra.mxu0 %v2379_v52 }
 0x7d8   : > { %8693 = vmatprep.subr.mxu0 %v9871_v0 }
 0x7d9   : > { %8694 = vmatpush3.msra.mxu0 %v2377_v53 }
 0x7da   : > { %8695 = vmatprep.subr.mxu0 %v9871_v0 }
 0x7db   : > { %8696 = vmatpush3.msra.mxu0 %v2375_v54 }
 0x7dc   : > { %8697 = vmatprep.subr.mxu0 %v9871_v0 }
 0x7dd   : > { %8698 = vmatpush3.msra.mxu0 %v2373_v55 }
 0x7de   : > { %8700 = vmatmul.mubr.msk.f32.vlgmr.msra.gmra.mxu0 %vm1141_vm1, %v10286_v10  ;;  %8738 = vmatprep.subr.mxu0 %v9871_v0 }
 0x7df   : > { %8754 = vmatprep.mubr.msk.f32.mxu0 %vm9873_vm0, %v9871_v0 }
 0x87e   : > { %v10543_v40 = vpop.f32.mrf.mxu0 }
 0x87f   : > { %v2175_v34 = vadd.f32 %v10459_v45, %v10543_v40 }
 0x880   : > { %v8637_v41 = vpop.f32.mrf.mxu0 }
 0x88e   : > { %v2271_v43 = vpop.f32.mrf.mxu0 }
 0x88f   : > { %v2272_v44 = vadd.f32 %v2271_v43, %v2203_v42 }
 0x890   : > { %v8663_v46 = vpop.f32.mrf.mxu0 }
 0x891   : > { %v2469_v47 = vmul.f32 0.25, %v2272_v44 }
 0x893   : > { %8705 = vmatmul.mubr.msk.f32.vlgmr.msra.gmra.mxu1 %vm1406_vm2, %v2469_v47 }
 0x894   : > { %8709 = vmatprep.mubr.msk.f32.mxu1 %vm9873_vm0, %v9871_v0 }
 0x89e   : > { %v2465_v19 = vpop.f32.mrf.mxu0 }
 0x8a0   : > { %v8701_v22 = vpop.f32.mrf.mxu0 }
 0x953   : > { %v2542_v56 = vpop.f32.mrf.mxu1 }
 0x954   : > { %v2546_v57 = vsel %vm1483_vm3, %v2542_v56, -inf }
 0x955   : > { %2547 = vmax.xlane.f32.xlu0 %v2546_v57  ;;  %v8706_v58 = vpop.f32.mrf.mxu1 }
 0x96b   : > { %2396 = vrot.lane.b32.xlu0 %v10346_v29, %s9877_s0 }
 0x96f   : > { %2720 = vrot.lane.b32.xlu0 %v10223_v1, %s9879_s6 }
 0x973   : > { %2718 = vrot.lane.b32.xlu0 %v10231_v3, %s9879_s6 }
 0x977   : > { %2716 = vrot.lane.b32.xlu0 %v10225_v2, %s9879_s6 }
 0x97b   : > { %2714 = vrot.lane.b32.xlu0 %v10233_v4, %s9879_s6 }
 0x97f   : > { %2712 = vrot.lane.b32.xlu0 %v10247_v5, %s9879_s6 }
 0x983   : > { %2710 = vrot.lane.b32.xlu0 %v10249_v6, %s9879_s6 }
 0x987   : > { %2708 = vrot.lane.b32.xlu0 %v10261_v7, %s9879_s6 }
 0x98b   : > { %2706 = vrot.lane.b32.xlu0 %v10263_v8, %s9879_s6 }
 0x98f   : > { %2730 = vrot.lane.b32.xlu0 %v10280_v9, %s9879_s6 }
 0x993   : > { %2912 = vrot.lane.b32.xlu0 %v10297_v12, %s9879_s6 }
 0x997   : > { %2908 = vrot.lane.b32.xlu0 %v10307_v14, %s9879_s6 }
 0x99b   : > { %2904 = vrot.lane.b32.xlu0 %v10315_v16, %s9879_s6 }
 0x99f   : > { %2900 = vrot.lane.b32.xlu0 %v10325_v18, %s9879_s6 }
 0x9de   : > { %v2548_v59 = vpop.xlane.xlu0 %2547 }
 0x9df   : > { %v2549_v60 = vsub.f32 %v2542_v56, %v2548_v59 }
 0x9e1   : > { %v2550_v61 = vmul.f32 1.442695, %v2549_v60 }
 0x9e2   : > { %v2397_v20 = vpop.permute.xlu0 %2396 }
 0x9e3   : > { %9417 = vpow2.f32 %v2550_v61  ;;  %v2466_v21 = vadd.f32 %v2465_v19, %v2397_v20 }
 0x9e5   : > { %8708 = vmatpush3.msra.mxu1 %v2466_v21  ;;  %v3159_v21 = vld [vmem:[#allocation4 + $0x38] sm:$0xff] }
 0x9e6   : > { %8712 = vmatprep.subr.mxu1 %v9871_v0 }
 0x9f0   : > { %v9418_v62 = vpop.eup %9417 }
 0x9f1   : > { %v2552_v63 = vsel %vm1483_vm3, %v9418_v62, 0.0 }
 0x9f2   : > { %2553 = vadd.xlane.f32.xlu1 %v2552_v63 }
 0xa03   : > { %2817 = vrot.lane.b32.xlu1 %v10223_v1, %s9878_s10 }
 0xa07   : > { %2815 = vrot.lane.b32.xlu1 %v10231_v3, %s9878_s10 }
 0xa0b   : > { %2813 = vrot.lane.b32.xlu1 %v10225_v2, %s9878_s10 }
 0xa0f   : > { %2811 = vrot.lane.b32.xlu1 %v10233_v4, %s9878_s10 }
 0xa13   : > { %2809 = vrot.lane.b32.xlu1 %v10247_v5, %s9878_s10 }
 0xa17   : > { %2807 = vrot.lane.b32.xlu1 %v10249_v6, %s9878_s10 }
 0xa1b   : > { %2805 = vrot.lane.b32.xlu1 %v10261_v7, %s9878_s10  ;;  %v2631_v7 = vld [vmem:[#allocation4 + $0x28] sm:$0xff] }
 0xa1f   : > { %2803 = vrot.lane.b32.xlu1 %v10263_v8, %s9878_s10 }
 0xa23   : > { %2827 = vrot.lane.b32.xlu1 %v10280_v9, %s9878_s10  ;;  %v2630_v9 = vld [vmem:[#allocation4 + $0x20] sm:$0xff]  ;;  %s9884_s10 = smov 72  }
 0xa27   : > { %2914 = vrot.lane.b32.xlu1 %v10291_v11, %s9879_s6 }
 0xa2b   : > { %2910 = vrot.lane.b32.xlu1 %v10303_v13, %s9879_s6 }
 0xa2f   : > { %2906 = vrot.lane.b32.xlu1 %v10311_v15, %s9879_s6  ;;  %v2721_v15 = vpop.permute.xlu0 %2720 }
 0xa33   : > { %2902 = vrot.lane.b32.xlu1 %v10319_v17, %s9879_s6  ;;  %v2719_v16 = vpop.permute.xlu0 %2718 }
 0xa37   : > { %v2717_v17 = vpop.permute.xlu0 %2716 }
 0xa3b   : > { %v2715_v18 = vpop.permute.xlu0 %2714 }
 0xa3f   : > { %v2713_v23 = vpop.permute.xlu0 %2712 }
 0xa43   : > { %v2711_v25 = vpop.permute.xlu0 %2710 }
 0xa47   : > { %v2709_v27 = vpop.permute.xlu0 %2708 }
 0xa4b   : > { %v2707_v28 = vpop.permute.xlu0 %2706 }
 0xa4f   : > { %v2731_v37 = vpop.permute.xlu0 %2730 }
 0xa53   : > { %v2913_v44 = vpop.permute.xlu0 %2912 }
 0xa57   : > { %v2909_v40 = vpop.permute.xlu0 %2908 }
 0xa5b   : > { %v2905_v47 = vpop.permute.xlu0 %2904 }
 0xa5f   : > { %v2901_v49 = vpop.permute.xlu0 %2900 }
 0xa7b   : > { %v2554_v1 = vpop.xlane.xlu1 %2553 }
 0xa7c   : > { %9419 = vrcp.f32 %v2554_v1 }
 0xa7f   : > { %v2818_v2 = vpop.permute.xlu1 %2817 }
 0xa80   : > { %8739 = vmatpush3.msra.mxu0 %v2818_v2 }
 0xa81   : > { %8740 = vmatprep.subr.mxu0 %v9871_v0 }
 0xa83   : > { %v2816_v3 = vpop.permute.xlu1 %2815 }
 0xa84   : > { %8741 = vmatpush3.msra.mxu0 %v2816_v3  ;;  %v8088_v3 = vld [vmem:[%s9921_s21] ss:$0 sm:$0xff] }
 0xa85   : > { %8742 = vmatprep.subr.mxu0 %v9871_v0 }
 0xa87   : > { %v2814_v4 = vpop.permute.xlu1 %2813 }
 0xa88   : > { %8743 = vmatpush3.msra.mxu0 %v2814_v4 }
 0xa89   : > { %v9420_v5 = vpop.eup %9419  ;;  %8744 = vmatprep.subr.mxu0 %v9871_v0 }
 0xa8a   : > { %v2556_v6 = vmul.f32 %v9420_v5, %v9418_v62 }
 0xa8b   : > { %v2812_v8 = vpop.permute.xlu1 %2811 }
 0xa8c   : > { %8710 = vmatmul.mubr.msk.f32.vlgmr.msra.gmra.mxu1 %vm1483_vm3, %v2556_v6  ;;  %8745 = vmatpush3.msra.mxu0 %v2812_v8 }
 0xa8d   : > { %8713 = vmatpush3.msra.mxu1 %v2631_v7  ;;  %8716 = vmatprep.mubr.msk.f32.mxu1 %vm9873_vm0, %v9871_v0 }
 0xa8e   : > { %8714 = vmatprep.subr.mxu1 %v9871_v0  ;;  %8746 = vmatprep.subr.mxu0 %v9871_v0 }
 0xa8f   : > { %v2810_v11 = vpop.permute.xlu1 %2809  ;;  %8715 = vmatpush3.msra.mxu1 %v2630_v9 }
 0xa90   : > { %8719 = vmatprep.subr.mxu1 %v9871_v0  ;;  %8747 = vmatpush3.msra.mxu0 %v2810_v11 }
 0xa91   : > { %8748 = vmatprep.subr.mxu0 %v9871_v0 }
 0xa93   : > { %v2808_v12 = vpop.permute.xlu1 %2807 }
 0xa94   : > { %8749 = vmatpush3.msra.mxu0 %v2808_v12 }
 0xa95   : > { %8750 = vmatprep.subr.mxu0 %v9871_v0 }
 0xa97   : > { %v2806_v13 = vpop.permute.xlu1 %2805 }
 0xa98   : > { %8751 = vmatpush3.msra.mxu0 %v2806_v13 }
 0xa99   : > { %8752 = vmatprep.subr.mxu0 %v9871_v0 }
 0xa9b   : > { %v2804_v14 = vpop.permute.xlu1 %2803 }
 0xa9c   : > { %8753 = vmatpush3.msra.mxu0 %v2804_v14 }
 0xa9d   : > { %8755 = vmatmul.mubr.msk.f32.vlgmr.msra.gmra.mxu0 %vm1141_vm1, %v10286_v10  ;;  %8776 = vmatprep.subr.mxu0 %v9871_v0 }
 0xa9e   : > { %8778 = vmatprep.mubr.msk.f32.mxu0 %vm9873_vm0, %v9871_v0 }
 0xa9f   : > { %v2828_v30 = vpop.permute.xlu1 %2827 }
 0xaa3   : > { %v2915_v43 = vpop.permute.xlu1 %2914 }
 0xaa7   : > { %v2911_v45 = vpop.permute.xlu1 %2910 }
 0xaab   : > { %v2907_v46 = vpop.permute.xlu1 %2906 }
 0xaaf   : > { %v2903_v48 = vpop.permute.xlu1 %2902 }
 0xb4c   : > { %v2626_v24 = vpop.f32.mrf.mxu1 }
 0xb4d   : > { %8717 = vmatmul.mubr.msk.f32.vlgmr.msra.gmra.mxu1 %vm1406_vm2, %v2626_v24  ;;  %v3275_v24 = vld [vmem:[#allocation6 + $0x10] sm:$0xff] }
 0xb4e   : > { %8720 = vmatpush3.msra.mxu1 %v2721_v15  ;;  %v8711_v26 = vpop.f32.mrf.mxu1  ;;  %8735 = vmatprep.mubr.msk.f32.mxu1 %vm9873_vm0, %v9871_v0  ;;  %v3280_v15 = vld [vmem:[#allocation6 + $0x38] sm:$0xff] }
 0xb4f   : > { %8721 = vmatprep.subr.mxu1 %v9871_v0  ;;  %v3273_v26 = vld [vmem:[#allocation6] sm:$0xff] }
 0xb50   : > { %8722 = vmatpush3.msra.mxu1 %v2719_v16  ;;  %v3279_v16 = vld [vmem:[#allocation6 + $0x30] sm:$0xff] }
 0xb51   : > { %8723 = vmatprep.subr.mxu1 %v9871_v0 }
 0xb52   : > { %8724 = vmatpush3.msra.mxu1 %v2717_v17  ;;  %v3278_v17 = vld [vmem:[#allocation6 + $0x28] sm:$0xff] }
 0xb53   : > { %8725 = vmatprep.subr.mxu1 %v9871_v0 }
 0xb54   : > { %8726 = vmatpush3.msra.mxu1 %v2715_v18  ;;  %v3277_v18 = vld [vmem:[#allocation6 + $0x20] sm:$0xff] }
 0xb55   : > { %8727 = vmatprep.subr.mxu1 %v9871_v0 }
 0xb56   : > { %8728 = vmatpush3.msra.mxu1 %v2713_v23  ;;  %v3276_v23 = vld [vmem:[#allocation6 + $0x18] sm:$0xff] }
 0xb57   : > { %8729 = vmatprep.subr.mxu1 %v9871_v0 }
 0xb58   : > { %8730 = vmatpush3.msra.mxu1 %v2711_v25  ;;  %v3274_v25 = vld [vmem:[#allocation6 + $0x8] sm:$0xff] }
 0xb59   : > { %8731 = vmatprep.subr.mxu1 %v9871_v0 }
 0xb5a   : > { %8732 = vmatpush3.msra.mxu1 %v2709_v27 }
 0xb5b   : > { %8733 = vmatprep.subr.mxu1 %v9871_v0 }
 0xb5c   : > { %8734 = vmatpush3.msra.mxu1 %v2707_v28 }
 0xb5d   : > { %8736 = vmatmul.mubr.msk.f32.vlgmr.msra.gmra.mxu1 %vm1141_vm1, %v10286_v10  ;;  %8757 = vmatprep.subr.mxu1 %v9871_v0  ;;  %v2896_v31 = vpop.f32.mrf.mxu0 }
 0xb5e   : > { %8773 = vmatprep.mubr.msk.f32.mxu1 %vm9873_vm0, %v9871_v0  ;;  %v2897_v32 = vadd.f32 %v2896_v31, %v2828_v30  ;;  %8758 = vmatpush3.msra.mxu1 %v2915_v43  ;;  %v3389_v43 = vld [vmem:[#allocation7 + $0x8] sm:$0xff] }
 0xb5f   : > { %v8756_v33 = vpop.f32.mrf.mxu0  ;;  %8759 = vmatprep.subr.mxu1 %v9871_v0 }
 0xb60   : > { %8777 = vmatpush3.xpose.msk.msra.mxu0 %vm1406_vm2, %v2897_v32  ;;  %8760 = vmatpush3.msra.mxu1 %v2913_v44  ;;  %v8089_v32 = vld [vmem:[%s9926_s25] ss:$0 sm:$0xff] }
 0xb61   : > { %8781 = vmatprep.subr.mxu0 %v9871_v0  ;;  %8761 = vmatprep.subr.mxu1 %v9871_v0  ;;  %v3388_v44 = vld [vmem:[#allocation7] sm:$0xff] }
 0xb62   : > { %8762 = vmatpush3.msra.mxu1 %v2911_v45  ;;  %v10698_v45 = vld [vmem:[#allocation9 + $0x10] sm:$0xff] }
 0xb63   : > { %8763 = vmatprep.subr.mxu1 %v9871_v0 }
 0xb64   : > { %8764 = vmatpush3.msra.mxu1 %v2909_v40  ;;  %v10700_v40 = vld [vmem:[#allocation9 + $0x18] sm:$0xff] }
 0xb65   : > { %8765 = vmatprep.subr.mxu1 %v9871_v0 }
 0xb66   : > { %8766 = vmatpush3.msra.mxu1 %v2907_v46  ;;  %v10707_v46 = vld [vmem:[#allocation9 + $0x8] sm:$0xff] }
 0xb67   : > { %8767 = vmatprep.subr.mxu1 %v9871_v0 }
 0xb68   : > { %8768 = vmatpush3.msra.mxu1 %v2905_v47  ;;  %v10709_v47 = vld [vmem:[#allocation9] sm:$0xff] }
 0xb69   : > { %8769 = vmatprep.subr.mxu1 %v9871_v0 }
 0xb6a   : > { %8770 = vmatpush3.msra.mxu1 %v2903_v48  ;;  %v10719_v48 = vld [vmem:[%s11309_s23] ss:$0 sm:$0xff]  ;;  %s11313_s23 = sld [smem:[#allocation34_spill]] }
 0xb6b   : > { %8771 = vmatprep.subr.mxu1 %v9871_v0 }
 0xb6c   : > { %8772 = vmatpush3.msra.mxu1 %v2901_v49  ;;  %v8091_v49 = vld [vmem:[%s11310_s8] ss:$0 sm:$0xff]  ;;  %s11314_s8 = sld [smem:[#allocation35_spill]] }
 0xb6d   : > { %8774 = vmatmul.mubr.msk.f32.vlgmr.msra.gmra.mxu1 %vm1141_vm1, %v9475_v50  ;;  %8812 = vmatprep.subr.mxu1 %v9871_v0 }
 0xb6e   : > { %8828 = vmatprep.mubr.msk.f32.mxu1 %vm9873_vm0, %v9871_v0 }
 0xc0d   : > { %v2701_v35 = vpop.f32.mrf.mxu1 }
 0xc0e   : > { %v10644_v36 = vadd.f32 %v2701_v35, %v2175_v34  ;;  %v8090_v34 = vld [vmem:[%s11308_s2] ss:$0 sm:$0xff]  ;;  %s9886_s2 = smov 40  }
 0xc0f   : > { %v8718_v10 = vpop.f32.mrf.mxu1 }
 0xc10   : > { %v3395_v10 = vld [vmem:[#allocation7 + $0x38] sm:$0xff] }
 0xc11   : > { %8813 = vmatpush3.msra.mxu1 %v3395_v10 }
 0xc12   : > { %8814 = vmatprep.subr.mxu1 %v9871_v0 }
 0xc1d   : > { %v2799_v38 = vpop.f32.mrf.mxu1 }
 0xc1e   : > { %v2800_v39 = vadd.f32 %v2799_v38, %v2731_v37  ;;  %v3394_v37 = vld [vmem:[#allocation7 + $0x30] sm:$0xff]  ;;  %v3393_v38 = vld [vmem:[#allocation7 + $0x28] sm:$0xff] }
 0xc1f   : > { %v8737_v41 = vpop.f32.mrf.mxu1  ;;  %8815 = vmatpush3.msra.mxu1 %v3394_v37 }
 0xc20   : > { %v2997_v42 = vmul.f32 0.25, %v2800_v39  ;;  %8816 = vmatprep.subr.mxu1 %v9871_v0  ;;  %v3392_v39 = vld [vmem:[#allocation7 + $0x20] sm:$0xff]  ;;  %v3391_v41 = vld [vmem:[#allocation7 + $0x18] sm:$0xff] }
 0xc21   : > { %8817 = vmatpush3.msra.mxu1 %v3393_v38 }
 0xc22   : > { %8779 = vmatmul.mubr.msk.f32.vlgmr.msra.gmra.mxu0 %vm1406_vm2, %v2997_v42  ;;  %8818 = vmatprep.subr.mxu1 %v9871_v0  ;;  %v3390_v42 = vld [vmem:[#allocation7 + $0x10] sm:$0xff] }
 0xc23   : > { %8783 = vmatprep.mubr.msk.f32.mxu0 %vm9873_vm0, %v9871_v0  ;;  %8819 = vmatpush3.msra.mxu1 %v3392_v39 }
 0xc24   : > { %8820 = vmatprep.subr.mxu1 %v9871_v0 }
 0xc25   : > { %8821 = vmatpush3.msra.mxu1 %v3391_v41 }
 0xc26   : > { %8822 = vmatprep.subr.mxu1 %v9871_v0 }
 0xc27   : > { %8823 = vmatpush3.msra.mxu1 %v3390_v42 }
 0xc28   : > { %8824 = vmatprep.subr.mxu1 %v9871_v0 }
 0xc29   : > { %8825 = vmatpush3.msra.mxu1 %v3389_v43 }
 0xc2a   : > { %8826 = vmatprep.subr.mxu1 %v9871_v0 }
 0xc2b   : > { %8827 = vmatpush3.msra.mxu1 %v3388_v44 }
 0xc2c   : > { %8842 = vmatprep.subr.mxu1 %v9871_v0 }
 0xc2d   : > { %v2993_v59 = vpop.f32.mrf.mxu1 }
 0xc2f   : > { %v8775_v60 = vpop.f32.mrf.mxu1 }
 0xce2   : > { %v3070_v51 = vpop.f32.mrf.mxu0 }
 0xce3   : > { %v3074_v52 = vsel %vm1483_vm3, %v3070_v51, -inf }
 0xce4   : > { %3075 = vmax.xlane.f32.xlu1 %v3074_v52  ;;  %v8780_v53 = vpop.f32.mrf.mxu0 }
 0xd6d   : > { %v3076_v54 = vpop.xlane.xlu1 %3075 }
 0xd6e   : > { %v3077_v55 = vsub.f32 %v3070_v51, %v3076_v54 }
 0xd70   : > { %v3078_v56 = vmul.f32 1.442695, %v3077_v55 }
 0xd72   : > { %9421 = vpow2.f32 %v3078_v56 }
 0xd7f   : > { %v9422_v57 = vpop.eup %9421 }
 0xd80   : > { %v3080_v58 = vsel %vm1483_vm3, %v9422_v57, 0.0 }
 0xd81   : > { %3081 = vadd.xlane.f32.xlu0 %v3080_v58 }
 0xd97   : > { %2924 = vrot.lane.b32.xlu0 %v10346_v29, %s9879_s6  ;;  %v3158_v29 = vld [vmem:[#allocation4 + $0x30] sm:$0xff] }
 0xd9b   : > { %3569 = vrot.lane.b32.xlu0 %v10698_v45, %s9877_s0 }
 0xd9f   : > { %3567 = vrot.lane.b32.xlu0 %v10707_v46, %s9877_s0 }
 0xda3   : > { %3577 = vrot.lane.b32.xlu0 %v10719_v48, %s9877_s0 }
 0xda7   : > { %3654 = vrot.lane.b32.xlu0 %v10698_v45, %s9872_s28 }
 0xdab   : > { %3650 = vrot.lane.b32.xlu0 %v10709_v47, %s9872_s28 }
 0xdaf   : > { %3662 = vrot.lane.b32.xlu0 %v10719_v48, %s9872_s28 }
 0xe0a   : > { %v3082_v61 = vpop.xlane.xlu0 %3081 }
 0xe0b   : > { %9423 = vrcp.f32 %v3082_v61 }
 0xe0e   : > { %v2925_v62 = vpop.permute.xlu0 %2924 }
 0xe0f   : > { %v2994_v63 = vadd.f32 %v2993_v59, %v2925_v62 }
 0xe11   : > { %8782 = vmatpush3.msra.mxu0 %v2994_v63 }
 0xe12   : > { %8786 = vmatprep.subr.mxu0 %v9871_v0 }
 0xe18   : > { %v9424_v19 = vpop.eup %9423 }
 0xe19   : > { %v3084_v20 = vmul.f32 %v9424_v19, %v9422_v57 }
 0xe1b   : > { %8784 = vmatmul.mubr.msk.f32.vlgmr.msra.gmra.mxu0 %vm1483_vm3, %v3084_v20 }
 0xe1c   : > { %8787 = vmatpush3.msra.mxu0 %v3159_v21  ;;  %8790 = vmatprep.mubr.msk.f32.mxu0 %vm9873_vm0, %v9871_v0 }
 0xe1d   : > { %8788 = vmatprep.subr.mxu0 %v9871_v0 }
 0xe1e   : > { %8789 = vmatpush3.msra.mxu0 %v3158_v29 }
 0xe1f   : > { %8793 = vmatprep.subr.mxu0 %v9871_v0 }
 0xedb   : > { %v3154_v22 = vpop.f32.mrf.mxu0 }
 0xedc   : > { %8791 = vmatmul.mubr.msk.f32.vlgmr.msra.gmra.mxu0 %vm1406_vm2, %v3154_v22 }
 0xedd   : > { %v8785_v1 = vpop.f32.mrf.mxu0  ;;  %8809 = vmatprep.mubr.msk.f32.mxu0 %vm9873_vm0, %v9871_v0  ;;  %8794 = vmatpush3.msra.mxu0 %v3280_v15 }
 0xede   : > { %8795 = vmatprep.subr.mxu0 %v9871_v0 }
 0xedf   : > { %8796 = vmatpush3.msra.mxu0 %v3279_v16 }
 0xee0   : > { %8797 = vmatprep.subr.mxu0 %v9871_v0 }
 0xee1   : > { %8798 = vmatpush3.msra.mxu0 %v3278_v17  ;;  %v8093_v17 = vld [vmem:[%s11311_s16] ss:$0 sm:$0xff]  ;;  %s11315_s16 = sld [smem:[#allocation38_spill]] }
 0xee2   : > { %8799 = vmatprep.subr.mxu0 %v9871_v0 }
 0xee3   : > { %8800 = vmatpush3.msra.mxu0 %v3277_v18 }
 0xee4   : > { %8801 = vmatprep.subr.mxu0 %v9871_v0 }
 0xee5   : > { %8802 = vmatpush3.msra.mxu0 %v3276_v23 }
 0xee6   : > { %8803 = vmatprep.subr.mxu0 %v9871_v0 }
 0xee7   : > { %8804 = vmatpush3.msra.mxu0 %v3275_v24 }
 0xee8   : > { %8805 = vmatprep.subr.mxu0 %v9871_v0 }
 0xee9   : > { %8806 = vmatpush3.msra.mxu0 %v3274_v25 }
 0xeea   : > { %8807 = vmatprep.subr.mxu0 %v9871_v0 }
 0xeeb   : > { %8808 = vmatpush3.msra.mxu0 %v3273_v26 }
 0xeec   : > { %8831 = vmatprep.subr.mxu0 %v9871_v0 }
 0xf9c   : > { %v3229_v2 = vpop.f32.mrf.mxu0 }
 0xf9d   : > { %v3233_v4 = vadd.f32 %v3229_v2, %v10644_v36 }
 0xf9e   : > { %v8792_v5 = vpop.f32.mrf.mxu0 }
 0xf9f   : > { %v3241_v6 = vadd.f32 %v8088_v3, %v3233_v4  ;;  %v9880_v5 = vmov -1.0  }
 0xfa1   : > { %v3242_v7 = vadd.f32 %v9475_v50, %v3241_v6 }
 0xfa3   : > { %v3243_v8 = vsel %vm1141_vm1, %v3242_v7, 0.0 }
 0xfa4   : > { %3244 = vadd.xlane.f32.xlu1 %v3243_v8 }
0x102d   : > { %v3245_v9 = vpop.xlane.xlu1 %3244 }
0x102e   : > { %v3247_v11 = vmul.f32 0.015625, %v3245_v9 }
0x1030   : > { %v3248_v12 = vsub.f32 %v3242_v7, %v3247_v11 }
0x1032   : > { %v3249_v13 = vmul.f32 %v3248_v12, %v3248_v12 }
0x1034   : > { %v3250_v14 = vsel %vm1141_vm1, %v3249_v13, 0.0 }
0x1035   : > { %3251 = vadd.xlane.f32.xlu1 %v3250_v14 }
0x1046   : > { %3571 = vrot.lane.b32.xlu1 %v10700_v40, %s9877_s0 }
0x104a   : > { %3565 = vrot.lane.b32.xlu1 %v10709_v47, %s9877_s0 }
0x104e   : > { %3656 = vrot.lane.b32.xlu1 %v10700_v40, %s9872_s28 }
0x1052   : > { %3652 = vrot.lane.b32.xlu1 %v10707_v46, %s9872_s28  ;;  %s9881_s28 = smov 88  }
0x1053   : > { %3986 = vrot.lane.b32.xlu0 %v10698_v45, %s9881_s28 }
0x10be   : > { %v3252_v27 = vpop.xlane.xlu1 %3251 }
0x10bf   : > { %v3253_v28 = vmul.f32 0.015625, %v3252_v27 }
0x10c1   : > { %v3254_v30 = vadd.f32 1e-05, %v3253_v28 }
0x10c2   : > { %v3572_v13 = vpop.permute.xlu1 %3571 }
0x10c3   : > { %9425 = vrsqrt.f32 %v3254_v30 }
0x10c6   : > { %v3566_v15 = vpop.permute.xlu1 %3565 }
0x10ca   : > { %v3657_v18 = vpop.permute.xlu1 %3656 }
0x10ce   : > { %v3653_v27 = vpop.permute.xlu1 %3652 }
0x10d0   : > { %v9426_v31 = vpop.eup %9425 }
0x10d1   : > { %v3256_v33 = vmul.f32 %v9426_v31, %v3248_v12  ;;  %v3570_v12 = vpop.permute.xlu0 %3569 }
0x10d3   : > { %v3264_v35 = vmul.f32 %v8089_v32, %v3256_v33 }
0x10d5   : > { %v3272_v36 = vadd.f32 %v8090_v34, %v3264_v35  ;;  %v3568_v14 = vpop.permute.xlu0 %3567 }
0x10d7   : > { %8810 = vmatmul.mubr.msk.f32.vlgmr.msra.gmra.mxu0 %vm1141_vm1, %v3272_v36 }
0x10d8   : > { %8839 = vmatprep.mubr.msk.f32.mxu0 %vm9873_vm0, %v9871_v0  ;;  %8832 = vmatpush3.msra.mxu0 %v10700_v40 }
0x10d9   : > { %8833 = vmatprep.subr.mxu0 %v9871_v0  ;;  %v3578_v16 = vpop.permute.xlu0 %3577 }
0x10da   : > { %8834 = vmatpush3.msra.mxu0 %v10698_v45 }
0x10db   : > { %8835 = vmatprep.subr.mxu0 %v9871_v0 }
0x10dc   : > { %8836 = vmatpush3.msra.mxu0 %v10707_v46 }
0x10dd   : > { %8837 = vmatprep.subr.mxu0 %v9871_v0  ;;  %v3655_v25 = vpop.permute.xlu0 %3654 }
0x10de   : > { %8838 = vmatpush3.msra.mxu0 %v10709_v47 }
0x10df   : > { %8853 = vmatprep.subr.mxu0 %v9871_v0 }
0x10e1   : > { %v3651_v28 = vpop.permute.xlu0 %3650 }
0x10e5   : > { %v3663_v10 = vpop.permute.xlu0 %3662 }
0x1197   : > { %v3357_v50 = vpop.f32.mrf.mxu0 }
0x1198   : > { %v3358_v51 = vadd.f32 %v8091_v49, %v3357_v50 }
0x1199   : > { %v8811_v52 = vpop.f32.mrf.mxu0 }
0x119a   : > { %v3362_v53 = vmul.f32 0.70710677, %v3358_v51  ;;  %v3361_v8 = vmul.f32 0.5, %v3358_v51 }
0x119c   : > { %v3365_v54 = vand.u32 2147483647, %v3362_v53  ;;  %vm3363_vm4 = vcmp.ge.f32.partialorder %v3362_v53, 0.0 }
0x119d   : > { %v3364_v6 = vsel %vm3363_vm4, 1.0, %v9880_v5 }
0x119e   : > { %v3366_v55 = vmul.f32 0.3275911, %v3365_v54  ;;  %v3379_v57 = vsub.f32 0.0, %v3365_v54 }
0x11a0   : > { %v3367_v56 = vadd.f32 1.0, %v3366_v55  ;;  %v3380_v58 = vmul.f32 %v3379_v57, %v3365_v54 }
0x11a2   : > { %9427 = vrcp.f32 %v3367_v56  ;;  %v3381_v61 = vmul.f32 1.442695, %v3380_v58  ;;  %v3987_v58 = vpop.permute.xlu0 %3986 }
0x11a4   : > { %9429 = vpow2.f32 %v3381_v61 }
0x11af   : > { %v9428_v59 = vpop.eup %9427 }
0x11b0   : > { %v3370_v60 = vmul.f32 1.0614054, %v9428_v59 }
0x11b1   : > { %v9430_v2 = vpop.eup %9429 }
0x11b2   : > { %v3371_v62 = vadd.f32 -1.4531521, %v3370_v60 }
0x11b4   : > { %v3372_v63 = vmul.f32 %v9428_v59, %v3371_v62 }
0x11b6   : > { %v3373_v19 = vadd.f32 1.4214138, %v3372_v63 }
0x11b8   : > { %v3374_v20 = vmul.f32 %v9428_v59, %v3373_v19 }
0x11ba   : > { %v3375_v21 = vadd.f32 -0.28449672, %v3374_v20 }
0x11bc   : > { %v3376_v29 = vmul.f32 %v9428_v59, %v3375_v21 }
0x11be   : > { %v3377_v22 = vadd.f32 0.2548296, %v3376_v29 }
0x11c0   : > { %v3378_v1 = vmul.f32 %v9428_v59, %v3377_v22 }
0x11c2   : > { %v3383_v3 = vmul.f32 %v9430_v2, %v3378_v1 }
0x11c4   : > { %v3384_v4 = vsub.f32 1.0, %v3383_v3 }
0x11c6   : > { %v3385_v7 = vmul.f32 %v3384_v4, %v3364_v6 }
0x11c8   : > { %v3386_v9 = vadd.f32 1.0, %v3385_v7 }
0x11ca   : > { %v3387_v11 = vmul.f32 %v3386_v9, %v3361_v8 }
0x11cc   : > { %8829 = vmatmul.mubr.msk.f32.vlgmr.msra.gmra.mxu1 %vm1141_vm1, %v3387_v11 }
0x11cd   : > { %8843 = vmatpush3.msra.mxu1 %v3572_v13  ;;  %8850 = vmatprep.mubr.msk.f32.mxu1 %vm9873_vm0, %v9871_v0 }
0x11ce   : > { %8844 = vmatprep.subr.mxu1 %v9871_v0 }
0x11cf   : > { %8845 = vmatpush3.msra.mxu1 %v3570_v12 }
0x11d0   : > { %8846 = vmatprep.subr.mxu1 %v9871_v0 }
0x11d1   : > { %8847 = vmatpush3.msra.mxu1 %v3568_v14 }
0x11d2   : > { %8848 = vmatprep.subr.mxu1 %v9871_v0 }
0x11d3   : > { %8849 = vmatpush3.msra.mxu1 %v3566_v15 }
0x11d4   : > { %8864 = vmatprep.subr.mxu1 %v9871_v0 }
0x128c   : > { %v3472_v23 = vpop.f32.mrf.mxu1 }
0x128d   : > { %v10748_v24 = vadd.f32 %v8093_v17, %v3472_v23 }
0x128e   : > { %v8830_v26 = vpop.f32.mrf.mxu1 }
0x128f   : > { %8840 = vmatmul.mubr.msk.f32.vlgmr.msra.gmra.mxu0 %vm3487_vm5, %v10748_v24  ;;  %8851 = vmatmul.mubr.msk.f32.vlgmr.msra.gmra.mxu1 %vm3487_vm5, %v10748_v24 }
0x1290   : > { %8854 = vmatpush3.msra.mxu0 %v3657_v18  ;;  %8861 = vmatprep.mubr.msk.f32.mxu0 %vm9873_vm0, %v9871_v0 }
0x1291   : > { %8855 = vmatprep.subr.mxu0 %v9871_v0  ;;  %8866 = vmatprep.mubr.msk.f32.mxu1 %vm9873_vm0, %v9871_v0 }
0x1292   : > { %8856 = vmatpush3.msra.mxu0 %v3655_v25 }
0x1293   : > { %8857 = vmatprep.subr.mxu0 %v9871_v0 }
0x1294   : > { %8858 = vmatpush3.msra.mxu0 %v3653_v27 }
0x1295   : > { %8859 = vmatprep.subr.mxu0 %v9871_v0 }
0x1296   : > { %8860 = vmatpush3.msra.mxu0 %v3651_v28 }
0x1297   : > { %8862 = vmatmul.mubr.msk.f32.vlgmr.msra.gmra.mxu0 %vm3487_vm5, %v10748_v24  ;;  %8874 = vmatprep.subr.mxu0 %v9871_v0 }
0x1298   : > { %8882 = vmatprep.mubr.msk.f32.mxu0 %vm9873_vm0, %v9871_v0 }
0x134f   : > { %v3557_v30 = vpop.f32.mrf.mxu0  ;;  %v3646_v31 = vpop.f32.mrf.mxu1 }
0x1350   : > { %v3558_v32 = vadd.f32 %v10719_v48, %v3557_v30  ;;  %v3647_v33 = vadd.f32 %v3646_v31, %v3578_v16  ;;  %v4313_v31 = vld [vmem:[#allocation10 + $0x8] sm:$0xff] }
0x1351   : > { %v8841_v34 = vpop.f32.mrf.mxu0  ;;  %v8852_v35 = vpop.f32.mrf.mxu1 }
0x1352   : > { %v3735_v36 = vmul.f32 0.35355338, %v3558_v32  ;;  %8865 = vmatpush3.xpose.msk.msra.mxu1 %vm1483_vm3, %v3647_v33 }
0x1353   : > { %8869 = vmatprep.subr.mxu1 %v9871_v0 }
0x1355   : > { %8867 = vmatmul.mubr.msk.f32.vlgmr.msra.gmra.mxu1 %vm1483_vm3, %v3735_v36 }
0x1356   : > { %8871 = vmatprep.mubr.msk.f32.mxu1 %vm9873_vm0, %v9871_v0 }
0x1357   : > { %v3731_v37 = vpop.f32.mrf.mxu0 }
0x1358   : > { %v3732_v38 = vadd.f32 %v3731_v37, %v3663_v10  ;;  %v3896_v10 = vld [vmem:[#allocation10] sm:$0xff] }
0x1359   : > { %v8863_v39 = vpop.f32.mrf.mxu0 }
0x135a   : > { %8870 = vmatpush3.msra.mxu1 %v3732_v38 }
0x135b   : > { %8885 = vmatprep.subr.mxu1 %v9871_v0 }
0x1415   : > { %v3808_v41 = vpop.f32.mrf.mxu1 }
0x1416   : > { %v3812_v42 = vsel %vm1483_vm3, %v3808_v41, -inf }
0x1417   : > { %3813 = vmax.xlane.f32.xlu1 %v3812_v42  ;;  %v8868_v43 = vpop.f32.mrf.mxu1 }
0x1428   : > { %3988 = vrot.lane.b32.xlu1 %v10700_v40, %s9881_s28 }
0x142c   : > { %3903 = vrot.lane.b32.xlu1 %v10700_v40, %s9882_s18 }
0x1430   : > { %3901 = vrot.lane.b32.xlu1 %v10698_v45, %s9882_s18 }
0x1434   : > { %3899 = vrot.lane.b32.xlu1 %v10707_v46, %s9882_s18 }
0x1438   : > { %3897 = vrot.lane.b32.xlu1 %v10709_v47, %s9882_s18 }
0x143c   : > { %3909 = vrot.lane.b32.xlu1 %v10719_v48, %s9882_s18 }
0x1440   : > { %4071 = vrot.lane.b32.xlu1 %v10698_v45, %s9883_s15 }
0x1444   : > { %4067 = vrot.lane.b32.xlu1 %v10709_v47, %s9883_s15 }
0x14a0   : > { %v3814_v44 = vpop.xlane.xlu1 %3813 }
0x14a1   : > { %v3815_v49 = vsub.f32 %v3808_v41, %v3814_v44 }
0x14a3   : > { %v3816_v50 = vmul.f32 1.442695, %v3815_v49 }
0x14a4   : > { %v3989_v51 = vpop.permute.xlu1 %3988 }
0x14a5   : > { %9431 = vpow2.f32 %v3816_v50 }
0x14a8   : > { %v3904_v52 = vpop.permute.xlu1 %3903 }
0x14a9   : > { %8875 = vmatpush3.msra.mxu0 %v3904_v52 }
0x14aa   : > { %8876 = vmatprep.subr.mxu0 %v9871_v0 }
0x14ac   : > { %v3902_v53 = vpop.permute.xlu1 %3901 }
0x14ad   : > { %8877 = vmatpush3.msra.mxu0 %v3902_v53 }
0x14ae   : > { %8878 = vmatprep.subr.mxu0 %v9871_v0 }
0x14b0   : > { %v3900_v54 = vpop.permute.xlu1 %3899 }
0x14b1   : > { %8879 = vmatpush3.msra.mxu0 %v3900_v54 }
0x14b2   : > { %v9432_v55 = vpop.eup %9431  ;;  %8880 = vmatprep.subr.mxu0 %v9871_v0 }
0x14b3   : > { %v3818_v56 = vsel %vm1483_vm3, %v9432_v55, 0.0 }
0x14b4   : > { %3819 = vadd.xlane.f32.xlu0 %v3818_v56  ;;  %v3898_v57 = vpop.permute.xlu1 %3897 }
0x14b5   : > { %8881 = vmatpush3.msra.mxu0 %v3898_v57 }
0x14b6   : > { %8883 = vmatmul.mubr.msk.f32.vlgmr.msra.gmra.mxu0 %vm3487_vm5, %v10748_v24  ;;  %8896 = vmatprep.subr.mxu0 %v9871_v0 }
0x14b7   : > { %8904 = vmatprep.mubr.msk.f32.mxu0 %vm9873_vm0, %v9871_v0 }
0x14b8   : > { %v3910_v62 = vpop.permute.xlu1 %3909 }
0x14bc   : > { %v4072_v21 = vpop.permute.xlu1 %4071 }
0x14c0   : > { %v4068_v1 = vpop.permute.xlu1 %4067 }
0x14ca   : > { %3984 = vrot.lane.b32.xlu0 %v10707_v46, %s9881_s28 }
0x14ce   : > { %3982 = vrot.lane.b32.xlu0 %v10709_v47, %s9881_s28 }
0x14d2   : > { %3994 = vrot.lane.b32.xlu0 %v10719_v48, %s9881_s28 }
0x14d6   : > { %4073 = vrot.lane.b32.xlu0 %v10700_v40, %s9883_s15 }
0x14da   : > { %4069 = vrot.lane.b32.xlu0 %v10707_v46, %s9883_s15 }
0x153d   : > { %v3820_v59 = vpop.xlane.xlu0 %3819 }
0x153e   : > { %9433 = vrcp.f32 %v3820_v59 }
0x1541   : > { %v3985_v60 = vpop.permute.xlu0 %3984 }
0x1545   : > { %v3983_v61 = vpop.permute.xlu0 %3982 }
0x1549   : > { %v3995_v63 = vpop.permute.xlu0 %3994 }
0x154b   : > { %v9434_v19 = vpop.eup %9433 }
0x154c   : > { %v3822_v20 = vmul.f32 %v9434_v19, %v9432_v55 }
0x154d   : > { %v4074_v29 = vpop.permute.xlu0 %4073 }
0x154e   : > { %8872 = vmatmul.mubr.msk.f32.vlgmr.msra.gmra.mxu1 %vm1483_vm3, %v3822_v20  ;;  %8897 = vmatpush3.msra.mxu0 %v4074_v29 }
0x154f   : > { %8886 = vmatpush3.msra.mxu1 %v3989_v51  ;;  %8898 = vmatprep.subr.mxu0 %v9871_v0 }
0x1550   : > { %8887 = vmatprep.subr.mxu1 %v9871_v0  ;;  %8899 = vmatpush3.msra.mxu0 %v4072_v21 }
0x1551   : > { %8888 = vmatpush3.msra.mxu1 %v3987_v58  ;;  %v4070_v22 = vpop.permute.xlu0 %4069  ;;  %8900 = vmatprep.subr.mxu0 %v9871_v0 }
0x1552   : > { %8889 = vmatprep.subr.mxu1 %v9871_v0  ;;  %8901 = vmatpush3.msra.mxu0 %v4070_v22 }
0x1553   : > { %8890 = vmatpush3.msra.mxu1 %v3985_v60  ;;  %8902 = vmatprep.subr.mxu0 %v9871_v0 }
0x1554   : > { %8891 = vmatprep.subr.mxu1 %v9871_v0  ;;  %8893 = vmatprep.mubr.msk.f32.mxu1 %vm9873_vm0, %v9871_v0 }
0x1555   : > { %8892 = vmatpush3.msra.mxu1 %v3983_v61  ;;  %8903 = vmatpush3.msra.mxu0 %v4068_v1 }
0x1556   : > { %8894 = vmatmul.mubr.msk.f32.vlgmr.msra.gmra.mxu1 %vm3487_vm5, %v10748_v24  ;;  %8905 = vmatmul.mubr.msk.f32.vlgmr.msra.gmra.mxu0 %vm3487_vm5, %v10748_v24 }
0x1557   : > { %8907 = vmatprep.subr.mxu1 %v9871_v0  ;;  %8909 = vmatprep.mubr.msk.f32.mxu1 %vm9873_vm0, %v9871_v0 }
0x1558   : > { %8917 = vmatprep.subr.mxu0 %v9871_v0  ;;  %8919 = vmatprep.mubr.msk.f32.mxu0 %vm9873_vm0, %v9871_v0 }
0x1559   : > { %8918 = vmatpush3.msra.mxu0 %v4313_v31 }
0x155a   : > { %8927 = vmatprep.subr.mxu0 %v9871_v0 }
0x1576   : > { %v3978_v2 = vpop.f32.mrf.mxu0 }
0x1577   : > { %v3979_v7 = vadd.f32 %v3978_v2, %v3910_v62 }
0x1578   : > { %v8884_v3 = vpop.f32.mrf.mxu0 }
0x1579   : > { %v4152_v14 = vmul.f32 0.35355338, %v3979_v7 }
0x160e   : > { %v3892_v4 = vpop.f32.mrf.mxu1 }
0x1610   : > { %v8873_v6 = vpop.f32.mrf.mxu1 }
0x1616   : > { %v4063_v8 = vpop.f32.mrf.mxu1  ;;  %v4148_v9 = vpop.f32.mrf.mxu0 }
0x1617   : > { %v4064_v11 = vadd.f32 %v4063_v8, %v3995_v63 }
0x1618   : > { %v8895_v12 = vpop.f32.mrf.mxu1  ;;  %v8906_v13 = vpop.f32.mrf.mxu0 }
0x1619   : > { %8908 = vmatpush3.xpose.msk.msra.mxu1 %vm1483_vm3, %v4064_v11  ;;  %v4876_v11 = vld [vmem:[#allocation10 + $0x10] sm:$0xff] }
0x161a   : > { %8912 = vmatprep.subr.mxu1 %v9871_v0 }
0x161c   : > { %8910 = vmatmul.mubr.msk.f32.vlgmr.msra.gmra.mxu1 %vm1483_vm3, %v4152_v14 }
0x161d   : > { %8914 = vmatprep.mubr.msk.f32.mxu1 %vm9873_vm0, %v9871_v0 }
0x16dc   : > { %v4225_v15 = vpop.f32.mrf.mxu1 }
0x16dd   : > { %v4229_v16 = vsel %vm1483_vm3, %v4225_v15, -inf }
0x16de   : > { %4230 = vmax.xlane.f32.xlu0 %v4229_v16  ;;  %v8911_v17 = vpop.f32.mrf.mxu1 }
0x16f4   : > { %4079 = vrot.lane.b32.xlu0 %v10719_v48, %s9883_s15  ;;  %s11316_s15 = sld [smem:[#allocation36_spill]] }
0x16f8   : > { %4466 = vrot.lane.b32.xlu0 %v10700_v40, %s9875_s1 }
0x16fc   : > { %4464 = vrot.lane.b32.xlu0 %v10698_v45, %s9875_s1 }
0x1700   : > { %4462 = vrot.lane.b32.xlu0 %v10707_v46, %s9875_s1 }
0x1704   : > { %4460 = vrot.lane.b32.xlu0 %v10709_v47, %s9875_s1 }
0x1708   : > { %4472 = vrot.lane.b32.xlu0 %v10719_v48, %s9875_s1 }
0x170c   : > { %4634 = vrot.lane.b32.xlu0 %v10698_v45, %s9874_s11 }
0x1710   : > { %4630 = vrot.lane.b32.xlu0 %v10709_v47, %s9874_s11 }
0x1767   : > { %v4231_v18 = vpop.xlane.xlu0 %4230 }
0x1768   : > { %v4232_v23 = vsub.f32 %v4225_v15, %v4231_v18 }
0x176a   : > { %v4233_v25 = vmul.f32 1.442695, %v4232_v23 }
0x176b   : > { %v4080_v26 = vpop.permute.xlu0 %4079 }
0x176c   : > { %9435 = vpow2.f32 %v4233_v25  ;;  %v4149_v27 = vadd.f32 %v4148_v9, %v4080_v26 }
0x176e   : > { %8913 = vmatpush3.msra.mxu1 %v4149_v27 }
0x176f   : > { %8922 = vmatprep.subr.mxu1 %v9871_v0  ;;  %v4467_v39 = vpop.permute.xlu0 %4466 }
0x1773   : > { %v4465_v41 = vpop.permute.xlu0 %4464 }
0x1777   : > { %v4463_v42 = vpop.permute.xlu0 %4462 }
0x1779   : > { %v9436_v28 = vpop.eup %9435 }
0x177a   : > { %v4235_v30 = vsel %vm1483_vm3, %v9436_v28, 0.0 }
0x177b   : > { %4236 = vadd.xlane.f32.xlu1 %v4235_v30  ;;  %v4461_v43 = vpop.permute.xlu0 %4460 }
0x177f   : > { %v4473_v50 = vpop.permute.xlu0 %4472 }
0x1783   : > { %v4635_v55 = vpop.permute.xlu0 %4634 }
0x1787   : > { %v4631_v59 = vpop.permute.xlu0 %4630 }
0x178c   : > { %4551 = vrot.lane.b32.xlu1 %v10700_v40, %s9879_s6 }
0x1790   : > { %4549 = vrot.lane.b32.xlu1 %v10698_v45, %s9879_s6 }
0x1794   : > { %4547 = vrot.lane.b32.xlu1 %v10707_v46, %s9879_s6 }
0x1798   : > { %4545 = vrot.lane.b32.xlu1 %v10709_v47, %s9879_s6 }
0x179c   : > { %4557 = vrot.lane.b32.xlu1 %v10719_v48, %s9879_s6  ;;  %s9885_s6 = smov 104  }
0x17a0   : > { %4636 = vrot.lane.b32.xlu1 %v10700_v40, %s9874_s11 }
0x17a4   : > { %4632 = vrot.lane.b32.xlu1 %v10707_v46, %s9874_s11 }
0x1804   : > { %v4237_v32 = vpop.xlane.xlu1 %4236 }
0x1805   : > { %9437 = vrcp.f32 %v4237_v32 }
0x1808   : > { %v4552_v33 = vpop.permute.xlu1 %4551 }
0x180c   : > { %v4550_v34 = vpop.permute.xlu1 %4549 }
0x1810   : > { %v4548_v37 = vpop.permute.xlu1 %4547 }
0x1812   : > { %v9438_v35 = vpop.eup %9437 }
0x1813   : > { %v4239_v36 = vmul.f32 %v9438_v35, %v9436_v28 }
0x1814   : > { %v4546_v38 = vpop.permute.xlu1 %4545 }
0x1815   : > { %8915 = vmatmul.mubr.msk.f32.vlgmr.msra.gmra.mxu1 %vm1483_vm3, %v4239_v36 }
0x1816   : > { %8923 = vmatpush3.msra.mxu1 %v3896_v10  ;;  %8924 = vmatprep.mubr.msk.f32.mxu1 %vm9873_vm0, %v9871_v0 }
0x1817   : > { %8938 = vmatprep.subr.mxu1 %v9871_v0 }
0x1818   : > { %v4558_v44 = vpop.permute.xlu1 %4557 }
0x1819   : > { %8925 = vmatmul.mubr.msk.f32.vlgmr.msra.gmra.mxu1 %vm1483_vm3, %v3892_v4 }
0x181a   : > { %8939 = vmatpush3.msra.mxu1 %v4552_v33  ;;  %8946 = vmatprep.mubr.msk.f32.mxu1 %vm9873_vm0, %v9871_v0 }
0x181b   : > { %8940 = vmatprep.subr.mxu1 %v9871_v0 }
0x181c   : > { %8941 = vmatpush3.msra.mxu1 %v4550_v34  ;;  %v4637_v53 = vpop.permute.xlu1 %4636 }
0x181d   : > { %8942 = vmatprep.subr.mxu1 %v9871_v0 }
0x181e   : > { %8943 = vmatpush3.msra.mxu1 %v4548_v37 }
0x181f   : > { %8944 = vmatprep.subr.mxu1 %v9871_v0 }
0x1820   : > { %8945 = vmatpush3.msra.mxu1 %v4546_v38  ;;  %v4633_v56 = vpop.permute.xlu1 %4632 }
0x1821   : > { %8947 = vmatmul.mubr.msk.f32.vlgmr.msra.gmra.mxu1 %vm3487_vm5, %v10748_v24  ;;  %8960 = vmatprep.subr.mxu1 %v9871_v0 }
0x1822   : > { %8962 = vmatprep.mubr.msk.f32.mxu1 %vm9873_vm0, %v9871_v0 }
0x18d5   : > { %v4309_v49 = vpop.f32.mrf.mxu1 }
0x18d6   : > { %8920 = vmatmul.mubr.msk.f32.vlgmr.msra.gmra.mxu0 %vm1483_vm3, %v4309_v49 }
0x18d7   : > { %8928 = vmatpush3.msra.mxu0 %v4467_v39  ;;  %v8916_v51 = vpop.f32.mrf.mxu1  ;;  %8935 = vmatprep.mubr.msk.f32.mxu0 %vm9873_vm0, %v9871_v0 }
0x18d8   : > { %8929 = vmatprep.subr.mxu0 %v9871_v0 }
0x18d9   : > { %8930 = vmatpush3.msra.mxu0 %v4465_v41  ;;  %v10888_v52 = vpop.f32.mrf.mxu1 }
0x18da   : > { %8931 = vmatprep.subr.mxu0 %v9871_v0 }
0x18db   : > { %8932 = vmatpush3.msra.mxu0 %v4463_v42  ;;  %v8926_v54 = vpop.f32.mrf.mxu1 }
0x18dc   : > { %8933 = vmatprep.subr.mxu0 %v9871_v0 }
0x18dd   : > { %8934 = vmatpush3.msra.mxu0 %v4461_v43 }
0x18de   : > { %8936 = vmatmul.mubr.msk.f32.vlgmr.msra.gmra.mxu0 %vm3487_vm5, %v10748_v24  ;;  %8949 = vmatprep.subr.mxu0 %v9871_v0 }
0x18df   : > { %8950 = vmatpush3.msra.mxu0 %v4637_v53  ;;  %8957 = vmatprep.mubr.msk.f32.mxu0 %vm9873_vm0, %v9871_v0 }
0x18e0   : > { %8951 = vmatprep.subr.mxu0 %v9871_v0 }
0x18e1   : > { %v4626_v57 = vpop.f32.mrf.mxu1  ;;  %8952 = vmatpush3.msra.mxu0 %v4635_v55 }
0x18e2   : > { %v4627_v58 = vadd.f32 %v4626_v57, %v4558_v44  ;;  %8953 = vmatprep.subr.mxu0 %v9871_v0 }
0x18e3   : > { %v8948_v60 = vpop.f32.mrf.mxu1  ;;  %8954 = vmatpush3.msra.mxu0 %v4633_v56 }
0x18e4   : > { %8955 = vmatprep.subr.mxu0 %v9871_v0  ;;  %8961 = vmatpush3.xpose.msk.msra.mxu1 %vm1483_vm3, %v4627_v58 }
0x18e5   : > { %8956 = vmatpush3.msra.mxu0 %v4631_v59  ;;  %8965 = vmatprep.subr.mxu1 %v9871_v0 }
0x18e6   : > { %8958 = vmatmul.mubr.msk.f32.vlgmr.msra.gmra.mxu0 %vm3487_vm5, %v10748_v24  ;;  %8970 = vmatprep.subr.mxu0 %v9871_v0 }
0x18e7   : > { %8972 = vmatprep.mubr.msk.f32.mxu0 %vm9873_vm0, %v9871_v0  ;;  %8971 = vmatpush3.msra.mxu0 %v4876_v11 }
0x18e8   : > { %8986 = vmatprep.subr.mxu0 %v9871_v0 }
0x1996   : > { %v10907_v61 = vpop.f32.mrf.mxu0 }
0x1997   : > { %v4457_v38 = vadd.f32 %v10888_v52, %v10907_v61 }
0x1998   : > { %v8921_v62 = vpop.f32.mrf.mxu0 }
0x1999   : > { %v5367_v62 = vld [vmem:[#allocation10 + $0x18] sm:$0xff] }
0x199e   : > { %v4541_v63 = vpop.f32.mrf.mxu0 }
0x199f   : > { %v4542_v19 = vadd.f32 %v4541_v63, %v4473_v50 }
0x19a0   : > { %v8937_v20 = vpop.f32.mrf.mxu0 }
0x19a1   : > { %v4715_v21 = vmul.f32 0.35355338, %v4542_v19 }
0x19a3   : > { %8963 = vmatmul.mubr.msk.f32.vlgmr.msra.gmra.mxu1 %vm1483_vm3, %v4715_v21 }
0x19a4   : > { %8967 = vmatprep.mubr.msk.f32.mxu1 %vm9873_vm0, %v9871_v0 }
0x19a6   : > { %v4711_v29 = vpop.f32.mrf.mxu0 }
0x19a8   : > { %v8959_v22 = vpop.f32.mrf.mxu0 }
0x1a63   : > { %v4788_v1 = vpop.f32.mrf.mxu1 }
0x1a64   : > { %v4792_v2 = vsel %vm1483_vm3, %v4788_v1, -inf }
0x1a65   : > { %4793 = vmax.xlane.f32.xlu1 %v4792_v2  ;;  %v8964_v3 = vpop.f32.mrf.mxu1 }
0x1a76   : > { %5042 = vrot.lane.b32.xlu1 %v10700_v40, %s9884_s10 }
0x1a7a   : > { %4957 = vrot.lane.b32.xlu1 %v10700_v40, %s9885_s6 }
0x1a7e   : > { %4955 = vrot.lane.b32.xlu1 %v10698_v45, %s9885_s6 }
0x1a82   : > { %4953 = vrot.lane.b32.xlu1 %v10707_v46, %s9885_s6 }
0x1a86   : > { %4951 = vrot.lane.b32.xlu1 %v10709_v47, %s9885_s6 }
0x1a8a   : > { %4963 = vrot.lane.b32.xlu1 %v10719_v48, %s9885_s6 }
0x1a8e   : > { %5125 = vrot.lane.b32.xlu1 %v10698_v45, %s9886_s2 }
0x1a92   : > { %5121 = vrot.lane.b32.xlu1 %v10709_v47, %s9886_s2 }
0x1aee   : > { %v4794_v4 = vpop.xlane.xlu1 %4793 }
0x1aef   : > { %v4795_v6 = vsub.f32 %v4788_v1, %v4794_v4 }
0x1af1   : > { %v4796_v7 = vmul.f32 1.442695, %v4795_v6 }
0x1af2   : > { %v5043_v12 = vpop.permute.xlu1 %5042 }
0x1af3   : > { %9439 = vpow2.f32 %v4796_v7 }
0x1af6   : > { %v4958_v13 = vpop.permute.xlu1 %4957 }
0x1afa   : > { %v4956_v14 = vpop.permute.xlu1 %4955 }
0x1b00   : > { %v9440_v8 = vpop.eup %9439 }
0x1b01   : > { %v4798_v9 = vsel %vm1483_vm3, %v9440_v8, 0.0 }
0x1b02   : > { %4799 = vadd.xlane.f32.xlu0 %v4798_v9 }
0x1b18   : > { %4642 = vrot.lane.b32.xlu0 %v10719_v48, %s9874_s11  ;;  %s11312_s11 = sld [smem:[#allocation33_spill]] }
0x1b1c   : > { %5040 = vrot.lane.b32.xlu0 %v10698_v45, %s9884_s10 }
0x1b1e   : > { %v8124_v22 = vld [vmem:[%s11312_s11] ss:$0 sm:$0xff]  ;;  %s9889_s11 = smov 92  }
0x1b20   : > { %5038 = vrot.lane.b32.xlu0 %v10707_v46, %s9884_s10 }
0x1b24   : > { %5036 = vrot.lane.b32.xlu0 %v10709_v47, %s9884_s10  ;;  %v4954_v47 = vpop.permute.xlu1 %4953 }
0x1b28   : > { %5048 = vrot.lane.b32.xlu0 %v10719_v48, %s9884_s10  ;;  %s9887_s10 = smov 108  }
0x1b2c   : > { %5127 = vrot.lane.b32.xlu0 %v10700_v40, %s9886_s2  ;;  %v4952_v40 = vpop.permute.xlu1 %4951 }
0x1b30   : > { %5123 = vrot.lane.b32.xlu0 %v10707_v46, %s9886_s2  ;;  %v4964_v46 = vpop.permute.xlu1 %4963 }
0x1b34   : > { %v5126_v28 = vpop.permute.xlu1 %5125 }
0x1b38   : > { %v5122_v32 = vpop.permute.xlu1 %5121 }
0x1b8b   : > { %v4800_v45 = vpop.xlane.xlu0 %4799 }
0x1b8c   : > { %9441 = vrcp.f32 %v4800_v45  ;;  %v5482_v45 = vld [vmem:[#allocation12 + $0x8] sm:$0xff] }
0x1b8f   : > { %v4643_v15 = vpop.permute.xlu0 %4642 }
0x1b90   : > { %v4712_v16 = vadd.f32 %v4711_v29, %v4643_v15 }
0x1b92   : > { %8966 = vmatpush3.msra.mxu1 %v4712_v16 }
0x1b93   : > { %v5041_v17 = vpop.permute.xlu0 %5040  ;;  %8975 = vmatprep.subr.mxu1 %v9871_v0 }
0x1b97   : > { %v5039_v18 = vpop.permute.xlu0 %5038 }
0x1b99   : > { %v9442_v23 = vpop.eup %9441 }
0x1b9a   : > { %v4802_v25 = vmul.f32 %v9442_v23, %v9440_v8  ;;  %v8126_v23 = vld [vmem:[%s11314_s8] ss:$0 sm:$0xff]  ;;  %s11320_s8 = sld [smem:[#allocation41_spill]] }
0x1b9b   : > { %v5037_v26 = vpop.permute.xlu0 %5036 }
0x1b9c   : > { %8968 = vmatmul.mubr.msk.f32.vlgmr.msra.gmra.mxu1 %vm1483_vm3, %v4802_v25 }
0x1b9d   : > { %8976 = vmatpush3.msra.mxu1 %v4958_v13  ;;  %8983 = vmatprep.mubr.msk.f32.mxu1 %vm9873_vm0, %v9871_v0  ;;  %v5484_v13 = vld [vmem:[#allocation12 + $0x18] sm:$0xff] }
0x1b9e   : > { %8977 = vmatprep.subr.mxu1 %v9871_v0 }
0x1b9f   : > { %8978 = vmatpush3.msra.mxu1 %v4956_v14  ;;  %v5049_v27 = vpop.permute.xlu0 %5048  ;;  %v5483_v14 = vld [vmem:[#allocation12 + $0x10] sm:$0xff] }
0x1ba0   : > { %8979 = vmatprep.subr.mxu1 %v9871_v0 }
0x1ba1   : > { %8980 = vmatpush3.msra.mxu1 %v4954_v47 }
0x1ba2   : > { %8981 = vmatprep.subr.mxu1 %v9871_v0 }
0x1ba3   : > { %8982 = vmatpush3.msra.mxu1 %v4952_v40  ;;  %v5128_v30 = vpop.permute.xlu0 %5127  ;;  %v8125_v40 = vld [vmem:[%s11313_s23] ss:$0 sm:$0xff]  ;;  %s11319_s23 = sld [smem:[#allocation43_spill]] }
0x1ba4   : > { %8984 = vmatmul.mubr.msk.f32.vlgmr.msra.gmra.mxu1 %vm3487_vm5, %v10748_v24  ;;  %8997 = vmatprep.subr.mxu1 %v9871_v0 }
0x1ba5   : > { %8998 = vmatpush3.msra.mxu1 %v5128_v30  ;;  %9005 = vmatprep.mubr.msk.f32.mxu1 %vm9873_vm0, %v9871_v0  ;;  %v5596_v30 = vld [vmem:[#allocation13 + $0x20] sm:$0xff] }
0x1ba6   : > { %8999 = vmatprep.subr.mxu1 %v9871_v0 }
0x1ba7   : > { %9000 = vmatpush3.msra.mxu1 %v5126_v28  ;;  %v5124_v31 = vpop.permute.xlu0 %5123  ;;  %v5597_v28 = vld [vmem:[#allocation13 + $0x28] sm:$0xff] }
0x1ba8   : > { %9001 = vmatprep.subr.mxu1 %v9871_v0 }
0x1ba9   : > { %9002 = vmatpush3.msra.mxu1 %v5124_v31  ;;  %v5595_v31 = vld [vmem:[#allocation13 + $0x18] sm:$0xff] }
0x1baa   : > { %9003 = vmatprep.subr.mxu1 %v9871_v0 }
0x1bab   : > { %9004 = vmatpush3.msra.mxu1 %v5122_v32  ;;  %v5594_v32 = vld [vmem:[#allocation13 + $0x10] sm:$0xff] }
0x1bac   : > { %9006 = vmatmul.mubr.msk.f32.vlgmr.msra.gmra.mxu1 %vm3487_vm5, %v10748_v24  ;;  %9018 = vmatprep.subr.mxu1 %v9871_v0 }
0x1bad   : > { %9020 = vmatprep.mubr.msk.f32.mxu1 %vm9873_vm0, %v9871_v0  ;;  %9019 = vmatpush3.msra.mxu1 %v5367_v62 }
0x1bae   : > { %9034 = vmatprep.subr.mxu1 %v9871_v0 }
0x1c5c   : > { %v4872_v33 = vpop.f32.mrf.mxu1 }
0x1c5d   : > { %8973 = vmatmul.mubr.msk.f32.vlgmr.msra.gmra.mxu0 %vm1483_vm3, %v4872_v33  ;;  %v5593_v33 = vld [vmem:[#allocation13 + $0x8] sm:$0xff] }
0x1c5e   : > { %8987 = vmatpush3.msra.mxu0 %v5043_v12  ;;  %v8969_v34 = vpop.f32.mrf.mxu1  ;;  %8994 = vmatprep.mubr.msk.f32.mxu0 %vm9873_vm0, %v9871_v0 }
0x1c5f   : > { %8988 = vmatprep.subr.mxu0 %v9871_v0  ;;  %v5592_v34 = vld [vmem:[#allocation13] sm:$0xff] }
0x1c60   : > { %8989 = vmatpush3.msra.mxu0 %v5041_v17 }
0x1c61   : > { %8990 = vmatprep.subr.mxu0 %v9871_v0 }
0x1c62   : > { %8991 = vmatpush3.msra.mxu0 %v5039_v18 }
0x1c63   : > { %8992 = vmatprep.subr.mxu0 %v9871_v0 }
0x1c64   : > { %v5032_v35 = vpop.f32.mrf.mxu1  ;;  %8993 = vmatpush3.msra.mxu0 %v5037_v26 }
0x1c65   : > { %8995 = vmatmul.mubr.msk.f32.vlgmr.msra.gmra.mxu0 %vm3487_vm5, %v10748_v24  ;;  %9008 = vmatprep.subr.mxu0 %v9871_v0  ;;  %v5033_v43 = vadd.f32 %v5032_v35, %v4964_v46  ;;  %v5599_v46 = vld [vmem:[#allocation13 + $0x38] sm:$0xff]  ;;  %v11010_v35 = vld [vmem:[#allocation15] sm:$0xff] }
0x1c66   : > { %v8985_v36 = vpop.f32.mrf.mxu1  ;;  %9010 = vmatprep.mubr.msk.f32.mxu0 %vm9873_vm0, %v9871_v0 }
0x1c67   : > { %v5206_v51 = vmul.f32 0.35355338, %v5033_v43  ;;  %v11012_v36 = vld [vmem:[#allocation15 + $0x8] sm:$0xff] }
0x1c6c   : > { %v5202_v10 = vpop.f32.mrf.mxu1 }
0x1c6e   : > { %v9007_v37 = vpop.f32.mrf.mxu1 }
0x1c6f   : > { %v8127_v37 = vld [vmem:[%s11316_s15] ss:$0 sm:$0xff]  ;;  %s1124_s15 = scalar_lea.vmem %s10056_s29, %s8056_s7 }
0x1d1d   : > { %v4946_v39 = vpop.f32.mrf.mxu0 }
0x1d1e   : > { %v4950_v41 = vadd.f32 %v4946_v39, %v4457_v38 }
0x1d1f   : > { %v8974_v42 = vpop.f32.mrf.mxu0 }
0x1d25   : > { %v5117_v44 = vpop.f32.mrf.mxu0 }
0x1d26   : > { %v5118_v49 = vadd.f32 %v5117_v44, %v5049_v27  ;;  %v5598_v27 = vld [vmem:[#allocation13 + $0x30] sm:$0xff] }
0x1d27   : > { %v8996_v50 = vpop.f32.mrf.mxu0 }
0x1d28   : > { %9009 = vmatpush3.xpose.msk.msra.mxu0 %vm1483_vm3, %v5118_v49 }
0x1d29   : > { %9013 = vmatprep.subr.mxu0 %v9871_v0 }
0x1d2b   : > { %9011 = vmatmul.mubr.msk.f32.vlgmr.msra.gmra.mxu0 %vm1483_vm3, %v5206_v51 }
0x1d2c   : > { %9015 = vmatprep.mubr.msk.f32.mxu0 %vm9873_vm0, %v9871_v0 }
0x1deb   : > { %v5279_v53 = vpop.f32.mrf.mxu0 }
0x1dec   : > { %v5283_v52 = vsel %vm1483_vm3, %v5279_v53, -inf }
0x1ded   : > { %5284 = vmax.xlane.f32.xlu0 %v5283_v52  ;;  %v9012_v54 = vpop.f32.mrf.mxu0 }
0x1e03   : > { %5133 = vrot.lane.b32.xlu0 %v10719_v48, %s9886_s2  ;;  %s9888_s2 = smov 124  }
0x1e07   : > { %5764 = vrot.lane.b32.xlu0 %v11010_v35, %s9875_s1 }
0x1e76   : > { %v5285_v55 = vpop.xlane.xlu0 %5284 }
0x1e77   : > { %v5286_v56 = vsub.f32 %v5279_v53, %v5285_v55 }
0x1e79   : > { %v5287_v57 = vmul.f32 1.442695, %v5286_v56 }
0x1e7a   : > { %v5134_v58 = vpop.permute.xlu0 %5133 }
0x1e7b   : > { %9443 = vpow2.f32 %v5287_v57  ;;  %v5203_v59 = vadd.f32 %v5202_v10, %v5134_v58  ;;  %v11020_v10 = vld [vmem:[%s11315_s16] ss:$0 sm:$0xff]  ;;  %s11321_s16 = sld [smem:[#allocation42_spill]] }
0x1e7c   : > { %5770 = vrot.lane.b32.xlu0 %v11020_v10, %s9875_s1 }
0x1e7d   : > { %9014 = vmatpush3.msra.mxu0 %v5203_v59 }
0x1e7e   : > { %9023 = vmatprep.subr.mxu0 %v9871_v0 }
0x1e80   : > { %5845 = vrot.lane.b32.xlu0 %v11012_v36, %s9877_s0 }
0x1e88   : > { %v9444_v60 = vpop.eup %9443 }
0x1e89   : > { %v5289_v61 = vsel %vm1483_vm3, %v9444_v60, 0.0 }
0x1e8a   : > { %5290 = vadd.xlane.f32.xlu1 %v5289_v61 }
0x1f13   : > { %v5291_v63 = vpop.xlane.xlu1 %5290 }
0x1f14   : > { %9445 = vrcp.f32 %v5291_v63 }
0x1f21   : > { %v9446_v48 = vpop.eup %9445 }
0x1f22   : > { %v5293_v19 = vmul.f32 %v9446_v48, %v9444_v60 }
0x1f24   : > { %9016 = vmatmul.mubr.msk.f32.vlgmr.msra.gmra.mxu0 %vm1483_vm3, %v5293_v19 }
0x1f25   : > { %9031 = vmatprep.mubr.msk.f32.mxu0 %vm9873_vm0, %v9871_v0  ;;  %9024 = vmatpush3.msra.mxu0 %v5484_v13 }
0x1f26   : > { %9025 = vmatprep.subr.mxu0 %v9871_v0 }
0x1f27   : > { %9026 = vmatpush3.msra.mxu0 %v5483_v14 }
0x1f28   : > { %9027 = vmatprep.subr.mxu0 %v9871_v0 }
0x1f29   : > { %9028 = vmatpush3.msra.mxu0 %v5482_v45 }
0x1f2a   : > { %9029 = vmatprep.subr.mxu0 %v9871_v0 }
0x1fe4   : > { %v5363_v20 = vpop.f32.mrf.mxu0 }
0x1fe5   : > { %9021 = vmatmul.mubr.msk.f32.vlgmr.msra.gmra.mxu1 %vm1483_vm3, %v5363_v20 }
0x1fe6   : > { %v9017_v21 = vpop.f32.mrf.mxu0  ;;  %9050 = vmatprep.mubr.msk.f32.mxu1 %vm9873_vm0, %v9871_v0  ;;  %9035 = vmatpush3.msra.mxu1 %v5599_v46 }
0x1fe7   : > { %9036 = vmatprep.subr.mxu1 %v9871_v0 }
0x1fe8   : > { %9037 = vmatpush3.msra.mxu1 %v5598_v27 }
0x1fe9   : > { %9038 = vmatprep.subr.mxu1 %v9871_v0 }
0x1fea   : > { %9039 = vmatpush3.msra.mxu1 %v5597_v28 }
0x1feb   : > { %9040 = vmatprep.subr.mxu1 %v9871_v0 }
0x1fec   : > { %9041 = vmatpush3.msra.mxu1 %v5596_v30 }
0x1fed   : > { %9042 = vmatprep.subr.mxu1 %v9871_v0 }
0x1fee   : > { %9043 = vmatpush3.msra.mxu1 %v5595_v31 }
0x1fef   : > { %9044 = vmatprep.subr.mxu1 %v9871_v0 }
0x1ff0   : > { %9045 = vmatpush3.msra.mxu1 %v5594_v32 }
0x1ff1   : > { %9046 = vmatprep.subr.mxu1 %v9871_v0 }
0x1ff2   : > { %9047 = vmatpush3.msra.mxu1 %v5593_v33 }
0x1ff3   : > { %9048 = vmatprep.subr.mxu1 %v9871_v0 }
0x1ff4   : > { %9049 = vmatpush3.msra.mxu1 %v5592_v34 }
0x1ff5   : > { %9074 = vmatprep.subr.mxu1 %v9871_v0 }
0x20a5   : > { %v5437_v29 = vpop.f32.mrf.mxu1 }
0x20a6   : > { %v5441_v1 = vadd.f32 %v5437_v29, %v4950_v41 }
0x20a7   : > { %v9022_v2 = vpop.f32.mrf.mxu1 }
0x20a8   : > { %v5449_v3 = vadd.f32 %v8124_v22, %v5441_v1  ;;  %v5765_v2 = vpop.permute.xlu0 %5764 }
0x20aa   : > { %v5450_v4 = vadd.f32 %v5449_v3, %v10748_v24  ;;  %v5481_v24 = vld [vmem:[#allocation12] sm:$0xff] }
0x20ab   : > { %9030 = vmatpush3.msra.mxu0 %v5481_v24 }
0x20ac   : > { %v5451_v6 = vsel %vm3487_vm5, %v5450_v4, 0.0  ;;  %9053 = vmatprep.subr.mxu0 %v9871_v0 }
0x20ad   : > { %5452 = vadd.xlane.f32.xlu1 %v5451_v6 }
0x2136   : > { %v5453_v7 = vpop.xlane.xlu1 %5452 }
0x2137   : > { %v5455_v8 = vmul.f32 0.03125, %v5453_v7 }
0x2139   : > { %v5456_v9 = vsub.f32 %v5450_v4, %v5455_v8  ;;  %v5771_v4 = vpop.permute.xlu0 %5770 }
0x213b   : > { %v5457_v11 = vmul.f32 %v5456_v9, %v5456_v9 }
0x213d   : > { %v5458_v12 = vsel %vm3487_vm5, %v5457_v11, 0.0  ;;  %v5846_v11 = vpop.permute.xlu0 %5845 }
0x213e   : > { %5459 = vadd.xlane.f32.xlu1 %v5458_v12 }
0x214f   : > { %5766 = vrot.lane.b32.xlu1 %v11012_v36, %s9875_s1  ;;  %s11317_s1 = sld [smem:[#allocation37_spill]] }
0x2153   : > { %5843 = vrot.lane.b32.xlu1 %v11010_v35, %s9877_s0 }
0x2155   : > { %v8129_v3 = vld [vmem:[%s11317_s1] ss:$0 sm:$0xff] }
0x2157   : > { %6166 = vrot.lane.b32.xlu1 %v11012_v36, %s9887_s10 }
0x21c7   : > { %v5460_v15 = vpop.xlane.xlu1 %5459 }
0x21c8   : > { %v5461_v16 = vmul.f32 0.03125, %v5460_v15 }
0x21ca   : > { %v5462_v47 = vadd.f32 1e-05, %v5461_v16 }
0x21cb   : > { %v5767_v8 = vpop.permute.xlu1 %5766 }
0x21cc   : > { %9447 = vrsqrt.f32 %v5462_v47 }
0x21cf   : > { %v5844_v12 = vpop.permute.xlu1 %5843 }
0x21d9   : > { %v9448_v17 = vpop.eup %9447 }
0x21da   : > { %v5464_v18 = vmul.f32 %v9448_v17, %v5456_v9 }
0x21dc   : > { %v5472_v25 = vmul.f32 %v8125_v40, %v5464_v18 }
0x21de   : > { %v5480_v26 = vadd.f32 %v8126_v23, %v5472_v25 }
0x21e0   : > { %9032 = vmatmul.mubr.msk.f32.vlgmr.msra.gmra.mxu0 %vm3487_vm5, %v5480_v26 }
0x21e1   : > { %9057 = vmatprep.mubr.msk.f32.mxu0 %vm9873_vm0, %v9871_v0  ;;  %9054 = vmatpush3.msra.mxu0 %v11012_v36 }
0x21e2   : > { %9055 = vmatprep.subr.mxu0 %v9871_v0 }
0x21e3   : > { %9056 = vmatpush3.msra.mxu0 %v11010_v35 }
0x21e4   : > { %9060 = vmatprep.subr.mxu0 %v9871_v0 }
0x22a0   : > { %v5561_v38 = vpop.f32.mrf.mxu0 }
0x22a1   : > { %v5562_v39 = vadd.f32 %v8127_v37, %v5561_v38  ;;  %v6167_v37 = vpop.permute.xlu1 %6166 }
0x22a2   : > { %v9033_v41 = vpop.f32.mrf.mxu0 }
0x22a3   : > { %v5566_v42 = vmul.f32 0.70710677, %v5562_v39  ;;  %v5565_v29 = vmul.f32 0.5, %v5562_v39 }
0x22a5   : > { %v5569_v43 = vand.u32 2147483647, %v5566_v42  ;;  %vm5567_vm6 = vcmp.ge.f32.partialorder %v5566_v42, 0.0 }
0x22a6   : > { %v5568_v20 = vsel %vm5567_vm6, 1.0, %v9880_v5 }
0x22a7   : > { %v5570_v44 = vmul.f32 0.3275911, %v5569_v43  ;;  %v5583_v50 = vsub.f32 0.0, %v5569_v43 }
0x22a9   : > { %v5571_v49 = vadd.f32 1.0, %v5570_v44  ;;  %v5584_v51 = vmul.f32 %v5583_v50, %v5569_v43 }
0x22ab   : > { %9449 = vrcp.f32 %v5571_v49  ;;  %v5585_v54 = vmul.f32 1.442695, %v5584_v51 }
0x22ad   : > { %9451 = vpow2.f32 %v5585_v54 }
0x22b8   : > { %v9450_v53 = vpop.eup %9449 }
0x22b9   : > { %v5574_v52 = vmul.f32 1.0614054, %v9450_v53 }
0x22ba   : > { %v9452_v63 = vpop.eup %9451 }
0x22bb   : > { %v5575_v55 = vadd.f32 -1.4531521, %v5574_v52 }
0x22bd   : > { %v5576_v56 = vmul.f32 %v9450_v53, %v5575_v55 }
0x22bf   : > { %v5577_v57 = vadd.f32 1.4214138, %v5576_v56 }
0x22c1   : > { %v5578_v58 = vmul.f32 %v9450_v53, %v5577_v57 }
0x22c3   : > { %v5579_v59 = vadd.f32 -0.28449672, %v5578_v58 }
0x22c5   : > { %v5580_v60 = vmul.f32 %v9450_v53, %v5579_v59 }
0x22c7   : > { %v5581_v61 = vadd.f32 0.2548296, %v5580_v60 }
0x22c9   : > { %v5582_v62 = vmul.f32 %v9450_v53, %v5581_v61 }
0x22cb   : > { %v5587_v48 = vmul.f32 %v9452_v63, %v5582_v62 }
0x22cd   : > { %v5588_v19 = vsub.f32 1.0, %v5587_v48 }
0x22cf   : > { %v5589_v21 = vmul.f32 %v5588_v19, %v5568_v20 }
0x22d1   : > { %v5590_v22 = vadd.f32 1.0, %v5589_v21 }
0x22d3   : > { %v5591_v1 = vmul.f32 %v5590_v22, %v5565_v29 }
0x22d5   : > { %9051 = vmatmul.mubr.msk.f32.vlgmr.msra.gmra.mxu1 %vm1141_vm1, %v5591_v1  ;;  %v6483_v1 = vld [vmem:[#allocation16 + $0x4] sm:$0xf] }
0x22d6   : > { %9076 = vmatprep.mubr.msk.f32.mxu1 %vm9873_vm0, %v9871_v0 }
0x2395   : > { %v5676_v6 = vpop.f32.mrf.mxu1 }
0x2396   : > { %v11038_v7 = vadd.f32 %v8129_v3, %v5676_v6 }
0x2397   : > { %v9052_v9 = vpop.f32.mrf.mxu1 }
0x2398   : > { %9058 = vmatmul.mubr.msk.f32.vlgmr.msra.gmra.mxu0 %vm1406_vm2, %v11038_v7  ;;  %v6084_v9 = vld [vmem:[#allocation16] sm:$0xf] }
0x2399   : > { %9061 = vmatpush3.msra.mxu0 %v5767_v8  ;;  %9064 = vmatprep.mubr.msk.f32.mxu0 %vm9873_vm0, %v9871_v0 }
0x239a   : > { %9062 = vmatprep.subr.mxu0 %v9871_v0 }
0x239b   : > { %9063 = vmatpush3.msra.mxu0 %v5765_v2 }
0x239c   : > { %9065 = vmatmul.mubr.msk.f32.vlgmr.msra.gmra.mxu0 %vm1406_vm2, %v11038_v7  ;;  %9067 = vmatprep.subr.mxu0 %v9871_v0 }
0x239d   : > { %9068 = vmatpush3.msra.mxu0 %v5846_v11  ;;  %9071 = vmatprep.mubr.msk.f32.mxu0 %vm9873_vm0, %v9871_v0 }
0x239e   : > { %9069 = vmatprep.subr.mxu0 %v9871_v0 }
0x239f   : > { %9070 = vmatpush3.msra.mxu0 %v5844_v12 }
0x23a0   : > { %9072 = vmatmul.mubr.msk.f32.vlgmr.msra.gmra.mxu0 %vm1406_vm2, %v11038_v7  ;;  %9079 = vmatprep.subr.mxu0 %v9871_v0 }
0x23a1   : > { %9081 = vmatprep.mubr.msk.f32.mxu0 %vm9873_vm0, %v9871_v0 }
0x2458   : > { %v5758_v13 = vpop.f32.mrf.mxu0 }
0x2459   : > { %v5759_v45 = vadd.f32 %v11020_v10, %v5758_v13 }
0x245a   : > { %v9059_v14 = vpop.f32.mrf.mxu0 }
0x245b   : > { %v5922_v47 = vmul.f32 0.5, %v5759_v45 }
0x245c   : > { %v5839_v24 = vpop.f32.mrf.mxu0 }
0x245d   : > { %v5840_v15 = vadd.f32 %v5839_v24, %v5771_v4 }
0x245e   : > { %v9066_v16 = vpop.f32.mrf.mxu0 }
0x245f   : > { %9075 = vmatpush3.xpose.msk.msra.mxu1 %vm5923_vm7, %v5840_v15 }
0x2460   : > { %v5918_v17 = vpop.f32.mrf.mxu0  ;;  %9084 = vmatprep.subr.mxu1 %v9871_v0 }
0x2462   : > { %v9073_v40 = vpop.f32.mrf.mxu0  ;;  %9077 = vmatmul.mubr.msk.f32.vlgmr.msra.gmra.mxu1 %vm5923_vm7, %v5922_v47 }
0x2463   : > { %9088 = vmatprep.mubr.msk.f32.mxu1 %vm9873_vm0, %v9871_v0 }
0x2522   : > { %v5996_v18 = vpop.f32.mrf.mxu1 }
0x2523   : > { %v6000_v23 = vsel %vm1483_vm3, %v5996_v18, -inf }
0x2524   : > { %6001 = vmax.xlane.f32.xlu0 %v6000_v23  ;;  %v9078_v25 = vpop.f32.mrf.mxu1 }
0x253a   : > { %5849 = vrot.lane.b32.xlu0 %v11020_v10, %s9877_s0  ;;  %s9890_s0 = smov 116  }
0x253e   : > { %6087 = vrot.lane.b32.xlu0 %v11012_v36, %s9888_s2 }
0x2542   : > { %6085 = vrot.lane.b32.xlu0 %v11010_v35, %s9888_s2 }
0x2546   : > { %6091 = vrot.lane.b32.xlu0 %v11020_v10, %s9888_s2 }
0x254a   : > { %6243 = vrot.lane.b32.xlu0 %v11010_v35, %s9889_s11 }
0x25ad   : > { %v6002_v26 = vpop.xlane.xlu0 %6001 }
0x25ae   : > { %v6003_v46 = vsub.f32 %v5996_v18, %v6002_v26 }
0x25b0   : > { %v6004_v27 = vmul.f32 1.442695, %v6003_v46 }
0x25b1   : > { %v5850_v28 = vpop.permute.xlu0 %5849 }
0x25b2   : > { %9453 = vpow2.f32 %v6004_v27  ;;  %v5919_v30 = vadd.f32 %v5918_v17, %v5850_v28 }
0x25b4   : > { %9080 = vmatpush3.msra.mxu0 %v5919_v30 }
0x25b5   : > { %v6088_v31 = vpop.permute.xlu0 %6087  ;;  %9091 = vmatprep.subr.mxu0 %v9871_v0 }
0x25b6   : > { %9085 = vmatpush3.msra.mxu1 %v6088_v31 }
0x25b7   : > { %9086 = vmatprep.subr.mxu1 %v9871_v0 }
0x25b9   : > { %v6086_v32 = vpop.permute.xlu0 %6085 }
0x25ba   : > { %9087 = vmatpush3.msra.mxu1 %v6086_v32 }
0x25bb   : > { %9089 = vmatmul.mubr.msk.f32.vlgmr.msra.gmra.mxu1 %vm1406_vm2, %v11038_v7  ;;  %9098 = vmatprep.subr.mxu1 %v9871_v0 }
0x25bc   : > { %9102 = vmatprep.mubr.msk.f32.mxu1 %vm9873_vm0, %v9871_v0 }
0x25bd   : > { %v6092_v41 = vpop.permute.xlu0 %6091 }
0x25bf   : > { %v9454_v33 = vpop.eup %9453 }
0x25c0   : > { %v6006_v34 = vsel %vm1483_vm3, %v9454_v33, 0.0 }
0x25c1   : > { %6007 = vadd.xlane.f32.xlu1 %v6006_v34  ;;  %v6244_v44 = vpop.permute.xlu0 %6243 }
0x25d2   : > { %6164 = vrot.lane.b32.xlu1 %v11010_v35, %s9887_s10 }
0x25d6   : > { %6170 = vrot.lane.b32.xlu1 %v11020_v10, %s9887_s10 }
0x25da   : > { %6245 = vrot.lane.b32.xlu1 %v11012_v36, %s9889_s11 }
0x264a   : > { %v6008_v38 = vpop.xlane.xlu1 %6007 }
0x264b   : > { %9455 = vrcp.f32 %v6008_v38 }
0x264e   : > { %v6165_v39 = vpop.permute.xlu1 %6164 }
0x2652   : > { %v6171_v42 = vpop.permute.xlu1 %6170 }
0x2656   : > { %v6246_v43 = vpop.permute.xlu1 %6245 }
0x2657   : > { %9099 = vmatpush3.msra.mxu1 %v6246_v43 }
0x2658   : > { %v9456_v49 = vpop.eup %9455  ;;  %9100 = vmatprep.subr.mxu1 %v9871_v0 }
0x2659   : > { %9101 = vmatpush3.msra.mxu1 %v6244_v44  ;;  %v6010_v50 = vmul.f32 %v9456_v49, %v9454_v33 }
0x265a   : > { %9103 = vmatmul.mubr.msk.f32.vlgmr.msra.gmra.mxu1 %vm1406_vm2, %v11038_v7  ;;  %9110 = vmatprep.subr.mxu1 %v9871_v0 }
0x265b   : > { %9082 = vmatmul.mubr.msk.f32.vlgmr.msra.gmra.mxu0 %vm1483_vm3, %v6010_v50  ;;  %9112 = vmatprep.mubr.msk.f32.mxu1 %vm9873_vm0, %v9871_v0 }
0x265c   : > { %9092 = vmatpush3.msra.mxu0 %v6167_v37  ;;  %9095 = vmatprep.mubr.msk.f32.mxu0 %vm9873_vm0, %v9871_v0 }
0x265d   : > { %9093 = vmatprep.subr.mxu0 %v9871_v0 }
0x265e   : > { %9094 = vmatpush3.msra.mxu0 %v6165_v39 }
0x265f   : > { %9096 = vmatmul.mubr.msk.f32.vlgmr.msra.gmra.mxu0 %vm1406_vm2, %v11038_v7  ;;  %9105 = vmatprep.subr.mxu0 %v9871_v0 }
0x2660   : > { %9107 = vmatprep.mubr.msk.f32.mxu0 %vm9873_vm0, %v9871_v0 }
0x267b   : > { %v6160_v51 = vpop.f32.mrf.mxu1 }
0x267c   : > { %v6161_v57 = vadd.f32 %v6160_v51, %v6092_v41 }
0x267d   : > { %v9090_v53 = vpop.f32.mrf.mxu1 }
0x267e   : > { %v6322_v61 = vmul.f32 0.5, %v6161_v57  ;;  %v7035_v53 = vld [vmem:[#allocation16 + $0x8] sm:$0xf] }
0x271a   : > { %v6318_v52 = vpop.f32.mrf.mxu1 }
0x271b   : > { %v6080_v54 = vpop.f32.mrf.mxu0 }
0x271c   : > { %v9104_v55 = vpop.f32.mrf.mxu1 }
0x271d   : > { %v9083_v56 = vpop.f32.mrf.mxu0 }
0x271f   : > { %v6239_v58 = vpop.f32.mrf.mxu0 }
0x2720   : > { %v6240_v59 = vadd.f32 %v6239_v58, %v6171_v42 }
0x2721   : > { %v9097_v60 = vpop.f32.mrf.mxu0 }
0x2722   : > { %9106 = vmatpush3.xpose.msk.msra.mxu0 %vm5923_vm7, %v6240_v59 }
0x2723   : > { %9115 = vmatprep.subr.mxu0 %v9871_v0 }
0x2725   : > { %9108 = vmatmul.mubr.msk.f32.vlgmr.msra.gmra.mxu0 %vm5923_vm7, %v6322_v61 }
0x2726   : > { %9117 = vmatprep.mubr.msk.f32.mxu0 %vm9873_vm0, %v9871_v0  ;;  %9116 = vmatpush3.msk.msra.mxu0 %vm6487_vm8, %v6483_v1 }
0x2727   : > { %9125 = vmatprep.subr.mxu0 %v9871_v0 }
0x27e5   : > { %v6395_v62 = vpop.f32.mrf.mxu0 }
0x27e6   : > { %v6399_v63 = vsel %vm1483_vm3, %v6395_v62, -inf }
0x27e7   : > { %6400 = vmax.xlane.f32.xlu1 %v6399_v63  ;;  %v9109_v48 = vpop.f32.mrf.mxu0 }
0x27f8   : > { %6718 = vrot.lane.b32.xlu1 %v11012_v36, %s9885_s6 }
0x27fc   : > { %6639 = vrot.lane.b32.xlu1 %v11012_v36, %s9882_s18 }
0x2800   : > { %6637 = vrot.lane.b32.xlu1 %v11010_v35, %s9882_s18 }
0x2804   : > { %6643 = vrot.lane.b32.xlu1 %v11020_v10, %s9882_s18  ;;  %s9891_s18 = smov 84  }
0x2808   : > { %6795 = vrot.lane.b32.xlu1 %v11010_v35, %s9881_s28 }
0x2870   : > { %v6401_v19 = vpop.xlane.xlu1 %6400 }
0x2871   : > { %v6402_v20 = vsub.f32 %v6395_v62, %v6401_v19 }
0x2873   : > { %v6403_v21 = vmul.f32 1.442695, %v6402_v20 }
0x2874   : > { %v6719_v11 = vpop.permute.xlu1 %6718 }
0x2875   : > { %9457 = vpow2.f32 %v6403_v21 }
0x2878   : > { %v6640_v13 = vpop.permute.xlu1 %6639 }
0x287c   : > { %v6638_v14 = vpop.permute.xlu1 %6637 }
0x2880   : > { %v6644_v24 = vpop.permute.xlu1 %6643 }
0x2882   : > { %v9458_v29 = vpop.eup %9457 }
0x2883   : > { %v6405_v22 = vsel %vm1483_vm3, %v9458_v29, 0.0 }
0x2884   : > { %6406 = vadd.xlane.f32.xlu0 %v6405_v22  ;;  %v6796_v40 = vpop.permute.xlu1 %6795 }
0x289a   : > { %6249 = vrot.lane.b32.xlu0 %v11020_v10, %s9889_s11 }
0x289e   : > { %6716 = vrot.lane.b32.xlu0 %v11010_v35, %s9885_s6 }
0x28a2   : > { %6722 = vrot.lane.b32.xlu0 %v11020_v10, %s9885_s6  ;;  %s11318_s6 = sld [smem:[#allocation40_spill]] }
0x28a6   : > { %6797 = vrot.lane.b32.xlu0 %v11012_v36, %s9881_s28 }
0x290d   : > { %v6407_v2 = vpop.xlane.xlu0 %6406 }
0x290e   : > { %9459 = vrcp.f32 %v6407_v2 }
0x2911   : > { %v6250_v3 = vpop.permute.xlu0 %6249 }
0x2912   : > { %v6319_v4 = vadd.f32 %v6318_v52, %v6250_v3 }
0x2914   : > { %9111 = vmatpush3.msra.mxu1 %v6319_v4 }
0x2915   : > { %9120 = vmatprep.subr.mxu1 %v9871_v0  ;;  %v6717_v12 = vpop.permute.xlu0 %6716 }
0x2919   : > { %v6723_v45 = vpop.permute.xlu0 %6722 }
0x291b   : > { %v9460_v6 = vpop.eup %9459 }
0x291c   : > { %v6409_v8 = vmul.f32 %v9460_v6, %v9458_v29 }
0x291d   : > { %v6798_v47 = vpop.permute.xlu0 %6797 }
0x291e   : > { %9113 = vmatmul.mubr.msk.f32.vlgmr.msra.gmra.mxu1 %vm1483_vm3, %v6409_v8 }
0x291f   : > { %9121 = vmatpush3.msk.msra.mxu1 %vm6487_vm8, %v6084_v9  ;;  %9122 = vmatprep.mubr.msk.f32.mxu1 %vm9873_vm0, %v9871_v0 }
0x2920   : > { %9132 = vmatprep.subr.mxu1 %v9871_v0 }
0x2922   : > { %9123 = vmatmul.mubr.msk.f32.vlgmr.msra.gmra.mxu1 %vm5923_vm7, %v6080_v54 }
0x2923   : > { %9133 = vmatpush3.msra.mxu1 %v6719_v11  ;;  %9136 = vmatprep.mubr.msk.f32.mxu1 %vm9873_vm0, %v9871_v0 }
0x2924   : > { %9134 = vmatprep.subr.mxu1 %v9871_v0 }
0x2925   : > { %9135 = vmatpush3.msra.mxu1 %v6717_v12 }
0x2926   : > { %9137 = vmatmul.mubr.msk.f32.vlgmr.msra.gmra.mxu1 %vm1406_vm2, %v11038_v7  ;;  %9146 = vmatprep.subr.mxu1 %v9871_v0 }
0x2927   : > { %9148 = vmatprep.mubr.msk.f32.mxu1 %vm9873_vm0, %v9871_v0 }
0x29de   : > { %v6479_v15 = vpop.f32.mrf.mxu1 }
0x29df   : > { %9118 = vmatmul.mubr.msk.f32.vlgmr.msra.gmra.mxu0 %vm5923_vm7, %v6479_v15 }
0x29e0   : > { %9126 = vmatpush3.msra.mxu0 %v6640_v13  ;;  %v9114_v16 = vpop.f32.mrf.mxu1  ;;  %9129 = vmatprep.mubr.msk.f32.mxu0 %vm9873_vm0, %v9871_v0 }
0x29e1   : > { %9127 = vmatprep.subr.mxu0 %v9871_v0 }
0x29e2   : > { %v11147_v17 = vpop.f32.mrf.mxu1  ;;  %9128 = vmatpush3.msra.mxu0 %v6638_v14 }
0x29e3   : > { %9130 = vmatmul.mubr.msk.f32.vlgmr.msra.gmra.mxu0 %vm1406_vm2, %v11038_v7  ;;  %9139 = vmatprep.subr.mxu0 %v9871_v0 }
0x29e4   : > { %v9124_v18 = vpop.f32.mrf.mxu1  ;;  %9140 = vmatpush3.msra.mxu0 %v6798_v47  ;;  %9143 = vmatprep.mubr.msk.f32.mxu0 %vm9873_vm0, %v9871_v0  ;;  %v7511_v47 = vld [vmem:[#allocation16 + $0xc] sm:$0xf] }
0x29e5   : > { %9141 = vmatprep.subr.mxu0 %v9871_v0 }
0x29e6   : > { %v6791_v23 = vpop.f32.mrf.mxu1  ;;  %9142 = vmatpush3.msra.mxu0 %v6796_v40 }
0x29e7   : > { %v6792_v25 = vadd.f32 %v6791_v23, %v6723_v45  ;;  %9144 = vmatmul.mubr.msk.f32.vlgmr.msra.gmra.mxu0 %vm1406_vm2, %v11038_v7  ;;  %9151 = vmatprep.subr.mxu0 %v9871_v0 }
0x29e8   : > { %v9138_v26 = vpop.f32.mrf.mxu1  ;;  %9153 = vmatprep.mubr.msk.f32.mxu0 %vm9873_vm0, %v9871_v0 }
0x29e9   : > { %9147 = vmatpush3.xpose.msk.msra.mxu1 %vm5923_vm7, %v6792_v25 }
0x29ea   : > { %9156 = vmatprep.subr.mxu1 %v9871_v0 }
0x2a9f   : > { %v11162_v46 = vpop.f32.mrf.mxu0 }
0x2aa0   : > { %v6634_v29 = vadd.f32 %v11147_v17, %v11162_v46 }
0x2aa1   : > { %v9119_v27 = vpop.f32.mrf.mxu0 }
0x2aa2   : > { %v8164_v27 = vld [vmem:[%s11318_s6] ss:$0 sm:$0xff] }
0x2aa3   : > { %v6712_v28 = vpop.f32.mrf.mxu0 }
0x2aa4   : > { %v6713_v30 = vadd.f32 %v6712_v28, %v6644_v24 }
0x2aa5   : > { %v9131_v31 = vpop.f32.mrf.mxu0 }
0x2aa6   : > { %v6874_v32 = vmul.f32 0.5, %v6713_v30 }
0x2aa7   : > { %v6870_v33 = vpop.f32.mrf.mxu0 }
0x2aa8   : > { %9149 = vmatmul.mubr.msk.f32.vlgmr.msra.gmra.mxu1 %vm5923_vm7, %v6874_v32 }
0x2aa9   : > { %v9145_v34 = vpop.f32.mrf.mxu0  ;;  %9158 = vmatprep.mubr.msk.f32.mxu1 %vm9873_vm0, %v9871_v0  ;;  %9157 = vmatpush3.msk.msra.mxu1 %vm6487_vm8, %v7035_v53 }
0x2aaa   : > { %9168 = vmatprep.subr.mxu1 %v9871_v0 }
0x2b68   : > { %v6947_v37 = vpop.f32.mrf.mxu1 }
0x2b69   : > { %v6951_v38 = vsel %vm1483_vm3, %v6947_v37, -inf }
0x2b6a   : > { %6952 = vmax.xlane.f32.xlu0 %v6951_v38  ;;  %v9150_v39 = vpop.f32.mrf.mxu1 }
0x2b80   : > { %6801 = vrot.lane.b32.xlu0 %v11020_v10, %s9881_s28  ;;  %s9892_s28 = smov 100  }
0x2b84   : > { %7115 = vrot.lane.b32.xlu0 %v11012_v36, %s9890_s0 }
0x2b88   : > { %7113 = vrot.lane.b32.xlu0 %v11010_v35, %s9890_s0 }
0x2b8c   : > { %7119 = vrot.lane.b32.xlu0 %v11020_v10, %s9890_s0 }
0x2b90   : > { %7271 = vrot.lane.b32.xlu0 %v11010_v35, %s9891_s18 }
0x2bf3   : > { %v6953_v41 = vpop.xlane.xlu0 %6952 }
0x2bf4   : > { %v6954_v42 = vsub.f32 %v6947_v37, %v6953_v41 }
0x2bf6   : > { %v6955_v43 = vmul.f32 1.442695, %v6954_v42  ;;  %v7629_v42 = vld [vmem:[%s11319_s23 + $0x8] sm:$0xff] }
0x2bf7   : > { %v6802_v44 = vpop.permute.xlu0 %6801 }
0x2bf8   : > { %9461 = vpow2.f32 %v6955_v43  ;;  %v6871_v49 = vadd.f32 %v6870_v33, %v6802_v44  ;;  %v7628_v43 = vld [vmem:[%s11319_s23] sm:$0xff] }
0x2bfa   : > { %9152 = vmatpush3.msra.mxu0 %v6871_v49 }
0x2bfb   : > { %9161 = vmatprep.subr.mxu0 %v9871_v0  ;;  %v7116_v54 = vpop.permute.xlu0 %7115 }
0x2bff   : > { %v7114_v57 = vpop.permute.xlu0 %7113 }
0x2c05   : > { %v9462_v50 = vpop.eup %9461 }
0x2c06   : > { %v6957_v51 = vsel %vm1483_vm3, %v9462_v50, 0.0 }
0x2c07   : > { %6958 = vadd.xlane.f32.xlu1 %v6957_v51  ;;  %v8165_v51 = vld [vmem:[%s11320_s8] ss:$0 sm:$0xff] }
0x2c18   : > { %7194 = vrot.lane.b32.xlu1 %v11012_v36, %s9892_s28 }
0x2c1c   : > { %7192 = vrot.lane.b32.xlu1 %v11010_v35, %s9892_s28  ;;  %v7120_v35 = vpop.permute.xlu0 %7119 }
0x2c20   : > { %7198 = vrot.lane.b32.xlu1 %v11020_v10, %s9892_s28  ;;  %v7272_v61 = vpop.permute.xlu0 %7271 }
0x2c24   : > { %7273 = vrot.lane.b32.xlu1 %v11012_v36, %s9891_s18 }
0x2c90   : > { %v6959_v52 = vpop.xlane.xlu1 %6958 }
0x2c91   : > { %9463 = vrcp.f32 %v6959_v52  ;;  %v8166_v52 = vld [vmem:[%s11321_s16] ss:$0 sm:$0xff] }
0x2c94   : > { %v7195_v55 = vpop.permute.xlu1 %7194 }
0x2c98   : > { %v7193_v56 = vpop.permute.xlu1 %7192 }
0x2c9c   : > { %v7199_v58 = vpop.permute.xlu1 %7198 }
0x2c9e   : > { %v9464_v59 = vpop.eup %9463 }
0x2c9f   : > { %v6961_v60 = vmul.f32 %v9464_v59, %v9462_v50  ;;  %v7741_v59 = vld [vmem:[%s10046_s30 + $0x20] sm:$0xff] }
0x2ca0   : > { %v7274_v36 = vpop.permute.xlu1 %7273 }
0x2ca1   : > { %9154 = vmatmul.mubr.msk.f32.vlgmr.msra.gmra.mxu0 %vm1483_vm3, %v6961_v60  ;;  %v7740_v60 = vld [vmem:[%s10046_s30 + $0x18] sm:$0xff] }
0x2ca2   : > { %9162 = vmatpush3.msra.mxu0 %v7116_v54  ;;  %9165 = vmatprep.mubr.msk.f32.mxu0 %vm9873_vm0, %v9871_v0 }
0x2ca3   : > { %9163 = vmatprep.subr.mxu0 %v9871_v0 }
0x2ca4   : > { %9164 = vmatpush3.msra.mxu0 %v7114_v57  ;;  %v7743_v57 = vld [vmem:[%s10046_s30 + $0x30] sm:$0xff] }
0x2ca5   : > { %9166 = vmatmul.mubr.msk.f32.vlgmr.msra.gmra.mxu0 %vm1406_vm2, %v11038_v7  ;;  %9175 = vmatprep.subr.mxu0 %v9871_v0 }
0x2ca6   : > { %9176 = vmatpush3.msra.mxu0 %v7274_v36  ;;  %9179 = vmatprep.mubr.msk.f32.mxu0 %vm9873_vm0, %v9871_v0  ;;  %v7738_v36 = vld [vmem:[%s10046_s30 + $0x8] sm:$0xff] }
0x2ca7   : > { %9177 = vmatprep.subr.mxu0 %v9871_v0 }
0x2ca8   : > { %9178 = vmatpush3.msra.mxu0 %v7272_v61  ;;  %v7737_v61 = vld [vmem:[%s10046_s30] sm:$0xff] }
0x2ca9   : > { %9180 = vmatmul.mubr.msk.f32.vlgmr.msra.gmra.mxu0 %vm1406_vm2, %v11038_v7  ;;  %9187 = vmatprep.subr.mxu0 %v9871_v0 }
0x2caa   : > { %9189 = vmatprep.mubr.msk.f32.mxu0 %vm9873_vm0, %v9871_v0 }
0x2d61   : > { %v7031_v62 = vpop.f32.mrf.mxu0 }
0x2d62   : > { %9159 = vmatmul.mubr.msk.f32.vlgmr.msra.gmra.mxu1 %vm5923_vm7, %v7031_v62  ;;  %v8167_v62 = vld [vmem:[#allocation18] ss:$0 sm:$0xff] }
0x2d63   : > { %9169 = vmatpush3.msra.mxu1 %v7195_v55  ;;  %v9155_v63 = vpop.f32.mrf.mxu0  ;;  %9172 = vmatprep.mubr.msk.f32.mxu1 %vm9873_vm0, %v9871_v0 }
0x2d64   : > { %9170 = vmatprep.subr.mxu1 %v9871_v0 }
0x2d65   : > { %v7188_v48 = vpop.f32.mrf.mxu0  ;;  %9171 = vmatpush3.msra.mxu1 %v7193_v56  ;;  %v7744_v56 = vld [vmem:[%s10046_s30 + $0x38] sm:$0xff] }
0x2d66   : > { %9173 = vmatmul.mubr.msk.f32.vlgmr.msra.gmra.mxu1 %vm1406_vm2, %v11038_v7  ;;  %9182 = vmatprep.subr.mxu1 %v9871_v0  ;;  %v7189_v3 = vadd.f32 %v7188_v48, %v7120_v35  ;;  %v7739_v35 = vld [vmem:[%s10046_s30 + $0x10] sm:$0xff] }
0x2d67   : > { %v9167_v19 = vpop.f32.mrf.mxu0  ;;  %9184 = vmatprep.mubr.msk.f32.mxu1 %vm9873_vm0, %v9871_v0 }
0x2d68   : > { %v7350_v9 = vmul.f32 0.5, %v7189_v3 }
0x2d69   : > { %v7346_v20 = vpop.f32.mrf.mxu0 }
0x2d6b   : > { %v9181_v21 = vpop.f32.mrf.mxu0 }
0x2e22   : > { %v7108_v22 = vpop.f32.mrf.mxu1 }
0x2e23   : > { %v7112_v1 = vadd.f32 %v7108_v22, %v6634_v29 }
0x2e24   : > { %v9160_v2 = vpop.f32.mrf.mxu1 }
0x2e26   : > { %v7267_v4 = vpop.f32.mrf.mxu1 }
0x2e27   : > { %v7268_v6 = vadd.f32 %v7267_v4, %v7199_v58  ;;  %v7742_v58 = vld [vmem:[%s10046_s30 + $0x28] sm:$0xff] }
0x2e28   : > { %v9174_v8 = vpop.f32.mrf.mxu1 }
0x2e29   : > { %9183 = vmatpush3.xpose.msk.msra.mxu1 %vm5923_vm7, %v7268_v6 }
0x2e2a   : > { %9192 = vmatprep.subr.mxu1 %v9871_v0 }
0x2e2c   : > { %9185 = vmatmul.mubr.msk.f32.vlgmr.msra.gmra.mxu1 %vm5923_vm7, %v7350_v9 }
0x2e2d   : > { %9194 = vmatprep.mubr.msk.f32.mxu1 %vm9873_vm0, %v9871_v0  ;;  %9193 = vmatpush3.msk.msra.mxu1 %vm6487_vm8, %v7511_v47 }
0x2e2e   : > { %9204 = vmatprep.subr.mxu1 %v9871_v0 }
0x2eec   : > { %v7423_v11 = vpop.f32.mrf.mxu1 }
0x2eed   : > { %v7427_v12 = vsel %vm1483_vm3, %v7423_v11, -inf }
0x2eee   : > { %7428 = vmax.xlane.f32.xlu1 %v7427_v12  ;;  %v9186_v13 = vpop.f32.mrf.mxu1 }
0x2f77   : > { %v7429_v14 = vpop.xlane.xlu1 %7428 }
0x2f78   : > { %v7430_v45 = vsub.f32 %v7423_v11, %v7429_v14 }
0x2f7a   : > { %v7431_v24 = vmul.f32 1.442695, %v7430_v45 }
0x2f7c   : > { %9465 = vpow2.f32 %v7431_v24 }
0x2f89   : > { %v9466_v15 = vpop.eup %9465 }
0x2f8a   : > { %v7433_v16 = vsel %vm1483_vm3, %v9466_v15, 0.0 }
0x2f8b   : > { %7434 = vadd.xlane.f32.xlu0 %v7433_v16 }
0x2fa1   : > { %7277 = vrot.lane.b32.xlu0 %v11020_v10, %s9891_s18 }
0x3014   : > { %v7435_v17 = vpop.xlane.xlu0 %7434 }
0x3015   : > { %9467 = vrcp.f32 %v7435_v17 }
0x3018   : > { %v7278_v40 = vpop.permute.xlu0 %7277 }
0x3019   : > { %v7347_v18 = vadd.f32 %v7346_v20, %v7278_v40 }
0x301b   : > { %9188 = vmatpush3.msra.mxu0 %v7347_v18 }
0x301c   : > { %9197 = vmatprep.subr.mxu0 %v9871_v0 }
0x3022   : > { %v9468_v23 = vpop.eup %9467 }
0x3023   : > { %v7437_v25 = vmul.f32 %v9468_v23, %v9466_v15 }
0x3025   : > { %9190 = vmatmul.mubr.msk.f32.vlgmr.msra.gmra.mxu0 %vm1483_vm3, %v7437_v25  ;;  %v8169_v25 = vld [vmem:[#allocation19] ss:$0 sm:$0xff] }
0x3026   : > { %9201 = vmatprep.mubr.msk.f32.mxu0 %vm9873_vm0, %v9871_v0  ;;  %9198 = vmatpush3.msra.mxu0 %v7629_v42 }
0x3027   : > { %9199 = vmatprep.subr.mxu0 %v9871_v0 }
0x3028   : > { %9200 = vmatpush3.msra.mxu0 %v7628_v43 }
0x30e5   : > { %v7507_v10 = vpop.f32.mrf.mxu0 }
0x30e6   : > { %9195 = vmatmul.mubr.msk.f32.vlgmr.msra.gmra.mxu1 %vm5923_vm7, %v7507_v10 }
0x30e7   : > { %v9191_v26 = vpop.f32.mrf.mxu0  ;;  %9220 = vmatprep.mubr.msk.f32.mxu1 %vm9873_vm0, %v9871_v0  ;;  %9205 = vmatpush3.msra.mxu1 %v7744_v56 }
0x30e8   : > { %9206 = vmatprep.subr.mxu1 %v9871_v0 }
0x30e9   : > { %9207 = vmatpush3.msra.mxu1 %v7743_v57 }
0x30ea   : > { %9208 = vmatprep.subr.mxu1 %v9871_v0 }
0x30eb   : > { %9209 = vmatpush3.msra.mxu1 %v7742_v58 }
0x30ec   : > { %9210 = vmatprep.subr.mxu1 %v9871_v0 }
0x30ed   : > { %9211 = vmatpush3.msra.mxu1 %v7741_v59 }
0x30ee   : > { %9212 = vmatprep.subr.mxu1 %v9871_v0 }
0x30ef   : > { %9213 = vmatpush3.msra.mxu1 %v7740_v60 }
0x30f0   : > { %9214 = vmatprep.subr.mxu1 %v9871_v0 }
0x30f1   : > { %9215 = vmatpush3.msra.mxu1 %v7739_v35 }
0x30f2   : > { %9216 = vmatprep.subr.mxu1 %v9871_v0 }
0x30f3   : > { %9217 = vmatpush3.msra.mxu1 %v7738_v36 }
0x30f4   : > { %9218 = vmatprep.subr.mxu1 %v9871_v0 }
0x30f5   : > { %9219 = vmatpush3.msra.mxu1 %v7737_v61 }
0x31a6   : > { %v7584_v46 = vpop.f32.mrf.mxu1 }
0x31a7   : > { %v7588_v28 = vadd.f32 %v7584_v46, %v7112_v1 }
0x31a8   : > { %v9196_v30 = vpop.f32.mrf.mxu1 }
0x31a9   : > { %v7596_v31 = vadd.f32 %v8164_v27, %v7588_v28 }
0x31ab   : > { %v7597_v32 = vadd.f32 %v7596_v31, %v11038_v7 }
0x31ad   : > { %v7598_v33 = vsel %vm1406_vm2, %v7597_v32, 0.0 }
0x31ae   : > { %7599 = vadd.xlane.f32.xlu1 %v7598_v33 }
0x3237   : > { %v7600_v34 = vpop.xlane.xlu1 %7599 }
0x3238   : > { %v7602_v37 = vmul.f32 0.0625, %v7600_v34 }
0x323a   : > { %v7603_v38 = vsub.f32 %v7597_v32, %v7602_v37 }
0x323c   : > { %v7604_v39 = vmul.f32 %v7603_v38, %v7603_v38 }
0x323e   : > { %v7605_v41 = vsel %vm1406_vm2, %v7604_v39, 0.0 }
0x323f   : > { %7606 = vadd.xlane.f32.xlu1 %v7605_v41 }
0x32c8   : > { %v7607_v7 = vpop.xlane.xlu1 %7606 }
0x32c9   : > { %v7608_v44 = vmul.f32 0.0625, %v7607_v7 }
0x32cb   : > { %v7609_v49 = vadd.f32 1e-05, %v7608_v44 }
0x32cd   : > { %9469 = vrsqrt.f32 %v7609_v49 }
0x32da   : > { %v9470_v50 = vpop.eup %9469 }
0x32db   : > { %v7611_v53 = vmul.f32 %v9470_v50, %v7603_v38 }
0x32dd   : > { %v7619_v54 = vmul.f32 %v8165_v51, %v7611_v53 }
0x32df   : > { %v7627_v55 = vadd.f32 %v8166_v52, %v7619_v54 }
0x32e1   : > { %9202 = vmatmul.mubr.msk.f32.vlgmr.msra.gmra.mxu0 %vm1406_vm2, %v7627_v55 }
0x33a1   : > { %v7706_v63 = vpop.f32.mrf.mxu0 }
0x33a2   : > { %v7707_v48 = vadd.f32 %v8167_v62, %v7706_v63 }
0x33a3   : > { %v9203_v19 = vpop.f32.mrf.mxu0 }
0x33a4   : > { %v7711_v20 = vmul.f32 0.70710677, %v7707_v48  ;;  %v7710_v40 = vmul.f32 0.5, %v7707_v48 }
0x33a6   : > { %v7714_v21 = vand.u32 2147483647, %v7711_v20  ;;  %vm7712_vm9 = vcmp.ge.f32.partialorder %v7711_v20, 0.0 }
0x33a7   : > { %v7713_v47 = vsel %vm7712_vm9, 1.0, %v9880_v5 }
0x33a8   : > { %v7715_v29 = vmul.f32 0.3275911, %v7714_v21  ;;  %v7728_v1 = vsub.f32 0.0, %v7714_v21 }
0x33aa   : > { %v7716_v22 = vadd.f32 1.0, %v7715_v29  ;;  %v7729_v2 = vmul.f32 %v7728_v1, %v7714_v21 }
0x33ac   : > { %9471 = vrcp.f32 %v7716_v22  ;;  %v7730_v6 = vmul.f32 1.442695, %v7729_v2 }
0x33ae   : > { %9473 = vpow2.f32 %v7730_v6 }
0x33b9   : > { %v9472_v3 = vpop.eup %9471 }
0x33ba   : > { %v7719_v4 = vmul.f32 1.0614054, %v9472_v3 }
0x33bb   : > { %v9474_v24 = vpop.eup %9473 }
0x33bc   : > { %v7720_v8 = vadd.f32 -1.4531521, %v7719_v4 }
0x33be   : > { %v7721_v9 = vmul.f32 %v9472_v3, %v7720_v8 }
0x33c0   : > { %v7722_v11 = vadd.f32 1.4214138, %v7721_v9 }
0x33c2   : > { %v7723_v0 = vmul.f32 %v9472_v3, %v7722_v11 }
0x33c4   : > { %v7724_v12 = vadd.f32 -0.28449672, %v7723_v0 }
0x33c6   : > { %v7725_v13 = vmul.f32 %v9472_v3, %v7724_v12 }
0x33c8   : > { %v7726_v14 = vadd.f32 0.2548296, %v7725_v13 }
0x33ca   : > { %v7727_v45 = vmul.f32 %v9472_v3, %v7726_v14 }
0x33cc   : > { %v7732_v15 = vmul.f32 %v9474_v24, %v7727_v45 }
0x33ce   : > { %v7733_v16 = vsub.f32 1.0, %v7732_v15 }
0x33d0   : > { %v7734_v17 = vmul.f32 %v7733_v16, %v7713_v47 }
0x33d2   : > { %v7735_v18 = vadd.f32 1.0, %v7734_v17 }
0x33d4   : > { %v7736_v23 = vmul.f32 %v7735_v18, %v7710_v40 }
0x33d6   : > { %9221 = vmatmul.mubr.msk.f32.vlgmr.msra.gmra.mxu1 %vm1141_vm1, %v7736_v23 }
0x3496   : > { %v7821_v10 = vpop.f32.mrf.mxu1 }
0x3497   : > { %v7822_v26 = vadd.f32 %v8169_v25, %v7821_v10 }
0x3498   : > { %v9222_v46 = vpop.f32.mrf.mxu1 }
0x3499   : > { %7825 = vst.msk [vmem:[%s1124_s15] sm:$0xff] %vm1406_vm2, %v7822_v26 }
0x349a PF: > { %s80_s22 = sadd.s32 1, %s9822_s22  }
0x349b   : > { %p77_p8 = scmp.ge.s32.totalorder %s80_s22, 4  }
0x349d   :  { %79 = sbr.rel (!%p77_p8) target bundleno = 56 (0x38), region = 254 }
0x34a2   :  { %7845 = vsyncpa [#allocation3], 1 }
0x34a3   :  { %7847 = vsyncpa [#allocation3 + $0x1], 1 }
0x34a4   :  { %7848 = vsyncpa [#allocation5], 1 }
0x34a5   :  { %7849 = vsyncpa [#allocation8], 1 }
0x34a6   :  { %7850 = vsyncpa [#allocation11], 1 }
0x34a7   :  { %7851 = vsyncpa [#allocation14], 1 }
0x34a8   :  { %7852 = vsyncpa [#allocation17], 1 }
0x34a9   :  { %7853 = vsyncpa [#allocation20], 1 }

</bundles_post_ra>
